<compile_context>
chip_gen: v5e
topology: v5e:2x2
jax: 0.10.0
libtpu: 0.0.40
codegen_flags: <defaults>
</compile_context>

<pallas_src>
import functools

import jax
import jax.numpy as jnp
import numpy as np
from jax import lax
from jax.experimental import pallas as pl
from jax.experimental.pallas import tpu as pltpu


# ----------------------------------------------------------------------------
# In-kernel helpers
# ----------------------------------------------------------------------------
def _shift_rows(v, s):
    """Shift rows of (L, C) toward higher indices by s (zero fill)."""
    if s == 0:
        return v
    L, C = v.shape
    z = jnp.zeros((abs(s), C), v.dtype)
    if s > 0:
        return jnp.concatenate([z, v[: L - s, :]], axis=0)
    return jnp.concatenate([v[-s:, :], z], axis=0)


def _conv_taps(a_bf16, w_ref, K):
    """Zero-padded 1-D conv over rows: a (L, Cin) bf16, w_ref (K, Cin, Cout) bf16.

    Per tap: one unshifted MXU matmul with f32 accumulation; the K partial
    results (L, Cout) are combined with zero-filled row shifts (no padded copy
    of the wide activation)."""
    pad = K // 2
    acc = None
    for k in range(K):
        q = jnp.dot(a_bf16, w_ref[k], preferred_element_type=jnp.float32)
        q = _shift_rows(q, pad - k)
        acc = q if acc is None else acc + q
    return acc


# ----------------------------------------------------------------------------
# Fused SPADE (+ following conv) kernel
# ----------------------------------------------------------------------------
def _spade_conv_kernel(x_ref, seg_ref, ws_ref, bs_ref, wgb_ref, bgb_ref,
                       wc_ref, bc_ref, *rest, Ks, Kc, leaky, has_res, eps):
    """One batch element, full L.

    x_ref   : (1, L, C)            f32   activation being normalized
    seg_ref : (1, L+2*(Ks//2), S)  f32   segmap, pre-padded for the shared conv
    ws_ref  : (Ks*S, NH)           bf16  mlp_shared weight (im2col layout)
    bs_ref  : (1, NH)              f32
    wgb_ref : (Ks, NH, 2*C)        bf16  mlp_gamma|mlp_beta concatenated
    bgb_ref : (1, 2*C)             f32
    wc_ref  : (Kc, C, Cout)        bf16  following conv weight
    bc_ref  : (1, Cout)            f32   (zeros when the conv has no bias)
    rest    : [residual (1,L,Cout) f32,] out (1,L,Cout) f32
    """
    if has_res:
        r_ref, o_ref = rest
    else:
        (o_ref,) = rest
    L = o_ref.shape[1]
    C = x_ref.shape[2]

    # --- mlp_shared: fold K into the contraction (im2col) -> one MXU matmul + ReLU
    seg = seg_ref[0]                                            # (L+2p, S) f32
    cols = [seg[k:k + L, :] for k in range(Ks)]
    xcol = jnp.concatenate(cols, axis=-1).astype(jnp.bfloat16)  # (L, Ks*S)
    actv = jnp.dot(xcol, ws_ref[...], preferred_element_type=jnp.float32)
    actv = jnp.maximum(actv + bs_ref[...], 0.0)                 # (L, NH) f32
    actv_bf = actv.astype(jnp.bfloat16)

    # --- mlp_gamma + mlp_beta as one concatenated conv (2*C output channels)
    gb = _conv_taps(actv_bf, wgb_ref, Ks) + bgb_ref[...]        # (L, 2C) f32
    gamma = gb[:, :C]
    beta = gb[:, C:]

    # --- InstanceNorm1d(affine=False) over L + SPADE modulation (+ LeakyReLU 0.2)
    x = x_ref[0].astype(jnp.float32)                            # (L, C)
    mean = jnp.mean(x, axis=0, keepdims=True)
    var = jnp.mean(jnp.square(x - mean), axis=0, keepdims=True)
    h = (x - mean) * lax.rsqrt(var + eps)
    h = h * (1.0 + gamma) + beta
    if leaky:
        h = jnp.where(h >= 0, h, 0.2 * h)

    # --- following conv (k=3 zero-pad or k=1), fused bias (+ residual)
    out = _conv_taps(h.astype(jnp.bfloat16), wc_ref, Kc) + bc_ref[...]
    if has_res:
        out = out + r_ref[0].astype(jnp.float32)
    o_ref[0] = out.astype(o_ref.dtype)


# ----------------------------------------------------------------------------
# Wrapper
# ----------------------------------------------------------------------------
def spade_conv(x, seg_pad, spade_p, conv_w, conv_b, *, kc, leaky, residual=None):
    """Fused SPADE(x, seg) [+LeakyReLU] -> conv [+bias] [+residual].

    x       : (N, L, C)   f32 channels-last
    seg_pad : (N, L+2, S) f32 channels-last segmap, pre-padded for k=3 shared conv
    spade_p : {"shared": (w, b), "gamma": (w, b), "beta": (w, b)} PyTorch layouts
    conv_w  : (Cout, C, kc); conv_b: (Cout,) or None
    """
    N, L, C = x.shape
    S = seg_pad.shape[2]
    Lp = seg_pad.shape[1]

    ws_w, ws_b = spade_p["shared"]
    nh = ws_w.shape[0]
    Ks = ws_w.shape[2]
    # mlp_shared weight in im2col layout: row index = k*S + cin
    ws = jnp.transpose(ws_w, (2, 1, 0)).reshape(Ks * S, nh).astype(jnp.bfloat16)
    bs = ws_b.reshape(1, nh).astype(jnp.float32)

    wg_w, wg_b = spade_p["gamma"]
    wb_w, wb_b = spade_p["beta"]
    wgb = jnp.concatenate([jnp.transpose(wg_w, (2, 1, 0)),
                           jnp.transpose(wb_w, (2, 1, 0))],
                          axis=-1).astype(jnp.bfloat16)          # (Ks, nh, 2C)
    bgb = jnp.concatenate([wg_b, wb_b]).reshape(1, 2 * C).astype(jnp.float32)

    Cout = conv_w.shape[0]
    wc = jnp.transpose(conv_w, (2, 1, 0)).astype(jnp.bfloat16)   # (kc, C, Cout)
    bc = (conv_b if conv_b is not None
          else jnp.zeros((Cout,), jnp.float32)).reshape(1, Cout).astype(jnp.float32)

    in_specs = [
        pl.BlockSpec((1, L, C), lambda n: (n, 0, 0)),
        pl.BlockSpec((1, Lp, S), lambda n: (n, 0, 0)),
        pl.BlockSpec((Ks * S, nh), lambda n: (0, 0)),
        pl.BlockSpec((1, nh), lambda n: (0, 0)),
        pl.BlockSpec((Ks, nh, 2 * C), lambda n: (0, 0, 0)),
        pl.BlockSpec((1, 2 * C), lambda n: (0, 0)),
        pl.BlockSpec((kc, C, Cout), lambda n: (0, 0, 0)),
        pl.BlockSpec((1, Cout), lambda n: (0, 0)),
    ]
    args = [x, seg_pad, ws, bs, wgb, bgb, wc, bc]
    if residual is not None:
        in_specs.append(pl.BlockSpec((1, L, Cout), lambda n: (n, 0, 0)))
        args.append(residual)

    kernel = functools.partial(_spade_conv_kernel, Ks=Ks, Kc=kc, leaky=leaky,
                               has_res=residual is not None, eps=1e-5)
    return pl.pallas_call(
        kernel,
        out_shape=jax.ShapeDtypeStruct((N, L, Cout), jnp.float32),
        grid=(N,),
        in_specs=in_specs,
        out_specs=pl.BlockSpec((1, L, Cout), lambda n: (n, 0, 0)),
        compiler_params=pltpu.CompilerParams(
            dimension_semantics=("parallel",),
            vmem_limit_bytes=48 * 1024 * 1024),
    )(*args)


# ----------------------------------------------------------------------------
# Parameter init (deterministic, synthetic)
# ----------------------------------------------------------------------------
def init_conv(key, cout, cin, k, bias=True):
    kw, kb = jax.random.split(key)
    w = jax.random.normal(kw, (cout, cin, k), jnp.float32) * 0.1
    b = jax.random.normal(kb, (cout,), jnp.float32) * 0.1 if bias else None
    return w, b


def init_spade(key, norm_nc, label_nc, nhidden=512, k=3):
    k1, k2, k3 = jax.random.split(key, 3)
    return {
        "shared": init_conv(k1, nhidden, label_nc, k),
        "gamma": init_conv(k2, norm_nc, nhidden, k),
        "beta": init_conv(k3, norm_nc, nhidden, k),
    }


def init_block(key, fin, fout, semantic_nc):
    fmiddle = min(fin, fout)
    keys = jax.random.split(key, 6)
    p = {
        "conv_0": init_conv(keys[0], fmiddle, fin, 3),
        "conv_1": init_conv(keys[1], fout, fmiddle, 3),
        "norm_0": init_spade(keys[2], fin, semantic_nc),
        "norm_1": init_spade(keys[3], fmiddle, semantic_nc),
    }
    if fin != fout:
        w_s, _ = init_conv(keys[4], fout, fin, 1, bias=False)
        p["conv_s"] = w_s
        p["norm_s"] = init_spade(keys[5], fin, semantic_nc)
    return p


# ----------------------------------------------------------------------------
# SPADEResnetBlock forward (Pallas path): 3 pallas_calls (2 w/o learned shortcut)
# ----------------------------------------------------------------------------
def nearest_resize_1d(seg_ncl, L_out):
    """F.interpolate(mode='nearest') along the last dim (NCL layout)."""
    L_in = seg_ncl.shape[2]
    idx = jnp.floor(jnp.arange(L_out) * (L_in / L_out)).astype(jnp.int32)
    idx = jnp.minimum(idx, L_in - 1)
    return seg_ncl[:, :, idx]


@functools.partial(jax.jit, static_argnums=(3, 4))
def spade_resnet_block(x_ncl, seg_ncl, params, fin, fout):
    N, _, L = x_ncl.shape
    seg_r = nearest_resize_1d(seg_ncl, L)                  # (N, S, L)
    x = jnp.transpose(x_ncl, (0, 2, 1))                    # (N, L, fin)   once
    seg = jnp.transpose(seg_r, (0, 2, 1))                  # (N, L, S)     once
    seg_pad = jnp.pad(seg, ((0, 0), (1, 1), (0, 0)))       # shared-conv halo, once

    learned_shortcut = fin != fout
    if learned_shortcut:
        # SPADE(norm_s) -> 1x1 conv_s (no bias, no activation), fused
        x_s = spade_conv(x, seg_pad, params["norm_s"], params["conv_s"], None,
                         kc=1, leaky=False)
    else:
        x_s = x

    # SPADE(norm_0) + LeakyReLU -> conv_0, fused
    dx = spade_conv(x, seg_pad, params["norm_0"], *params["conv_0"],
                    kc=3, leaky=True)
    # SPADE(norm_1) + LeakyReLU -> conv_1 + residual, fused
    out = spade_conv(dx, seg_pad, params["norm_1"], *params["conv_1"],
                     kc=3, leaky=True, residual=x_s)
    return jnp.transpose(out, (0, 2, 1))                   # back to (N, fout, L)


# ----------------------------------------------------------------------------
# Pure-JAX reference (bf16 MXU inputs, f32 accumulation — matches kernel precision)
# ----------------------------------------------------------------------------
def ref_conv1d(x_ncl, w, b):
    pad = w.shape[2] // 2
    out = lax.conv_general_dilated(
        x_ncl.astype(jnp.bfloat16), w.astype(jnp.bfloat16), (1,), [(pad, pad)],
        dimension_numbers=("NCH", "OIH", "NCH"),
        preferred_element_type=jnp.float32)
    if b is not None:
        out = out + b[None, :, None]
    return out


def ref_instance_norm(x_ncl, eps=1e-5):
    mean = jnp.mean(x_ncl, axis=2, keepdims=True)
    var = jnp.mean(jnp.square(x_ncl - mean), axis=2, keepdims=True)
    return (x_ncl - mean) * lax.rsqrt(var + eps)


def ref_spade(x_ncl, seg_r_ncl, sp):
    actv = jnp.maximum(ref_conv1d(seg_r_ncl, *sp["shared"]), 0.0)
    gamma = ref_conv1d(actv, *sp["gamma"])
    beta = ref_conv1d(actv, *sp["beta"])
    return ref_instance_norm(x_ncl) * (1.0 + gamma) + beta


def ref_block(x_ncl, seg_ncl, params, fin, fout):
    L = x_ncl.shape[2]
    seg_r = nearest_resize_1d(seg_ncl, L)
    lrelu = lambda h: jnp.where(h >= 0, h, 0.2 * h)
    if fin != fout:
        x_s = ref_conv1d(ref_spade(x_ncl, seg_r, params["norm_s"]),
                         params["conv_s"], None)
    else:
        x_s = x_ncl
    dx = ref_conv1d(lrelu(ref_spade(x_ncl, seg_r, params["norm_0"])), *params["conv_0"])
    dx = ref_conv1d(lrelu(ref_spade(dx, seg_r, params["norm_1"])), *params["conv_1"])
    return x_s + dx


# ----------------------------------------------------------------------------
if __name__ == "__main__":
    key = jax.random.PRNGKey(0)
    kx, ks, kp = jax.random.split(key, 3)

    N, fin, fout, semantic_nc, L, Lseg = 2, 4, 6, 3, 16, 8
    x = jax.random.normal(kx, (N, fin, L), jnp.float32)        # PyTorch NCL
    seg = jax.random.normal(ks, (N, semantic_nc, Lseg), jnp.float32)
    params = init_block(kp, fin, fout, semantic_nc)

    out = spade_resnet_block(x, seg, params, fin, fout)
    out = jax.block_until_ready(out)
    assert out.shape == (N, fout, L), out.shape

    ref = jax.block_until_ready(ref_block(x, seg, params, fin, fout))
    np.testing.assert_allclose(np.asarray(out), np.asarray(ref),
                               rtol=1e-2, atol=1e-2)
    print("KERNEL_OK")
</pallas_src>

<mosaic_0001>
module attributes {stable_mosaic.version = 11 : i64} {
  func.func @_spade_conv_kernel(%arg0: i32, %arg1: memref<1x16x4xf32, #tpu.memory_space<vmem>>, %arg2: memref<1x18x3xf32, #tpu.memory_space<vmem>>, %arg3: memref<9x512xbf16, #tpu.memory_space<vmem>>, %arg4: memref<1x512xf32, #tpu.memory_space<vmem>>, %arg5: memref<3x512x8xbf16, #tpu.memory_space<vmem>>, %arg6: memref<1x8xf32, #tpu.memory_space<vmem>>, %arg7: memref<3x4x4xbf16, #tpu.memory_space<vmem>>, %arg8: memref<1x4xf32, #tpu.memory_space<vmem>>, %arg9: memref<1x16x4xf32, #tpu.memory_space<vmem>>) attributes {dimension_semantics = [#tpu.dimension_semantics<parallel>], iteration_bounds = array<i64: 2>, scalar_prefetch = 0 : i64, scratch_operands = 0 : i64, tpu.core_type = #tpu.core_type<tc>, window_params = [{transform_indices = @transform_0, window_bounds = array<i64: 1, 16, 4>}, {transform_indices = @transform_1, window_bounds = array<i64: 1, 18, 3>}, {pipeline_mode = #tpu.pipeline_mode<synchronous>, transform_indices = @transform_2, window_bounds = array<i64: 9, 512>}, {pipeline_mode = #tpu.pipeline_mode<synchronous>, transform_indices = @transform_3, window_bounds = array<i64: 1, 512>}, {pipeline_mode = #tpu.pipeline_mode<synchronous>, transform_indices = @transform_4, window_bounds = array<i64: 3, 512, 8>}, {pipeline_mode = #tpu.pipeline_mode<synchronous>, transform_indices = @transform_5, window_bounds = array<i64: 1, 8>}, {pipeline_mode = #tpu.pipeline_mode<synchronous>, transform_indices = @transform_6, window_bounds = array<i64: 3, 4, 4>}, {pipeline_mode = #tpu.pipeline_mode<synchronous>, transform_indices = @transform_7, window_bounds = array<i64: 1, 4>}, {transform_indices = @transform_8, window_bounds = array<i64: 1, 16, 4>}]} {
    %c0 = arith.constant 0 : index
    %c0_0 = arith.constant 0 : index
    %c0_1 = arith.constant 0 : index
    %0 = vector.load %arg2[%c0, %c0_0, %c0_1] : memref<1x18x3xf32, #tpu.memory_space<vmem>>, vector<1x18x3xf32>
    %1 = vector.shape_cast %0 : vector<1x18x3xf32> to vector<18x3xf32>
    %2 = vector.extract_strided_slice %1 {offsets = [0, 0], sizes = [16, 3], strides = [1, 1]} : vector<18x3xf32> to vector<16x3xf32>
    %3 = vector.extract_strided_slice %1 {offsets = [1, 0], sizes = [16, 3], strides = [1, 1]} : vector<18x3xf32> to vector<16x3xf32>
    %4 = vector.extract_strided_slice %1 {offsets = [2, 0], sizes = [16, 3], strides = [1, 1]} : vector<18x3xf32> to vector<16x3xf32>
    %5 = tpu.concatenate %2, %3, %4 in 1 : vector<16x3xf32>, vector<16x3xf32>, vector<16x3xf32> -> vector<16x9xf32>
    %6 = arith.truncf %5 : vector<16x9xf32> to vector<16x9xbf16>
    %c0_2 = arith.constant 0 : index
    %c0_3 = arith.constant 0 : index
    %7 = vector.load %arg3[%c0_2, %c0_3] : memref<9x512xbf16, #tpu.memory_space<vmem>>, vector<9x512xbf16>
    %cst = arith.constant dense<0.000000e+00> : vector<16x512xf32>
    %8 = tpu.matmul %6, %7, %cst {dimension_numbers = #tpu.dot_dimension_numbers<[1], [0], [0], [1], [0, 0, 1, 1], [], []>} : vector<16x9xbf16>, vector<9x512xbf16>, vector<16x512xf32> -> vector<16x512xf32>
    %c0_4 = arith.constant 0 : index
    %c0_5 = arith.constant 0 : index
    %9 = vector.load %arg4[%c0_4, %c0_5] : memref<1x512xf32, #tpu.memory_space<vmem>>, vector<1x512xf32>
    %10 = vector.broadcast %9 : vector<1x512xf32> to vector<16x512xf32>
    %11 = arith.addf %8, %10 : vector<16x512xf32>
    %cst_6 = arith.constant 0.000000e+00 : f32
    %12 = vector.broadcast %cst_6 : f32 to vector<16x512xf32>
    %13 = arith.maximumf %11, %12 : vector<16x512xf32>
    %14 = arith.truncf %13 : vector<16x512xf32> to vector<16x512xbf16>
    %c0_7 = arith.constant 0 : index
    %c0_8 = arith.constant 0 : index
    %c0_9 = arith.constant 0 : index
    %15 = vector.load %arg5[%c0_7, %c0_8, %c0_9] : memref<3x512x8xbf16, #tpu.memory_space<vmem>>, vector<1x512x8xbf16>
    %16 = vector.shape_cast %15 : vector<1x512x8xbf16> to vector<512x8xbf16>
    %cst_10 = arith.constant dense<0.000000e+00> : vector<16x8xf32>
    %17 = tpu.matmul %14, %16, %cst_10 {dimension_numbers = #tpu.dot_dimension_numbers<[1], [0], [0], [1], [0, 0, 1, 1], [], []>} : vector<16x512xbf16>, vector<512x8xbf16>, vector<16x8xf32> -> vector<16x8xf32>
    %cst_11 = arith.constant 0.000000e+00 : f32
    %18 = vector.broadcast %cst_11 : f32 to vector<1x8xf32>
    %19 = vector.extract_strided_slice %17 {offsets = [0, 0], sizes = [15, 8], strides = [1, 1]} : vector<16x8xf32> to vector<15x8xf32>
    %20 = tpu.concatenate %18, %19 in 0 : vector<1x8xf32>, vector<15x8xf32> -> vector<16x8xf32>
    %c1 = arith.constant 1 : index
    %c0_12 = arith.constant 0 : index
    %c0_13 = arith.constant 0 : index
    %21 = vector.load %arg5[%c1, %c0_12, %c0_13] : memref<3x512x8xbf16, #tpu.memory_space<vmem>>, vector<1x512x8xbf16>
    %22 = vector.shape_cast %21 : vector<1x512x8xbf16> to vector<512x8xbf16>
    %cst_14 = arith.constant dense<0.000000e+00> : vector<16x8xf32>
    %23 = tpu.matmul %14, %22, %cst_14 {dimension_numbers = #tpu.dot_dimension_numbers<[1], [0], [0], [1], [0, 0, 1, 1], [], []>} : vector<16x512xbf16>, vector<512x8xbf16>, vector<16x8xf32> -> vector<16x8xf32>
    %24 = arith.addf %20, %23 : vector<16x8xf32>
    %c2 = arith.constant 2 : index
    %c0_15 = arith.constant 0 : index
    %c0_16 = arith.constant 0 : index
    %25 = vector.load %arg5[%c2, %c0_15, %c0_16] : memref<3x512x8xbf16, #tpu.memory_space<vmem>>, vector<1x512x8xbf16>
    %26 = vector.shape_cast %25 : vector<1x512x8xbf16> to vector<512x8xbf16>
    %cst_17 = arith.constant dense<0.000000e+00> : vector<16x8xf32>
    %27 = tpu.matmul %14, %26, %cst_17 {dimension_numbers = #tpu.dot_dimension_numbers<[1], [0], [0], [1], [0, 0, 1, 1], [], []>} : vector<16x512xbf16>, vector<512x8xbf16>, vector<16x8xf32> -> vector<16x8xf32>
    %cst_18 = arith.constant 0.000000e+00 : f32
    %28 = vector.broadcast %cst_18 : f32 to vector<1x8xf32>
    %29 = vector.extract_strided_slice %27 {offsets = [1, 0], sizes = [15, 8], strides = [1, 1]} : vector<16x8xf32> to vector<15x8xf32>
    %30 = tpu.concatenate %29, %28 in 0 : vector<15x8xf32>, vector<1x8xf32> -> vector<16x8xf32>
    %31 = arith.addf %24, %30 : vector<16x8xf32>
    %c0_19 = arith.constant 0 : index
    %c0_20 = arith.constant 0 : index
    %32 = vector.load %arg6[%c0_19, %c0_20] : memref<1x8xf32, #tpu.memory_space<vmem>>, vector<1x8xf32>
    %33 = vector.broadcast %32 : vector<1x8xf32> to vector<16x8xf32>
    %34 = arith.addf %31, %33 : vector<16x8xf32>
    %35 = vector.extract_strided_slice %34 {offsets = [0, 0], sizes = [16, 4], strides = [1, 1]} : vector<16x8xf32> to vector<16x4xf32>
    %36 = vector.extract_strided_slice %34 {offsets = [0, 4], sizes = [16, 4], strides = [1, 1]} : vector<16x8xf32> to vector<16x4xf32>
    %c0_21 = arith.constant 0 : index
    %c0_22 = arith.constant 0 : index
    %c0_23 = arith.constant 0 : index
    %37 = vector.load %arg1[%c0_21, %c0_22, %c0_23] : memref<1x16x4xf32, #tpu.memory_space<vmem>>, vector<1x16x4xf32>
    %38 = vector.shape_cast %37 : vector<1x16x4xf32> to vector<16x4xf32>
    %cst_24 = arith.constant dense<0.000000e+00> : vector<4xf32>
    %39 = vector.multi_reduction <add>, %38, %cst_24 [0] : vector<16x4xf32> to vector<4xf32>
    %40 = vector.shape_cast %39 : vector<4xf32> to vector<1x4xf32>
    %cst_25 = arith.constant 1.600000e+01 : f32
    %41 = vector.broadcast %cst_25 : f32 to vector<1x4xf32>
    %42 = arith.divf %40, %41 : vector<1x4xf32>
    %43 = vector.broadcast %42 : vector<1x4xf32> to vector<16x4xf32>
    %44 = arith.subf %38, %43 : vector<16x4xf32>
    %45 = arith.mulf %44, %44 : vector<16x4xf32>
    %cst_26 = arith.constant dense<0.000000e+00> : vector<4xf32>
    %46 = vector.multi_reduction <add>, %45, %cst_26 [0] : vector<16x4xf32> to vector<4xf32>
    %47 = vector.shape_cast %46 : vector<4xf32> to vector<1x4xf32>
    %cst_27 = arith.constant 1.600000e+01 : f32
    %48 = vector.broadcast %cst_27 : f32 to vector<1x4xf32>
    %49 = arith.divf %47, %48 : vector<1x4xf32>
    %50 = vector.broadcast %42 : vector<1x4xf32> to vector<16x4xf32>
    %51 = arith.subf %38, %50 : vector<16x4xf32>
    %cst_28 = arith.constant 9.99999974E-6 : f32
    %52 = vector.broadcast %cst_28 : f32 to vector<1x4xf32>
    %53 = arith.addf %49, %52 : vector<1x4xf32>
    %54 = math.rsqrt %53 : vector<1x4xf32>
    %55 = vector.broadcast %54 : vector<1x4xf32> to vector<16x4xf32>
    %56 = arith.mulf %51, %55 : vector<16x4xf32>
    %cst_29 = arith.constant 1.000000e+00 : f32
    %57 = vector.broadcast %cst_29 : f32 to vector<16x4xf32>
    %58 = arith.addf %57, %35 : vector<16x4xf32>
    %59 = arith.mulf %56, %58 : vector<16x4xf32>
    %60 = arith.addf %59, %36 : vector<16x4xf32>
    %cst_30 = arith.constant 0.000000e+00 : f32
    %61 = vector.broadcast %cst_30 : f32 to vector<16x4xf32>
    %62 = arith.cmpf oge, %60, %61 : vector<16x4xf32>
    %cst_31 = arith.constant 2.000000e-01 : f32
    %63 = vector.broadcast %cst_31 : f32 to vector<16x4xf32>
    %64 = arith.mulf %63, %60 : vector<16x4xf32>
    %65 = arith.select %62, %60, %64 : vector<16x4xi1>, vector<16x4xf32>
    %66 = arith.truncf %65 : vector<16x4xf32> to vector<16x4xbf16>
    %c0_32 = arith.constant 0 : index
    %c0_33 = arith.constant 0 : index
    %c0_34 = arith.constant 0 : index
    %67 = vector.load %arg7[%c0_32, %c0_33, %c0_34] : memref<3x4x4xbf16, #tpu.memory_space<vmem>>, vector<1x4x4xbf16>
    %68 = vector.shape_cast %67 : vector<1x4x4xbf16> to vector<4x4xbf16>
    %cst_35 = arith.constant dense<0.000000e+00> : vector<16x4xf32>
    %69 = tpu.matmul %66, %68, %cst_35 {dimension_numbers = #tpu.dot_dimension_numbers<[1], [0], [0], [1], [0, 0, 1, 1], [], []>} : vector<16x4xbf16>, vector<4x4xbf16>, vector<16x4xf32> -> vector<16x4xf32>
    %cst_36 = arith.constant 0.000000e+00 : f32
    %70 = vector.broadcast %cst_36 : f32 to vector<1x4xf32>
    %71 = vector.extract_strided_slice %69 {offsets = [0, 0], sizes = [15, 4], strides = [1, 1]} : vector<16x4xf32> to vector<15x4xf32>
    %72 = tpu.concatenate %70, %71 in 0 : vector<1x4xf32>, vector<15x4xf32> -> vector<16x4xf32>
    %c1_37 = arith.constant 1 : index
    %c0_38 = arith.constant 0 : index
    %c0_39 = arith.constant 0 : index
    %73 = vector.load %arg7[%c1_37, %c0_38, %c0_39] : memref<3x4x4xbf16, #tpu.memory_space<vmem>>, vector<1x4x4xbf16>
    %74 = vector.shape_cast %73 : vector<1x4x4xbf16> to vector<4x4xbf16>
    %cst_40 = arith.constant dense<0.000000e+00> : vector<16x4xf32>
    %75 = tpu.matmul %66, %74, %cst_40 {dimension_numbers = #tpu.dot_dimension_numbers<[1], [0], [0], [1], [0, 0, 1, 1], [], []>} : vector<16x4xbf16>, vector<4x4xbf16>, vector<16x4xf32> -> vector<16x4xf32>
    %76 = arith.addf %72, %75 : vector<16x4xf32>
    %c2_41 = arith.constant 2 : index
    %c0_42 = arith.constant 0 : index
    %c0_43 = arith.constant 0 : index
    %77 = vector.load %arg7[%c2_41, %c0_42, %c0_43] : memref<3x4x4xbf16, #tpu.memory_space<vmem>>, vector<1x4x4xbf16>
    %78 = vector.shape_cast %77 : vector<1x4x4xbf16> to vector<4x4xbf16>
    %cst_44 = arith.constant dense<0.000000e+00> : vector<16x4xf32>
    %79 = tpu.matmul %66, %78, %cst_44 {dimension_numbers = #tpu.dot_dimension_numbers<[1], [0], [0], [1], [0, 0, 1, 1], [], []>} : vector<16x4xbf16>, vector<4x4xbf16>, vector<16x4xf32> -> vector<16x4xf32>
    %cst_45 = arith.constant 0.000000e+00 : f32
    %80 = vector.broadcast %cst_45 : f32 to vector<1x4xf32>
    %81 = vector.extract_strided_slice %79 {offsets = [1, 0], sizes = [15, 4], strides = [1, 1]} : vector<16x4xf32> to vector<15x4xf32>
    %82 = tpu.concatenate %81, %80 in 0 : vector<15x4xf32>, vector<1x4xf32> -> vector<16x4xf32>
    %83 = arith.addf %76, %82 : vector<16x4xf32>
    %c0_46 = arith.constant 0 : index
    %c0_47 = arith.constant 0 : index
    %84 = vector.load %arg8[%c0_46, %c0_47] : memref<1x4xf32, #tpu.memory_space<vmem>>, vector<1x4xf32>
    %85 = vector.broadcast %84 : vector<1x4xf32> to vector<16x4xf32>
    %86 = arith.addf %83, %85 : vector<16x4xf32>
    %c0_48 = arith.constant 0 : index
    %c0_49 = arith.constant 0 : index
    %c0_50 = arith.constant 0 : index
    %87 = vector.load %arg9[%c0_48, %c0_49, %c0_50] : memref<1x16x4xf32, #tpu.memory_space<vmem>>, vector<1x16x4xf32>
    %88 = vector.shape_cast %87 : vector<1x16x4xf32> to vector<16x4xf32>
    %89 = vector.shape_cast %86 : vector<16x4xf32> to vector<1x16x4xf32>
    tpu.vector_store %arg9[%c0_48, %c0_49, %c0_50], %89 {strides = array<i32>} : memref<1x16x4xf32, #tpu.memory_space<vmem>>, vector<1x16x4xf32>,
    return
  }
  func.func @transform_0(%arg0: i32) -> (i32, i32, i32) {
    %c0_i32 = arith.constant 0 : i32
    %c0_i32_0 = arith.constant 0 : i32
    %c0_i32_1 = arith.constant 0 : i32
    return %arg0, %c0_i32, %c0_i32_0 : i32, i32, i32
  }
  func.func @transform_1(%arg0: i32) -> (i32, i32, i32) {
    %c0_i32 = arith.constant 0 : i32
    %c0_i32_0 = arith.constant 0 : i32
    %c0_i32_1 = arith.constant 0 : i32
    return %arg0, %c0_i32, %c0_i32_0 : i32, i32, i32
  }
  func.func @transform_2(%arg0: i32) -> (i32, i32) {
    %c0_i32 = arith.constant 0 : i32
    %c0_i32_0 = arith.constant 0 : i32
    %c0_i32_1 = arith.constant 0 : i32
    return %c0_i32, %c0_i32_0 : i32, i32
  }
  func.func @transform_3(%arg0: i32) -> (i32, i32) {
    %c0_i32 = arith.constant 0 : i32
    %c0_i32_0 = arith.constant 0 : i32
    %c0_i32_1 = arith.constant 0 : i32
    return %c0_i32, %c0_i32_0 : i32, i32
  }
  func.func @transform_4(%arg0: i32) -> (i32, i32, i32) {
    %c0_i32 = arith.constant 0 : i32
    %c0_i32_0 = arith.constant 0 : i32
    %c0_i32_1 = arith.constant 0 : i32
    %c0_i32_2 = arith.constant 0 : i32
    return %c0_i32, %c0_i32_0, %c0_i32_1 : i32, i32, i32
  }
  func.func @transform_5(%arg0: i32) -> (i32, i32) {
    %c0_i32 = arith.constant 0 : i32
    %c0_i32_0 = arith.constant 0 : i32
    %c0_i32_1 = arith.constant 0 : i32
    return %c0_i32, %c0_i32_0 : i32, i32
  }
  func.func @transform_6(%arg0: i32) -> (i32, i32, i32) {
    %c0_i32 = arith.constant 0 : i32
    %c0_i32_0 = arith.constant 0 : i32
    %c0_i32_1 = arith.constant 0 : i32
    %c0_i32_2 = arith.constant 0 : i32
    return %c0_i32, %c0_i32_0, %c0_i32_1 : i32, i32, i32
  }
  func.func @transform_7(%arg0: i32) -> (i32, i32) {
    %c0_i32 = arith.constant 0 : i32
    %c0_i32_0 = arith.constant 0 : i32
    %c0_i32_1 = arith.constant 0 : i32
    return %c0_i32, %c0_i32_0 : i32, i32
  }
  func.func @transform_8(%arg0: i32) -> (i32, i32, i32) {
    %c0_i32 = arith.constant 0 : i32
    %c0_i32_0 = arith.constant 0 : i32
    %c0_i32_1 = arith.constant 0 : i32
    return %arg0, %c0_i32, %c0_i32_0 : i32, i32, i32
  }
}

module attributes {stable_mosaic.version = 11 : i64} {
  func.func @_spade_conv_kernel(%arg0: i32, %arg1: memref<1x16x4xf32, #tpu.memory_space<vmem>>, %arg2: memref<1x18x3xf32, #tpu.memory_space<vmem>>, %arg3: memref<9x512xbf16, #tpu.memory_space<vmem>>, %arg4: memref<1x512xf32, #tpu.memory_space<vmem>>, %arg5: memref<3x512x8xbf16, #tpu.memory_space<vmem>>, %arg6: memref<1x8xf32, #tpu.memory_space<vmem>>, %arg7: memref<1x4x6xbf16, #tpu.memory_space<vmem>>, %arg8: memref<1x6xf32, #tpu.memory_space<vmem>>, %arg9: memref<1x16x6xf32, #tpu.memory_space<vmem>>) attributes {dimension_semantics = [#tpu.dimension_semantics<parallel>], iteration_bounds = array<i64: 2>, scalar_prefetch = 0 : i64, scratch_operands = 0 : i64, tpu.core_type = #tpu.core_type<tc>, window_params = [{transform_indices = @transform_0, window_bounds = array<i64: 1, 16, 4>}, {transform_indices = @transform_1, window_bounds = array<i64: 1, 18, 3>}, {pipeline_mode = #tpu.pipeline_mode<synchronous>, transform_indices = @transform_2, window_bounds = array<i64: 9, 512>}, {pipeline_mode = #tpu.pipeline_mode<synchronous>, transform_indices = @transform_3, window_bounds = array<i64: 1, 512>}, {pipeline_mode = #tpu.pipeline_mode<synchronous>, transform_indices = @transform_4, window_bounds = array<i64: 3, 512, 8>}, {pipeline_mode = #tpu.pipeline_mode<synchronous>, transform_indices = @transform_5, window_bounds = array<i64: 1, 8>}, {pipeline_mode = #tpu.pipeline_mode<synchronous>, transform_indices = @transform_6, window_bounds = array<i64: 1, 4, 6>}, {pipeline_mode = #tpu.pipeline_mode<synchronous>, transform_indices = @transform_7, window_bounds = array<i64: 1, 6>}, {transform_indices = @transform_8, window_bounds = array<i64: 1, 16, 6>}]} {
    %c0 = arith.constant 0 : index
    %c0_0 = arith.constant 0 : index
    %c0_1 = arith.constant 0 : index
    %0 = vector.load %arg2[%c0, %c0_0, %c0_1] : memref<1x18x3xf32, #tpu.memory_space<vmem>>, vector<1x18x3xf32>
    %1 = vector.shape_cast %0 : vector<1x18x3xf32> to vector<18x3xf32>
    %2 = vector.extract_strided_slice %1 {offsets = [0, 0], sizes = [16, 3], strides = [1, 1]} : vector<18x3xf32> to vector<16x3xf32>
    %3 = vector.extract_strided_slice %1 {offsets = [1, 0], sizes = [16, 3], strides = [1, 1]} : vector<18x3xf32> to vector<16x3xf32>
    %4 = vector.extract_strided_slice %1 {offsets = [2, 0], sizes = [16, 3], strides = [1, 1]} : vector<18x3xf32> to vector<16x3xf32>
    %5 = tpu.concatenate %2, %3, %4 in 1 : vector<16x3xf32>, vector<16x3xf32>, vector<16x3xf32> -> vector<16x9xf32>
    %6 = arith.truncf %5 : vector<16x9xf32> to vector<16x9xbf16>
    %c0_2 = arith.constant 0 : index
    %c0_3 = arith.constant 0 : index
    %7 = vector.load %arg3[%c0_2, %c0_3] : memref<9x512xbf16, #tpu.memory_space<vmem>>, vector<9x512xbf16>
    %cst = arith.constant dense<0.000000e+00> : vector<16x512xf32>
    %8 = tpu.matmul %6, %7, %cst {dimension_numbers = #tpu.dot_dimension_numbers<[1], [0], [0], [1], [0, 0, 1, 1], [], []>} : vector<16x9xbf16>, vector<9x512xbf16>, vector<16x512xf32> -> vector<16x512xf32>
    %c0_4 = arith.constant 0 : index
    %c0_5 = arith.constant 0 : index
    %9 = vector.load %arg4[%c0_4, %c0_5] : memref<1x512xf32, #tpu.memory_space<vmem>>, vector<1x512xf32>
    %10 = vector.broadcast %9 : vector<1x512xf32> to vector<16x512xf32>
    %11 = arith.addf %8, %10 : vector<16x512xf32>
    %cst_6 = arith.constant 0.000000e+00 : f32
    %12 = vector.broadcast %cst_6 : f32 to vector<16x512xf32>
    %13 = arith.maximumf %11, %12 : vector<16x512xf32>
    %14 = arith.truncf %13 : vector<16x512xf32> to vector<16x512xbf16>
    %c0_7 = arith.constant 0 : index
    %c0_8 = arith.constant 0 : index
    %c0_9 = arith.constant 0 : index
    %15 = vector.load %arg5[%c0_7, %c0_8, %c0_9] : memref<3x512x8xbf16, #tpu.memory_space<vmem>>, vector<1x512x8xbf16>
    %16 = vector.shape_cast %15 : vector<1x512x8xbf16> to vector<512x8xbf16>
    %cst_10 = arith.constant dense<0.000000e+00> : vector<16x8xf32>
    %17 = tpu.matmul %14, %16, %cst_10 {dimension_numbers = #tpu.dot_dimension_numbers<[1], [0], [0], [1], [0, 0, 1, 1], [], []>} : vector<16x512xbf16>, vector<512x8xbf16>, vector<16x8xf32> -> vector<16x8xf32>
    %cst_11 = arith.constant 0.000000e+00 : f32
    %18 = vector.broadcast %cst_11 : f32 to vector<1x8xf32>
    %19 = vector.extract_strided_slice %17 {offsets = [0, 0], sizes = [15, 8], strides = [1, 1]} : vector<16x8xf32> to vector<15x8xf32>
    %20 = tpu.concatenate %18, %19 in 0 : vector<1x8xf32>, vector<15x8xf32> -> vector<16x8xf32>
    %c1 = arith.constant 1 : index
    %c0_12 = arith.constant 0 : index
    %c0_13 = arith.constant 0 : index
    %21 = vector.load %arg5[%c1, %c0_12, %c0_13] : memref<3x512x8xbf16, #tpu.memory_space<vmem>>, vector<1x512x8xbf16>
    %22 = vector.shape_cast %21 : vector<1x512x8xbf16> to vector<512x8xbf16>
    %cst_14 = arith.constant dense<0.000000e+00> : vector<16x8xf32>
    %23 = tpu.matmul %14, %22, %cst_14 {dimension_numbers = #tpu.dot_dimension_numbers<[1], [0], [0], [1], [0, 0, 1, 1], [], []>} : vector<16x512xbf16>, vector<512x8xbf16>, vector<16x8xf32> -> vector<16x8xf32>
    %24 = arith.addf %20, %23 : vector<16x8xf32>
    %c2 = arith.constant 2 : index
    %c0_15 = arith.constant 0 : index
    %c0_16 = arith.constant 0 : index
    %25 = vector.load %arg5[%c2, %c0_15, %c0_16] : memref<3x512x8xbf16, #tpu.memory_space<vmem>>, vector<1x512x8xbf16>
    %26 = vector.shape_cast %25 : vector<1x512x8xbf16> to vector<512x8xbf16>
    %cst_17 = arith.constant dense<0.000000e+00> : vector<16x8xf32>
    %27 = tpu.matmul %14, %26, %cst_17 {dimension_numbers = #tpu.dot_dimension_numbers<[1], [0], [0], [1], [0, 0, 1, 1], [], []>} : vector<16x512xbf16>, vector<512x8xbf16>, vector<16x8xf32> -> vector<16x8xf32>
    %cst_18 = arith.constant 0.000000e+00 : f32
    %28 = vector.broadcast %cst_18 : f32 to vector<1x8xf32>
    %29 = vector.extract_strided_slice %27 {offsets = [1, 0], sizes = [15, 8], strides = [1, 1]} : vector<16x8xf32> to vector<15x8xf32>
    %30 = tpu.concatenate %29, %28 in 0 : vector<15x8xf32>, vector<1x8xf32> -> vector<16x8xf32>
    %31 = arith.addf %24, %30 : vector<16x8xf32>
    %c0_19 = arith.constant 0 : index
    %c0_20 = arith.constant 0 : index
    %32 = vector.load %arg6[%c0_19, %c0_20] : memref<1x8xf32, #tpu.memory_space<vmem>>, vector<1x8xf32>
    %33 = vector.broadcast %32 : vector<1x8xf32> to vector<16x8xf32>
    %34 = arith.addf %31, %33 : vector<16x8xf32>
    %35 = vector.extract_strided_slice %34 {offsets = [0, 0], sizes = [16, 4], strides = [1, 1]} : vector<16x8xf32> to vector<16x4xf32>
    %36 = vector.extract_strided_slice %34 {offsets = [0, 4], sizes = [16, 4], strides = [1, 1]} : vector<16x8xf32> to vector<16x4xf32>
    %c0_21 = arith.constant 0 : index
    %c0_22 = arith.constant 0 : index
    %c0_23 = arith.constant 0 : index
    %37 = vector.load %arg1[%c0_21, %c0_22, %c0_23] : memref<1x16x4xf32, #tpu.memory_space<vmem>>, vector<1x16x4xf32>
    %38 = vector.shape_cast %37 : vector<1x16x4xf32> to vector<16x4xf32>
    %cst_24 = arith.constant dense<0.000000e+00> : vector<4xf32>
    %39 = vector.multi_reduction <add>, %38, %cst_24 [0] : vector<16x4xf32> to vector<4xf32>
    %40 = vector.shape_cast %39 : vector<4xf32> to vector<1x4xf32>
    %cst_25 = arith.constant 1.600000e+01 : f32
    %41 = vector.broadcast %cst_25 : f32 to vector<1x4xf32>
    %42 = arith.divf %40, %41 : vector<1x4xf32>
    %43 = vector.broadcast %42 : vector<1x4xf32> to vector<16x4xf32>
    %44 = arith.subf %38, %43 : vector<16x4xf32>
    %45 = arith.mulf %44, %44 : vector<16x4xf32>
    %cst_26 = arith.constant dense<0.000000e+00> : vector<4xf32>
    %46 = vector.multi_reduction <add>, %45, %cst_26 [0] : vector<16x4xf32> to vector<4xf32>
    %47 = vector.shape_cast %46 : vector<4xf32> to vector<1x4xf32>
    %cst_27 = arith.constant 1.600000e+01 : f32
    %48 = vector.broadcast %cst_27 : f32 to vector<1x4xf32>
    %49 = arith.divf %47, %48 : vector<1x4xf32>
    %50 = vector.broadcast %42 : vector<1x4xf32> to vector<16x4xf32>
    %51 = arith.subf %38, %50 : vector<16x4xf32>
    %cst_28 = arith.constant 9.99999974E-6 : f32
    %52 = vector.broadcast %cst_28 : f32 to vector<1x4xf32>
    %53 = arith.addf %49, %52 : vector<1x4xf32>
    %54 = math.rsqrt %53 : vector<1x4xf32>
    %55 = vector.broadcast %54 : vector<1x4xf32> to vector<16x4xf32>
    %56 = arith.mulf %51, %55 : vector<16x4xf32>
    %cst_29 = arith.constant 1.000000e+00 : f32
    %57 = vector.broadcast %cst_29 : f32 to vector<16x4xf32>
    %58 = arith.addf %57, %35 : vector<16x4xf32>
    %59 = arith.mulf %56, %58 : vector<16x4xf32>
    %60 = arith.addf %59, %36 : vector<16x4xf32>
    %61 = arith.truncf %60 : vector<16x4xf32> to vector<16x4xbf16>
    %c0_30 = arith.constant 0 : index
    %c0_31 = arith.constant 0 : index
    %c0_32 = arith.constant 0 : index
    %62 = vector.load %arg7[%c0_30, %c0_31, %c0_32] : memref<1x4x6xbf16, #tpu.memory_space<vmem>>, vector<1x4x6xbf16>
    %63 = vector.shape_cast %62 : vector<1x4x6xbf16> to vector<4x6xbf16>
    %cst_33 = arith.constant dense<0.000000e+00> : vector<16x6xf32>
    %64 = tpu.matmul %61, %63, %cst_33 {dimension_numbers = #tpu.dot_dimension_numbers<[1], [0], [0], [1], [0, 0, 1, 1], [], []>} : vector<16x4xbf16>, vector<4x6xbf16>, vector<16x6xf32> -> vector<16x6xf32>
    %c0_34 = arith.constant 0 : index
    %c0_35 = arith.constant 0 : index
    %65 = vector.load %arg8[%c0_34, %c0_35] : memref<1x6xf32, #tpu.memory_space<vmem>>, vector<1x6xf32>
    %66 = vector.broadcast %65 : vector<1x6xf32> to vector<16x6xf32>
    %67 = arith.addf %64, %66 : vector<16x6xf32>
    %c0_36 = arith.constant 0 : index
    %c0_37 = arith.constant 0 : index
    %c0_38 = arith.constant 0 : index
    %68 = vector.load %arg9[%c0_36, %c0_37, %c0_38] : memref<1x16x6xf32, #tpu.memory_space<vmem>>, vector<1x16x6xf32>
    %69 = vector.shape_cast %68 : vector<1x16x6xf32> to vector<16x6xf32>
    %70 = vector.shape_cast %67 : vector<16x6xf32> to vector<1x16x6xf32>
    tpu.vector_store %arg9[%c0_36, %c0_37, %c0_38], %70 {strides = array<i32>} : memref<1x16x6xf32, #tpu.memory_space<vmem>>, vector<1x16x6xf32>,
    return
  }
  func.func @transform_0(%arg0: i32) -> (i32, i32, i32) {
    %c0_i32 = arith.constant 0 : i32
    %c0_i32_0 = arith.constant 0 : i32
    %c0_i32_1 = arith.constant 0 : i32
    return %arg0, %c0_i32, %c0_i32_0 : i32, i32, i32
  }
  func.func @transform_1(%arg0: i32) -> (i32, i32, i32) {
    %c0_i32 = arith.constant 0 : i32
    %c0_i32_0 = arith.constant 0 : i32
    %c0_i32_1 = arith.constant 0 : i32
    return %arg0, %c0_i32, %c0_i32_0 : i32, i32, i32
  }
  func.func @transform_2(%arg0: i32) -> (i32, i32) {
    %c0_i32 = arith.constant 0 : i32
    %c0_i32_0 = arith.constant 0 : i32
    %c0_i32_1 = arith.constant 0 : i32
    return %c0_i32, %c0_i32_0 : i32, i32
  }
  func.func @transform_3(%arg0: i32) -> (i32, i32) {
    %c0_i32 = arith.constant 0 : i32
    %c0_i32_0 = arith.constant 0 : i32
    %c0_i32_1 = arith.constant 0 : i32
    return %c0_i32, %c0_i32_0 : i32, i32
  }
  func.func @transform_4(%arg0: i32) -> (i32, i32, i32) {
    %c0_i32 = arith.constant 0 : i32
    %c0_i32_0 = arith.constant 0 : i32
    %c0_i32_1 = arith.constant 0 : i32
    %c0_i32_2 = arith.constant 0 : i32
    return %c0_i32, %c0_i32_0, %c0_i32_1 : i32, i32, i32
  }
  func.func @transform_5(%arg0: i32) -> (i32, i32) {
    %c0_i32 = arith.constant 0 : i32
    %c0_i32_0 = arith.constant 0 : i32
    %c0_i32_1 = arith.constant 0 : i32
    return %c0_i32, %c0_i32_0 : i32, i32
  }
  func.func @transform_6(%arg0: i32) -> (i32, i32, i32) {
    %c0_i32 = arith.constant 0 : i32
    %c0_i32_0 = arith.constant 0 : i32
    %c0_i32_1 = arith.constant 0 : i32
    %c0_i32_2 = arith.constant 0 : i32
    return %c0_i32, %c0_i32_0, %c0_i32_1 : i32, i32, i32
  }
  func.func @transform_7(%arg0: i32) -> (i32, i32) {
    %c0_i32 = arith.constant 0 : i32
    %c0_i32_0 = arith.constant 0 : i32
    %c0_i32_1 = arith.constant 0 : i32
    return %c0_i32, %c0_i32_0 : i32, i32
  }
  func.func @transform_8(%arg0: i32) -> (i32, i32, i32) {
    %c0_i32 = arith.constant 0 : i32
    %c0_i32_0 = arith.constant 0 : i32
    %c0_i32_1 = arith.constant 0 : i32
    return %arg0, %c0_i32, %c0_i32_0 : i32, i32, i32
  }
}

module attributes {stable_mosaic.version = 11 : i64} {
  func.func @_spade_conv_kernel(%arg0: i32, %arg1: memref<1x16x4xf32, #tpu.memory_space<vmem>>, %arg2: memref<1x18x3xf32, #tpu.memory_space<vmem>>, %arg3: memref<9x512xbf16, #tpu.memory_space<vmem>>, %arg4: memref<1x512xf32, #tpu.memory_space<vmem>>, %arg5: memref<3x512x8xbf16, #tpu.memory_space<vmem>>, %arg6: memref<1x8xf32, #tpu.memory_space<vmem>>, %arg7: memref<3x4x6xbf16, #tpu.memory_space<vmem>>, %arg8: memref<1x6xf32, #tpu.memory_space<vmem>>, %arg9: memref<1x16x6xf32, #tpu.memory_space<vmem>>, %arg10: memref<1x16x6xf32, #tpu.memory_space<vmem>>) attributes {dimension_semantics = [#tpu.dimension_semantics<parallel>], iteration_bounds = array<i64: 2>, scalar_prefetch = 0 : i64, scratch_operands = 0 : i64, tpu.core_type = #tpu.core_type<tc>, window_params = [{transform_indices = @transform_0, window_bounds = array<i64: 1, 16, 4>}, {transform_indices = @transform_1, window_bounds = array<i64: 1, 18, 3>}, {pipeline_mode = #tpu.pipeline_mode<synchronous>, transform_indices = @transform_2, window_bounds = array<i64: 9, 512>}, {pipeline_mode = #tpu.pipeline_mode<synchronous>, transform_indices = @transform_3, window_bounds = array<i64: 1, 512>}, {pipeline_mode = #tpu.pipeline_mode<synchronous>, transform_indices = @transform_4, window_bounds = array<i64: 3, 512, 8>}, {pipeline_mode = #tpu.pipeline_mode<synchronous>, transform_indices = @transform_5, window_bounds = array<i64: 1, 8>}, {pipeline_mode = #tpu.pipeline_mode<synchronous>, transform_indices = @transform_6, window_bounds = array<i64: 3, 4, 6>}, {pipeline_mode = #tpu.pipeline_mode<synchronous>, transform_indices = @transform_7, window_bounds = array<i64: 1, 6>}, {transform_indices = @transform_8, window_bounds = array<i64: 1, 16, 6>}, {transform_indices = @transform_9, window_bounds = array<i64: 1, 16, 6>}]} {
    %c0 = arith.constant 0 : index
    %c0_0 = arith.constant 0 : index
    %c0_1 = arith.constant 0 : index
    %0 = vector.load %arg2[%c0, %c0_0, %c0_1] : memref<1x18x3xf32, #tpu.memory_space<vmem>>, vector<1x18x3xf32>
    %1 = vector.shape_cast %0 : vector<1x18x3xf32> to vector<18x3xf32>
    %2 = vector.extract_strided_slice %1 {offsets = [0, 0], sizes = [16, 3], strides = [1, 1]} : vector<18x3xf32> to vector<16x3xf32>
    %3 = vector.extract_strided_slice %1 {offsets = [1, 0], sizes = [16, 3], strides = [1, 1]} : vector<18x3xf32> to vector<16x3xf32>
    %4 = vector.extract_strided_slice %1 {offsets = [2, 0], sizes = [16, 3], strides = [1, 1]} : vector<18x3xf32> to vector<16x3xf32>
    %5 = tpu.concatenate %2, %3, %4 in 1 : vector<16x3xf32>, vector<16x3xf32>, vector<16x3xf32> -> vector<16x9xf32>
    %6 = arith.truncf %5 : vector<16x9xf32> to vector<16x9xbf16>
    %c0_2 = arith.constant 0 : index
    %c0_3 = arith.constant 0 : index
    %7 = vector.load %arg3[%c0_2, %c0_3] : memref<9x512xbf16, #tpu.memory_space<vmem>>, vector<9x512xbf16>
    %cst = arith.constant dense<0.000000e+00> : vector<16x512xf32>
    %8 = tpu.matmul %6, %7, %cst {dimension_numbers = #tpu.dot_dimension_numbers<[1], [0], [0], [1], [0, 0, 1, 1], [], []>} : vector<16x9xbf16>, vector<9x512xbf16>, vector<16x512xf32> -> vector<16x512xf32>
    %c0_4 = arith.constant 0 : index
    %c0_5 = arith.constant 0 : index
    %9 = vector.load %arg4[%c0_4, %c0_5] : memref<1x512xf32, #tpu.memory_space<vmem>>, vector<1x512xf32>
    %10 = vector.broadcast %9 : vector<1x512xf32> to vector<16x512xf32>
    %11 = arith.addf %8, %10 : vector<16x512xf32>
    %cst_6 = arith.constant 0.000000e+00 : f32
    %12 = vector.broadcast %cst_6 : f32 to vector<16x512xf32>
    %13 = arith.maximumf %11, %12 : vector<16x512xf32>
    %14 = arith.truncf %13 : vector<16x512xf32> to vector<16x512xbf16>
    %c0_7 = arith.constant 0 : index
    %c0_8 = arith.constant 0 : index
    %c0_9 = arith.constant 0 : index
    %15 = vector.load %arg5[%c0_7, %c0_8, %c0_9] : memref<3x512x8xbf16, #tpu.memory_space<vmem>>, vector<1x512x8xbf16>
    %16 = vector.shape_cast %15 : vector<1x512x8xbf16> to vector<512x8xbf16>
    %cst_10 = arith.constant dense<0.000000e+00> : vector<16x8xf32>
    %17 = tpu.matmul %14, %16, %cst_10 {dimension_numbers = #tpu.dot_dimension_numbers<[1], [0], [0], [1], [0, 0, 1, 1], [], []>} : vector<16x512xbf16>, vector<512x8xbf16>, vector<16x8xf32> -> vector<16x8xf32>
    %cst_11 = arith.constant 0.000000e+00 : f32
    %18 = vector.broadcast %cst_11 : f32 to vector<1x8xf32>
    %19 = vector.extract_strided_slice %17 {offsets = [0, 0], sizes = [15, 8], strides = [1, 1]} : vector<16x8xf32> to vector<15x8xf32>
    %20 = tpu.concatenate %18, %19 in 0 : vector<1x8xf32>, vector<15x8xf32> -> vector<16x8xf32>
    %c1 = arith.constant 1 : index
    %c0_12 = arith.constant 0 : index
    %c0_13 = arith.constant 0 : index
    %21 = vector.load %arg5[%c1, %c0_12, %c0_13] : memref<3x512x8xbf16, #tpu.memory_space<vmem>>, vector<1x512x8xbf16>
    %22 = vector.shape_cast %21 : vector<1x512x8xbf16> to vector<512x8xbf16>
    %cst_14 = arith.constant dense<0.000000e+00> : vector<16x8xf32>
    %23 = tpu.matmul %14, %22, %cst_14 {dimension_numbers = #tpu.dot_dimension_numbers<[1], [0], [0], [1], [0, 0, 1, 1], [], []>} : vector<16x512xbf16>, vector<512x8xbf16>, vector<16x8xf32> -> vector<16x8xf32>
    %24 = arith.addf %20, %23 : vector<16x8xf32>
    %c2 = arith.constant 2 : index
    %c0_15 = arith.constant 0 : index
    %c0_16 = arith.constant 0 : index
    %25 = vector.load %arg5[%c2, %c0_15, %c0_16] : memref<3x512x8xbf16, #tpu.memory_space<vmem>>, vector<1x512x8xbf16>
    %26 = vector.shape_cast %25 : vector<1x512x8xbf16> to vector<512x8xbf16>
    %cst_17 = arith.constant dense<0.000000e+00> : vector<16x8xf32>
    %27 = tpu.matmul %14, %26, %cst_17 {dimension_numbers = #tpu.dot_dimension_numbers<[1], [0], [0], [1], [0, 0, 1, 1], [], []>} : vector<16x512xbf16>, vector<512x8xbf16>, vector<16x8xf32> -> vector<16x8xf32>
    %cst_18 = arith.constant 0.000000e+00 : f32
    %28 = vector.broadcast %cst_18 : f32 to vector<1x8xf32>
    %29 = vector.extract_strided_slice %27 {offsets = [1, 0], sizes = [15, 8], strides = [1, 1]} : vector<16x8xf32> to vector<15x8xf32>
    %30 = tpu.concatenate %29, %28 in 0 : vector<15x8xf32>, vector<1x8xf32> -> vector<16x8xf32>
    %31 = arith.addf %24, %30 : vector<16x8xf32>
    %c0_19 = arith.constant 0 : index
    %c0_20 = arith.constant 0 : index
    %32 = vector.load %arg6[%c0_19, %c0_20] : memref<1x8xf32, #tpu.memory_space<vmem>>, vector<1x8xf32>
    %33 = vector.broadcast %32 : vector<1x8xf32> to vector<16x8xf32>
    %34 = arith.addf %31, %33 : vector<16x8xf32>
    %35 = vector.extract_strided_slice %34 {offsets = [0, 0], sizes = [16, 4], strides = [1, 1]} : vector<16x8xf32> to vector<16x4xf32>
    %36 = vector.extract_strided_slice %34 {offsets = [0, 4], sizes = [16, 4], strides = [1, 1]} : vector<16x8xf32> to vector<16x4xf32>
    %c0_21 = arith.constant 0 : index
    %c0_22 = arith.constant 0 : index
    %c0_23 = arith.constant 0 : index
    %37 = vector.load %arg1[%c0_21, %c0_22, %c0_23] : memref<1x16x4xf32, #tpu.memory_space<vmem>>, vector<1x16x4xf32>
    %38 = vector.shape_cast %37 : vector<1x16x4xf32> to vector<16x4xf32>
    %cst_24 = arith.constant dense<0.000000e+00> : vector<4xf32>
    %39 = vector.multi_reduction <add>, %38, %cst_24 [0] : vector<16x4xf32> to vector<4xf32>
    %40 = vector.shape_cast %39 : vector<4xf32> to vector<1x4xf32>
    %cst_25 = arith.constant 1.600000e+01 : f32
    %41 = vector.broadcast %cst_25 : f32 to vector<1x4xf32>
    %42 = arith.divf %40, %41 : vector<1x4xf32>
    %43 = vector.broadcast %42 : vector<1x4xf32> to vector<16x4xf32>
    %44 = arith.subf %38, %43 : vector<16x4xf32>
    %45 = arith.mulf %44, %44 : vector<16x4xf32>
    %cst_26 = arith.constant dense<0.000000e+00> : vector<4xf32>
    %46 = vector.multi_reduction <add>, %45, %cst_26 [0] : vector<16x4xf32> to vector<4xf32>
    %47 = vector.shape_cast %46 : vector<4xf32> to vector<1x4xf32>
    %cst_27 = arith.constant 1.600000e+01 : f32
    %48 = vector.broadcast %cst_27 : f32 to vector<1x4xf32>
    %49 = arith.divf %47, %48 : vector<1x4xf32>
    %50 = vector.broadcast %42 : vector<1x4xf32> to vector<16x4xf32>
    %51 = arith.subf %38, %50 : vector<16x4xf32>
    %cst_28 = arith.constant 9.99999974E-6 : f32
    %52 = vector.broadcast %cst_28 : f32 to vector<1x4xf32>
    %53 = arith.addf %49, %52 : vector<1x4xf32>
    %54 = math.rsqrt %53 : vector<1x4xf32>
    %55 = vector.broadcast %54 : vector<1x4xf32> to vector<16x4xf32>
    %56 = arith.mulf %51, %55 : vector<16x4xf32>
    %cst_29 = arith.constant 1.000000e+00 : f32
    %57 = vector.broadcast %cst_29 : f32 to vector<16x4xf32>
    %58 = arith.addf %57, %35 : vector<16x4xf32>
    %59 = arith.mulf %56, %58 : vector<16x4xf32>
    %60 = arith.addf %59, %36 : vector<16x4xf32>
    %cst_30 = arith.constant 0.000000e+00 : f32
    %61 = vector.broadcast %cst_30 : f32 to vector<16x4xf32>
    %62 = arith.cmpf oge, %60, %61 : vector<16x4xf32>
    %cst_31 = arith.constant 2.000000e-01 : f32
    %63 = vector.broadcast %cst_31 : f32 to vector<16x4xf32>
    %64 = arith.mulf %63, %60 : vector<16x4xf32>
    %65 = arith.select %62, %60, %64 : vector<16x4xi1>, vector<16x4xf32>
    %66 = arith.truncf %65 : vector<16x4xf32> to vector<16x4xbf16>
    %c0_32 = arith.constant 0 : index
    %c0_33 = arith.constant 0 : index
    %c0_34 = arith.constant 0 : index
    %67 = vector.load %arg7[%c0_32, %c0_33, %c0_34] : memref<3x4x6xbf16, #tpu.memory_space<vmem>>, vector<1x4x6xbf16>
    %68 = vector.shape_cast %67 : vector<1x4x6xbf16> to vector<4x6xbf16>
    %cst_35 = arith.constant dense<0.000000e+00> : vector<16x6xf32>
    %69 = tpu.matmul %66, %68, %cst_35 {dimension_numbers = #tpu.dot_dimension_numbers<[1], [0], [0], [1], [0, 0, 1, 1], [], []>} : vector<16x4xbf16>, vector<4x6xbf16>, vector<16x6xf32> -> vector<16x6xf32>
    %cst_36 = arith.constant 0.000000e+00 : f32
    %70 = vector.broadcast %cst_36 : f32 to vector<1x6xf32>
    %71 = vector.extract_strided_slice %69 {offsets = [0, 0], sizes = [15, 6], strides = [1, 1]} : vector<16x6xf32> to vector<15x6xf32>
    %72 = tpu.concatenate %70, %71 in 0 : vector<1x6xf32>, vector<15x6xf32> -> vector<16x6xf32>
    %c1_37 = arith.constant 1 : index
    %c0_38 = arith.constant 0 : index
    %c0_39 = arith.constant 0 : index
    %73 = vector.load %arg7[%c1_37, %c0_38, %c0_39] : memref<3x4x6xbf16, #tpu.memory_space<vmem>>, vector<1x4x6xbf16>
    %74 = vector.shape_cast %73 : vector<1x4x6xbf16> to vector<4x6xbf16>
    %cst_40 = arith.constant dense<0.000000e+00> : vector<16x6xf32>
    %75 = tpu.matmul %66, %74, %cst_40 {dimension_numbers = #tpu.dot_dimension_numbers<[1], [0], [0], [1], [0, 0, 1, 1], [], []>} : vector<16x4xbf16>, vector<4x6xbf16>, vector<16x6xf32> -> vector<16x6xf32>
    %76 = arith.addf %72, %75 : vector<16x6xf32>
    %c2_41 = arith.constant 2 : index
    %c0_42 = arith.constant 0 : index
    %c0_43 = arith.constant 0 : index
    %77 = vector.load %arg7[%c2_41, %c0_42, %c0_43] : memref<3x4x6xbf16, #tpu.memory_space<vmem>>, vector<1x4x6xbf16>
    %78 = vector.shape_cast %77 : vector<1x4x6xbf16> to vector<4x6xbf16>
    %cst_44 = arith.constant dense<0.000000e+00> : vector<16x6xf32>
    %79 = tpu.matmul %66, %78, %cst_44 {dimension_numbers = #tpu.dot_dimension_numbers<[1], [0], [0], [1], [0, 0, 1, 1], [], []>} : vector<16x4xbf16>, vector<4x6xbf16>, vector<16x6xf32> -> vector<16x6xf32>
    %cst_45 = arith.constant 0.000000e+00 : f32
    %80 = vector.broadcast %cst_45 : f32 to vector<1x6xf32>
    %81 = vector.extract_strided_slice %79 {offsets = [1, 0], sizes = [15, 6], strides = [1, 1]} : vector<16x6xf32> to vector<15x6xf32>
    %82 = tpu.concatenate %81, %80 in 0 : vector<15x6xf32>, vector<1x6xf32> -> vector<16x6xf32>
    %83 = arith.addf %76, %82 : vector<16x6xf32>
    %c0_46 = arith.constant 0 : index
    %c0_47 = arith.constant 0 : index
    %84 = vector.load %arg8[%c0_46, %c0_47] : memref<1x6xf32, #tpu.memory_space<vmem>>, vector<1x6xf32>
    %85 = vector.broadcast %84 : vector<1x6xf32> to vector<16x6xf32>
    %86 = arith.addf %83, %85 : vector<16x6xf32>
    %c0_48 = arith.constant 0 : index
    %c0_49 = arith.constant 0 : index
    %c0_50 = arith.constant 0 : index
    %87 = vector.load %arg9[%c0_48, %c0_49, %c0_50] : memref<1x16x6xf32, #tpu.memory_space<vmem>>, vector<1x16x6xf32>
    %88 = vector.shape_cast %87 : vector<1x16x6xf32> to vector<16x6xf32>
    %89 = arith.addf %86, %88 : vector<16x6xf32>
    %c0_51 = arith.constant 0 : index
    %c0_52 = arith.constant 0 : index
    %c0_53 = arith.constant 0 : index
    %90 = vector.load %arg10[%c0_51, %c0_52, %c0_53] : memref<1x16x6xf32, #tpu.memory_space<vmem>>, vector<1x16x6xf32>
    %91 = vector.shape_cast %90 : vector<1x16x6xf32> to vector<16x6xf32>
    %92 = vector.shape_cast %89 : vector<16x6xf32> to vector<1x16x6xf32>
    tpu.vector_store %arg10[%c0_51, %c0_52, %c0_53], %92 {strides = array<i32>} : memref<1x16x6xf32, #tpu.memory_space<vmem>>, vector<1x16x6xf32>,
    return
  }
  func.func @transform_0(%arg0: i32) -> (i32, i32, i32) {
    %c0_i32 = arith.constant 0 : i32
    %c0_i32_0 = arith.constant 0 : i32
    %c0_i32_1 = arith.constant 0 : i32
    return %arg0, %c0_i32, %c0_i32_0 : i32, i32, i32
  }
  func.func @transform_1(%arg0: i32) -> (i32, i32, i32) {
    %c0_i32 = arith.constant 0 : i32
    %c0_i32_0 = arith.constant 0 : i32
    %c0_i32_1 = arith.constant 0 : i32
    return %arg0, %c0_i32, %c0_i32_0 : i32, i32, i32
  }
  func.func @transform_2(%arg0: i32) -> (i32, i32) {
    %c0_i32 = arith.constant 0 : i32
    %c0_i32_0 = arith.constant 0 : i32
    %c0_i32_1 = arith.constant 0 : i32
    return %c0_i32, %c0_i32_0 : i32, i32
  }
  func.func @transform_3(%arg0: i32) -> (i32, i32) {
    %c0_i32 = arith.constant 0 : i32
    %c0_i32_0 = arith.constant 0 : i32
    %c0_i32_1 = arith.constant 0 : i32
    return %c0_i32, %c0_i32_0 : i32, i32
  }
  func.func @transform_4(%arg0: i32) -> (i32, i32, i32) {
    %c0_i32 = arith.constant 0 : i32
    %c0_i32_0 = arith.constant 0 : i32
    %c0_i32_1 = arith.constant 0 : i32
    %c0_i32_2 = arith.constant 0 : i32
    return %c0_i32, %c0_i32_0, %c0_i32_1 : i32, i32, i32
  }
  func.func @transform_5(%arg0: i32) -> (i32, i32) {
    %c0_i32 = arith.constant 0 : i32
    %c0_i32_0 = arith.constant 0 : i32
    %c0_i32_1 = arith.constant 0 : i32
    return %c0_i32, %c0_i32_0 : i32, i32
  }
  func.func @transform_6(%arg0: i32) -> (i32, i32, i32) {
    %c0_i32 = arith.constant 0 : i32
    %c0_i32_0 = arith.constant 0 : i32
    %c0_i32_1 = arith.constant 0 : i32
    %c0_i32_2 = arith.constant 0 : i32
    return %c0_i32, %c0_i32_0, %c0_i32_1 : i32, i32, i32
  }
  func.func @transform_7(%arg0: i32) -> (i32, i32) {
    %c0_i32 = arith.constant 0 : i32
    %c0_i32_0 = arith.constant 0 : i32
    %c0_i32_1 = arith.constant 0 : i32
    return %c0_i32, %c0_i32_0 : i32, i32
  }
  func.func @transform_8(%arg0: i32) -> (i32, i32, i32) {
    %c0_i32 = arith.constant 0 : i32
    %c0_i32_0 = arith.constant 0 : i32
    %c0_i32_1 = arith.constant 0 : i32
    return %arg0, %c0_i32, %c0_i32_0 : i32, i32, i32
  }
  func.func @transform_9(%arg0: i32) -> (i32, i32, i32) {
    %c0_i32 = arith.constant 0 : i32
    %c0_i32_0 = arith.constant 0 : i32
    %c0_i32_1 = arith.constant 0 : i32
    return %arg0, %c0_i32, %c0_i32_0 : i32, i32, i32
  }
}

</mosaic_0001>

<bundles_post_ra>
// kernel: spade_resnet_block.5
= control target key start
LH: loop header
LB: loop body
LE: loop exit
PB: predicated region body
PF: predicated region fallthrough
CT: control target
= control target key end

     0   :  { %s2480_s30 = smov 0   ;;  %s2896_s0 = inlined_call_operand.vmem [shape: f32[2,16,4], index: 0, kind: input, shape index: {}]   ;;  %s2897_s1 = inlined_call_operand.vmem [shape: f32[2,18,3], index: 1, kind: input, shape index: {}]   ;;  %s2898_s2 = inlined_call_operand.vmem [shape: bf16[9,512], index: 2, kind: input, shape index: {}]   ;;  %s2899_s3 = inlined_call_operand.vmem [shape: f32[1,512], index: 3, kind: input, shape index: {}]   ;;  %s2900_s4 = inlined_call_operand.vmem [shape: bf16[3,512,8], index: 4, kind: input, shape index: {}]   ;;  %s2901_s5 = inlined_call_operand.vmem [shape: f32[1,8], index: 5, kind: input, shape index: {}]   ;;  %s2902_s6 = inlined_call_operand.vmem [shape: bf16[3,4,6], index: 6, kind: input, shape index: {}]   ;;  %s2903_s7 = inlined_call_operand.vmem [shape: f32[1,6], index: 7, kind: input, shape index: {}]   ;;  %s2904_s8 = inlined_call_operand.vmem [shape: f32[2,16,6], index: 8, kind: input, shape index: {}]   ;;  %s2905_s9 = inlined_call_operand.vmem [shape: f32[2,16,6], index: 9, kind: output, shape index: {}]  }
   0x1 LB: > { %s1733_s10 = sadd.s32 4294967295, %s2423_s30   ;;  %p1737_p0 = scmp.ge.s32.totalorder %s2423_s30, 1  ;;  %s2423_s30 = sphi %s2480_s30, %s19_s30  }
   0x2   : > { %p307_p1 = scmp.lt.s32.totalorder %s2423_s30, 3 }
   0x4   : > { %p308_p2 = pnand %p1737_p0, %p307_p1 }
   0x5   : > { %p353_p3 = scmp.lt.s32.totalorder (!%p308_p2), %s1733_s10, 1  ;;  %s2425_s15 = smov (!%p308_p2), 3  }
   0x6   : > { %311 = sbr.rel (%p308_p2) target bundleno = 761 (0x2f9), region = 56  ;;  %s2426_s16 = smov (!%p308_p2), 6  }
   0xb   : > { %s2907_s10 = smov (!%p353_p3, %s1733_s10), 1  ;;  %vm380_vm0 = vcmask 1046528   ;;  %vm392_vm1 = vcmask 1045504   ;;  %v1747_v15 = vld [vmem:[%s2898_s2] sm:$0xf]  ;;  %vm445_vm2 = vcmask 1043456  }
   0xc   : > { %s2387_s11 = smul.u32 24, %s2907_s10  ;;  %v2289_v16 = vld [vmem:[%s2898_s2 + $0xc] sm:$0x10]  ;;  %vm446_vm3 = vcmask 1044480   ;;  %v2427_v18 = vmov 65535   ;;  %v2298_v34 = vld [vmem:[%s2900_s4 + $0x38] sm:$0xff] }
   0xd   : > { %v1748_v17 = vor.u32 %v2289_v16, %v1747_v15  ;;  %v447_v19 = vsel %vm445_vm2, 4294967295, %v2427_v18  ;;  %v2287_v20 = vld [vmem:[%s2898_s2 + $0x4] sm:$0xf]  ;;  %v1749_v21 = vld [vmem:[%s2898_s2 + $0x10] sm:$0x10]  ;;  %v2306_v35 = vld [vmem:[%s2900_s4 + $0x78] sm:$0xff] }
   0xe   : > { %s362_s14 = scalar_lea.vmem %s2897_s1, %s2387_s11  ;;  %v448_v22 = vsel %vm446_vm3, %v447_v19, 0  ;;  %v1752_v23 = vor.u32 %v2287_v20, %v1749_v21  ;;  %v1755_v24 = vld [vmem:[%s2898_s2 + $0x8] sm:$0xf]  ;;  %v2290_v25 = vld [vmem:[%s2898_s2 + $0x14] sm:$0x10]  ;;  %v2297_v38 = vld [vmem:[%s2900_s4 + $0x30] sm:$0xff] }
   0xf   : > { %v2494_v0 = vld [vmem:[%s362_s14] sm:$0xff]  ;;  %v2496_v1 = vld [vmem:[%s362_s14 + $0x8] sm:$0xff]  ;;  %v376_v2 = vld [vmem:[%s362_s14 + $0x10] sm:$0x3]  ;;  %v450_v26 = vand.u32 %v1748_v17, %v448_v22  ;;  %v1756_v27 = vor.u32 %v2290_v25, %v1755_v24  ;;  %vm404_vm4 = vcmask 23552   ;;  %vm407_vm5 = vcmask 48128  }
  0x10   : > { %v381_v3 = vrot.slane %v2494_v0, 1  ;;  %v382_v4 = vrot.slane %v2496_v1, 1  ;;  %v384_v5 = vrot.slane %v376_v2, 1  ;;  %v396_v6 = vrot.slane %v376_v2, 2  ;;  %v2288_v28 = vld [vmem:[%s2898_s2 + $0xc] sm:$0xf] }
  0x11   : > { %v393_v9 = vrot.slane %v2494_v0, 2  ;;  %v394_v10 = vrot.slane %v2496_v1, 2  ;;  %v1757_v29 = vld [vmem:[%s2898_s2 + $0x18] sm:$0x10]  ;;  %v453_v30 = vand.u32 %v1752_v23, %v448_v22  ;;  %468 = vmatpush.bf16.msra.mxu0 %v450_v26  ;;  %v456_v32 = vand.u32 %v1756_v27, %v448_v22  ;;  %v2305_v39 = vld [vmem:[%s2900_s4 + $0x70] sm:$0xff]  ;;  %v2296_v42 = vld [vmem:[%s2900_s4 + $0x28] sm:$0xff] }
  0x12   : > { %v383_v7 = vsel %vm380_vm0, %v381_v3, %v382_v4  ;;  %v385_v8 = vsel %vm380_vm0, %v382_v4, %v384_v5  ;;  %v1760_v31 = vor.u32 %v2288_v28, %v1757_v29  ;;  %v2314_v36 = vld [vmem:[%s2900_s4 + $0xb8] sm:$0xff]  ;;  %v2313_v40 = vld [vmem:[%s2900_s4 + $0xb0] sm:$0xff]  ;;  %v2304_v43 = vld [vmem:[%s2900_s4 + $0x68] sm:$0xff]  ;;  %vm441_vm6 = vcmask 72704   ;;  %s2848_s20 = sshll.u32 %s2907_s10, 4  ;;  %s2428_s10 = smov 124  }
  0x13   : > { %v2401_v11 = vpack.i.bf16 %v385_v8, %v383_v7  ;;  %v395_v12 = vsel %vm392_vm1, %v393_v9, %v394_v10  ;;  %v397_v13 = vsel %vm392_vm1, %v394_v10, %v396_v6  ;;  %482 = vmatpush.bf16.msra.mxu1 %v453_v30  ;;  %496 = vmatpush.bf16.msra.mxu2 %v456_v32  ;;  %v2322_v37 = vld [vmem:[%s2900_s4 + $0xf8] sm:$0xff]  ;;  %v2321_v41 = vld [vmem:[%s2900_s4 + $0xf0] sm:$0xff]  ;;  %v2312_v44 = vld [vmem:[%s2900_s4 + $0xa8] sm:$0xff]  ;;  %vm1566_vm7 = vcmask 1041408   ;;  %s357_s23 = scalar_lea.vmem %s2896_s0, %s2848_s20  ;;  %s367_s13 = scalar_lea.vmem %s2904_s8, %s2848_s20 }
  0x14   : > { %v2406_v14 = vpack.i.bf16 %v397_v13, %v395_v12  ;;  %v459_v33 = vand.u32 %v1760_v31, %v448_v22  ;;  %v2320_v45 = vld [vmem:[%s2900_s4 + $0xe8] sm:$0xff]  ;;  %v2295_v46 = vld [vmem:[%s2900_s4 + $0x20] sm:$0xff]  ;;  %v2294_v50 = vld [vmem:[%s2900_s4 + $0x18] sm:$0xff]  ;;  %vm843_vm8 = vcmask 1040384   ;;  %vm1496_vm9 = vcmask 31744   ;;  %s372_s18 = scalar_lea.vmem %s2905_s9, %s2848_s20 }
  0x15   : > { %2402 = vrot.lane.b32.xlu0 %v2401_v11, %s2425_s15  ;;  %785 = vmatpush.bf16.msrb.mxu0 %v2298_v34  ;;  %v2303_v47 = vld [vmem:[%s2900_s4 + $0x60] sm:$0xff]  ;;  %v2302_v51 = vld [vmem:[%s2900_s4 + $0x58] sm:$0xff]  ;;  %v2293_v55 = vld [vmem:[%s2900_s4 + $0x10] sm:$0xff] }
  0x16   : > { %510 = vmatpush.bf16.msra.mxu3 %v459_v33  ;;  %v2311_v48 = vld [vmem:[%s2900_s4 + $0xa0] sm:$0xff]  ;;  %v2310_v52 = vld [vmem:[%s2900_s4 + $0x98] sm:$0xff]  ;;  %v2301_v56 = vld [vmem:[%s2900_s4 + $0x50] sm:$0xff] }
  0x17   : > { %799 = vmatpush.bf16.msrb.mxu1 %v2306_v35  ;;  %813 = vmatpush.bf16.msrb.mxu2 %v2314_v36  ;;  %v2319_v49 = vld [vmem:[%s2900_s4 + $0xe0] sm:$0xff]  ;;  %v2318_v53 = vld [vmem:[%s2900_s4 + $0xd8] sm:$0xff]  ;;  %v2309_v57 = vld [vmem:[%s2900_s4 + $0x90] sm:$0xff] }
  0x18   : > { %v2317_v58 = vld [vmem:[%s2900_s4 + $0xd0] sm:$0xff]  ;;  %v2292_v59 = vld [vmem:[%s2900_s4 + $0x8] sm:$0xff]  ;;  %v2291_v6 = vld [vmem:[%s2900_s4] sm:$0xff] }
  0x19   : > { %786 = vmatpush.bf16.msrb.mxu0 %v2297_v38  ;;  %v2300_v60 = vld [vmem:[%s2900_s4 + $0x48] sm:$0xff]  ;;  %v2299_v7 = vld [vmem:[%s2900_s4 + $0x40] sm:$0xff]  ;;  %v2330_v13 = vld [vmem:[%s2900_s4 + $0x138] sm:$0xff] }
  0x1a   : > { %827 = vmatpush.bf16.msrb.mxu3 %v2322_v37  ;;  %v2308_v63 = vld [vmem:[%s2900_s4 + $0x88] sm:$0xff]  ;;  %v2346_v15 = vld [vmem:[%s2900_s4 + $0x1b8] sm:$0xff]  ;;  %v2329_v17 = vld [vmem:[%s2900_s4 + $0x130] sm:$0xff] }
  0x1b   : > { %800 = vmatpush.bf16.msrb.mxu1 %v2305_v39  ;;  %814 = vmatpush.bf16.msrb.mxu2 %v2313_v40  ;;  %v2316_v2 = vld [vmem:[%s2900_s4 + $0xc8] sm:$0xff]  ;;  %v2354_v16 = vld [vmem:[%s2900_s4 + $0x1f8] sm:$0xff]  ;;  %v2337_v18 = vld [vmem:[%s2900_s4 + $0x170] sm:$0xff] }
  0x1c   : > { %v2345_v19 = vld [vmem:[%s2900_s4 + $0x1b0] sm:$0xff]  ;;  %v2328_v21 = vld [vmem:[%s2900_s4 + $0x128] sm:$0xff]  ;;  %v2327_v23 = vld [vmem:[%s2900_s4 + $0x120] sm:$0xff] }
  0x1d   : > { %2407 = vrot.lane.b32.xlu0 %v2406_v14, %s2426_s16  ;;  %787 = vmatpush.bf16.msrb.mxu0 %v2296_v42  ;;  %v2338_v14 = vld [vmem:[%s2900_s4 + $0x178] sm:$0xff]  ;;  %v2353_v20 = vld [vmem:[%s2900_s4 + $0x1f0] sm:$0xff]  ;;  %v2336_v22 = vld [vmem:[%s2900_s4 + $0x168] sm:$0xff] }
  0x1e   : > { %828 = vmatpush.bf16.msrb.mxu3 %v2321_v41  ;;  %v2335_v24 = vld [vmem:[%s2900_s4 + $0x160] sm:$0xff]  ;;  %v2344_v25 = vld [vmem:[%s2900_s4 + $0x1a8] sm:$0xff]  ;;  %v2326_v27 = vld [vmem:[%s2900_s4 + $0x118] sm:$0xff] }
  0x1f   : > { %801 = vmatpush.bf16.msrb.mxu1 %v2304_v43  ;;  %815 = vmatpush.bf16.msrb.mxu2 %v2312_v44  ;;  %v2352_v26 = vld [vmem:[%s2900_s4 + $0x1e8] sm:$0xff]  ;;  %v2334_v28 = vld [vmem:[%s2900_s4 + $0x158] sm:$0xff]  ;;  %v2343_v29 = vld [vmem:[%s2900_s4 + $0x1a0] sm:$0xff] }
  0x20   : > { %v2351_v30 = vld [vmem:[%s2900_s4 + $0x1e0] sm:$0xff]  ;;  %v2325_v31 = vld [vmem:[%s2900_s4 + $0x110] sm:$0xff]  ;;  %v2342_v33 = vld [vmem:[%s2900_s4 + $0x198] sm:$0xff] }
  0x21   : > { %788 = vmatpush.bf16.msrb.mxu0 %v2295_v46  ;;  %v2333_v32 = vld [vmem:[%s2900_s4 + $0x150] sm:$0xff]  ;;  %v2350_v34 = vld [vmem:[%s2900_s4 + $0x1d8] sm:$0xff]  ;;  %v2324_v35 = vld [vmem:[%s2900_s4 + $0x108] sm:$0xff] }
  0x22   : > { %829 = vmatpush.bf16.msrb.mxu3 %v2320_v45  ;;  %v2332_v36 = vld [vmem:[%s2900_s4 + $0x148] sm:$0xff]  ;;  %v2341_v37 = vld [vmem:[%s2900_s4 + $0x190] sm:$0xff]  ;;  %v2323_v39 = vld [vmem:[%s2900_s4 + $0x100] sm:$0xff] }
  0x23   : > { %802 = vmatpush.bf16.msrb.mxu1 %v2303_v47  ;;  %816 = vmatpush.bf16.msrb.mxu2 %v2311_v48  ;;  %v2349_v38 = vld [vmem:[%s2900_s4 + $0x1d0] sm:$0xff]  ;;  %v2331_v40 = vld [vmem:[%s2900_s4 + $0x140] sm:$0xff]  ;;  %v2340_v41 = vld [vmem:[%s2900_s4 + $0x188] sm:$0xff] }
  0x24   : > { %v2348_v42 = vld [vmem:[%s2900_s4 + $0x1c8] sm:$0xff]  ;;  %v2339_v43 = vld [vmem:[%s2900_s4 + $0x180] sm:$0xff] }
  0x25   : > { %789 = vmatpush.bf16.msrb.mxu0 %v2294_v50  ;;  %v2347_v44 = vld [vmem:[%s2900_s4 + $0x1c0] sm:$0xff] }
  0x26   : > { %830 = vmatpush.bf16.msrb.mxu3 %v2319_v49  ;;  %v415_v45 = vld [vmem:[%s2899_s3] sm:$0xf] }
  0x27   : > { %803 = vmatpush.bf16.msrb.mxu1 %v2302_v51  ;;  %817 = vmatpush.bf16.msrb.mxu2 %v2310_v52  ;;  %v417_v48 = vperm.slane %v415_v45, 0  ;;  %v418_v49 = vperm.slane %v415_v45, 1 }
  0x29   : > { %790 = vmatpush.bf16.msrb.mxu0 %v2293_v55 }
  0x2a   : > { %831 = vmatpush.bf16.msrb.mxu3 %v2318_v53 }
  0x2b   : > { %804 = vmatpush.bf16.msrb.mxu1 %v2301_v56  ;;  %818 = vmatpush.bf16.msrb.mxu2 %v2309_v57 }
  0x2d   : > { %791 = vmatpush.bf16.msrb.mxu0 %v2292_v59  ;;  %v420_v59 = vperm.slane %v415_v45, 3 }
  0x2e   : > { %832 = vmatpush.bf16.msrb.mxu3 %v2317_v58  ;;  %v419_v58 = vperm.slane %v415_v45, 2  ;;  %v2379_v45 = vld [vmem:[%s2900_s4 + $0x2c0] sm:$0xff] }
  0x2f   : > { %805 = vmatpush.bf16.msrb.mxu1 %v2300_v60  ;;  %819 = vmatpush.bf16.msrb.mxu2 %v2308_v63 }
  0x31   : > { %792 = vmatpush.bf16.msrb.mxu0 %v2291_v6 }
  0x32   : > { %833 = vmatpush.bf16.msrb.mxu3 %v2316_v2  ;;  %v2362_v2 = vld [vmem:[%s2900_s4 + $0x238] sm:$0xff] }
  0x33   : > { %806 = vmatpush.bf16.msrb.mxu1 %v2299_v7 }
  0x87   : > { %v2403_v54 = vpop.permute.xlu0 %2402 }
  0x88   : > { %v2405_v61 = vunpack.i.h.bf16 %v2403_v54  ;;  %v2404_v62 = vunpack.i.l.bf16 %v2403_v54 }
  0x8a   : > { %v406_v8 = vsel %vm404_vm4, %v2496_v1, %v2405_v61  ;;  %v405_v9 = vsel %vm404_vm4, %v2494_v0, %v2404_v62  ;;  %v2307_v0 = vld [vmem:[%s2900_s4 + $0x80] sm:$0xff] }
  0x8b   : > { %v2315_v1 = vld [vmem:[%s2900_s4 + $0xc0] sm:$0xff]  ;;  %820 = vmatpush.bf16.msrb.mxu2 %v2307_v0 }
  0x8c   : > { %834 = vmatpush.bf16.msrb.mxu3 %v2315_v1 }
  0x8f   : > { %v2408_v3 = vpop.permute.xlu0 %2407 }
  0x90   : > { %v2410_v4 = vunpack.i.h.bf16 %v2408_v3  ;;  %v2409_v5 = vunpack.i.l.bf16 %v2408_v3  ;;  %v2370_v3 = vld [vmem:[%s2900_s4 + $0x278] sm:$0xff] }
  0x92   : > { %v408_v10 = vsel %vm407_vm5, %v405_v9, %v2409_v5  ;;  %v409_v11 = vsel %vm407_vm5, %v406_v8, %v2410_v4 }
  0x93   : > { %v410_v12 = vpack.c.bf16 %v409_v11, %v408_v10 }
  0x95   : > { %1761 = vmatmul.msk.bf16.vlgmr.msra.gmra.mxu0 %vm441_vm6, %v410_v12  ;;  %1762 = vmatmul.msk.bf16.vlgmr.msra.gmra.mxu1 %vm441_vm6, %v410_v12 }
  0x96   : > { %1763 = vmatmul.msk.bf16.vlgmr.msra.gmra.mxu2 %vm441_vm6, %v410_v12  ;;  %1764 = vmatmul.msk.bf16.vlgmr.msra.gmra.mxu3 %vm441_vm6, %v410_v12  ;;  %v2361_v12 = vld [vmem:[%s2900_s4 + $0x230] sm:$0xff] }
  0x97   : > { %1107 = vmatpush.bf16.msra.mxu0 %v2330_v13  ;;  %1121 = vmatpush.bf16.msra.mxu1 %v2338_v14  ;;  %v2369_v13 = vld [vmem:[%s2900_s4 + $0x270] sm:$0xff] }
  0x98   : > { %1135 = vmatpush.bf16.msra.mxu2 %v2346_v15  ;;  %1149 = vmatpush.bf16.msra.mxu3 %v2354_v16  ;;  %v2378_v16 = vld [vmem:[%s2900_s4 + $0x2b8] sm:$0xff] }
  0x9b   : > { %1108 = vmatpush.bf16.msra.mxu0 %v2329_v17  ;;  %1122 = vmatpush.bf16.msra.mxu1 %v2337_v18  ;;  %v2386_v17 = vld [vmem:[%s2900_s4 + $0x2f8] sm:$0xff] }
  0x9c   : > { %1136 = vmatpush.bf16.msra.mxu2 %v2345_v19  ;;  %1150 = vmatpush.bf16.msra.mxu3 %v2353_v20  ;;  %v2360_v20 = vld [vmem:[%s2900_s4 + $0x228] sm:$0xff] }
  0x9f   : > { %1109 = vmatpush.bf16.msra.mxu0 %v2328_v21  ;;  %1123 = vmatpush.bf16.msra.mxu1 %v2336_v22  ;;  %v2368_v21 = vld [vmem:[%s2900_s4 + $0x268] sm:$0xff]  ;;  %v2377_v22 = vld [vmem:[%s2900_s4 + $0x2b0] sm:$0xff] }
  0xa0   : > { %1137 = vmatpush.bf16.msra.mxu2 %v2344_v25  ;;  %1151 = vmatpush.bf16.msra.mxu3 %v2352_v26  ;;  %v2367_v25 = vld [vmem:[%s2900_s4 + $0x260] sm:$0xff]  ;;  %v2376_v26 = vld [vmem:[%s2900_s4 + $0x2a8] sm:$0xff] }
  0xa3   : > { %1110 = vmatpush.bf16.msra.mxu0 %v2327_v23  ;;  %1124 = vmatpush.bf16.msra.mxu1 %v2335_v24  ;;  %v2385_v23 = vld [vmem:[%s2900_s4 + $0x2f0] sm:$0xff]  ;;  %v2359_v24 = vld [vmem:[%s2900_s4 + $0x220] sm:$0xff] }
  0xa4   : > { %1138 = vmatpush.bf16.msra.mxu2 %v2343_v29  ;;  %1152 = vmatpush.bf16.msra.mxu3 %v2351_v30  ;;  %v2366_v29 = vld [vmem:[%s2900_s4 + $0x258] sm:$0xff]  ;;  %v2375_v30 = vld [vmem:[%s2900_s4 + $0x2a0] sm:$0xff] }
  0xa7   : > { %1111 = vmatpush.bf16.msra.mxu0 %v2326_v27  ;;  %1125 = vmatpush.bf16.msra.mxu1 %v2334_v28  ;;  %v2384_v27 = vld [vmem:[%s2900_s4 + $0x2e8] sm:$0xff]  ;;  %v2358_v28 = vld [vmem:[%s2900_s4 + $0x218] sm:$0xff] }
  0xa8   : > { %1139 = vmatpush.bf16.msra.mxu2 %v2342_v33  ;;  %1153 = vmatpush.bf16.msra.mxu3 %v2350_v34  ;;  %v2365_v33 = vld [vmem:[%s2900_s4 + $0x250] sm:$0xff]  ;;  %v2374_v34 = vld [vmem:[%s2900_s4 + $0x298] sm:$0xff] }
  0xab   : > { %1112 = vmatpush.bf16.msra.mxu0 %v2325_v31  ;;  %1126 = vmatpush.bf16.msra.mxu1 %v2333_v32  ;;  %v2383_v31 = vld [vmem:[%s2900_s4 + $0x2e0] sm:$0xff]  ;;  %v2357_v32 = vld [vmem:[%s2900_s4 + $0x210] sm:$0xff] }
  0xac   : > { %1140 = vmatpush.bf16.msra.mxu2 %v2341_v37  ;;  %1154 = vmatpush.bf16.msra.mxu3 %v2349_v38  ;;  %v2364_v37 = vld [vmem:[%s2900_s4 + $0x248] sm:$0xff]  ;;  %v2373_v38 = vld [vmem:[%s2900_s4 + $0x290] sm:$0xff] }
  0xaf   : > { %1113 = vmatpush.bf16.msra.mxu0 %v2324_v35  ;;  %1127 = vmatpush.bf16.msra.mxu1 %v2332_v36  ;;  %v2382_v35 = vld [vmem:[%s2900_s4 + $0x2d8] sm:$0xff]  ;;  %v2356_v36 = vld [vmem:[%s2900_s4 + $0x208] sm:$0xff] }
  0xb0   : > { %1141 = vmatpush.bf16.msra.mxu2 %v2340_v41  ;;  %1155 = vmatpush.bf16.msra.mxu3 %v2348_v42  ;;  %v2363_v41 = vld [vmem:[%s2900_s4 + $0x240] sm:$0xff]  ;;  %v2372_v42 = vld [vmem:[%s2900_s4 + $0x288] sm:$0xff] }
  0xb3   : > { %1114 = vmatpush.bf16.msra.mxu0 %v2323_v39  ;;  %1128 = vmatpush.bf16.msra.mxu1 %v2331_v40  ;;  %v2381_v39 = vld [vmem:[%s2900_s4 + $0x2d0] sm:$0xff]  ;;  %v2355_v40 = vld [vmem:[%s2900_s4 + $0x200] sm:$0xff] }
  0xb4   : > { %1142 = vmatpush.bf16.msra.mxu2 %v2339_v43  ;;  %1156 = vmatpush.bf16.msra.mxu3 %v2347_v44  ;;  %v2380_v43 = vld [vmem:[%s2900_s4 + $0x2c8] sm:$0xff]  ;;  %v2371_v44 = vld [vmem:[%s2900_s4 + $0x280] sm:$0xff] }
 0x112   : > { %v470_v46 = vpop.f32.mrf.mxu0  ;;  %v484_v47 = vpop.f32.mrf.mxu1 }
 0x113   : > { %v471_v50 = vadd.f32 %v470_v46, %v417_v48  ;;  %v485_v51 = vadd.f32 %v484_v47, %v418_v49 }
 0x115   : > { %v517_v60 = vmax.f32 %v471_v50, 0.0  ;;  %v518_v61 = vmax.f32 %v485_v51, 0.0 }
 0x119   : > { %v498_v52 = vpop.f32.mrf.mxu2  ;;  %v512_v53 = vpop.f32.mrf.mxu3 }
 0x11a   : > { %v472_v54 = vpop.f32.mrf.mxu0  ;;  %v486_v55 = vpop.f32.mrf.mxu1  ;;  %v499_v6 = vadd.f32 %v498_v52, %v419_v58  ;;  %v513_v7 = vadd.f32 %v512_v53, %v420_v59 }
 0x11b   : > { %v473_v56 = vadd.f32 %v472_v54, %v417_v48  ;;  %v487_v57 = vadd.f32 %v486_v55, %v418_v49 }
 0x11c   : > { %v519_v14 = vmax.f32 %v499_v6, 0.0  ;;  %v520_v0 = vmax.f32 %v513_v7, 0.0 }
 0x11d   : > { %v521_v62 = vmax.f32 %v473_v56, 0.0  ;;  %v522_v63 = vmax.f32 %v487_v57, 0.0 }
 0x11f   : > { %v2733_v4 = vpack.c.bf16 %v521_v62, %v517_v60  ;;  %v2735_v5 = vpack.c.bf16 %v522_v63, %v518_v61 }
 0x121   : > { %v500_v8 = vpop.f32.mrf.mxu2  ;;  %v514_v9 = vpop.f32.mrf.mxu3  ;;  %793 = vmatmul.bf16.vlgmr.msrb.gmra.mxu0 %v2733_v4  ;;  %807 = vmatmul.bf16.vlgmr.msrb.gmra.mxu1 %v2735_v5 }
 0x122   : > { %v501_v10 = vadd.f32 %v500_v8, %v419_v58  ;;  %v515_v11 = vadd.f32 %v514_v9, %v420_v59  ;;  %1422 = vmatpush.bf16.msrb.mxu0 %v2362_v2  ;;  %1436 = vmatpush.bf16.msrb.mxu1 %v2370_v3  ;;  %v2280_v2 = vld [vmem:[%s2902_s6 + $0x4] sm:$0x3] }
 0x123   : > { %v1616_v3 = vsel %vm1566_vm7, %v2280_v2, 0 }
 0x124   : > { %v523_v1 = vmax.f32 %v501_v10, 0.0  ;;  %v524_v15 = vmax.f32 %v515_v11, 0.0 }
 0x126   : > { %v2751_v18 = vpack.c.bf16 %v523_v1, %v519_v14  ;;  %v2753_v19 = vpack.c.bf16 %v524_v15, %v520_v0  ;;  %1423 = vmatpush.bf16.msrb.mxu0 %v2361_v12  ;;  %1437 = vmatpush.bf16.msrb.mxu1 %v2369_v13 }
 0x128   : > { %821 = vmatmul.bf16.vlgmr.msrb.gmra.mxu2 %v2751_v18  ;;  %835 = vmatmul.bf16.vlgmr.msrb.gmra.mxu3 %v2753_v19 }
 0x129   : > { %1450 = vmatpush.bf16.msrb.mxu2 %v2378_v16  ;;  %1464 = vmatpush.bf16.msrb.mxu3 %v2386_v17 }
 0x12a   : > { %1424 = vmatpush.bf16.msrb.mxu0 %v2360_v20  ;;  %1438 = vmatpush.bf16.msrb.mxu1 %v2368_v21 }
 0x12d   : > { %1451 = vmatpush.bf16.msrb.mxu2 %v2377_v22  ;;  %1465 = vmatpush.bf16.msrb.mxu3 %v2385_v23 }
 0x12e   : > { %1425 = vmatpush.bf16.msrb.mxu0 %v2359_v24  ;;  %1439 = vmatpush.bf16.msrb.mxu1 %v2367_v25 }
 0x131   : > { %1452 = vmatpush.bf16.msrb.mxu2 %v2376_v26  ;;  %1466 = vmatpush.bf16.msrb.mxu3 %v2384_v27 }
 0x132   : > { %1115 = vmatmul.bf16.vlgmr.msra.gmra.mxu0 %v2733_v4  ;;  %1129 = vmatmul.bf16.vlgmr.msra.gmra.mxu1 %v2735_v5 }
 0x133   : > { %1426 = vmatpush.bf16.msrb.mxu0 %v2358_v28  ;;  %1440 = vmatpush.bf16.msrb.mxu1 %v2366_v29 }
 0x135   : > { %1453 = vmatpush.bf16.msrb.mxu2 %v2375_v30  ;;  %1467 = vmatpush.bf16.msrb.mxu3 %v2383_v31  ;;  %v2411_v30 = vld [vmem:[%s2901_s5] ss:$0 sm:$0xff] }
 0x137   : > { %1427 = vmatpush.bf16.msrb.mxu0 %v2357_v32  ;;  %1441 = vmatpush.bf16.msrb.mxu1 %v2365_v33 }
 0x138   : > { %1143 = vmatmul.bf16.vlgmr.msra.gmra.mxu2 %v2751_v18  ;;  %1157 = vmatmul.bf16.vlgmr.msra.gmra.mxu3 %v2753_v19 }
 0x139   : > { %1454 = vmatpush.bf16.msrb.mxu2 %v2374_v34  ;;  %1468 = vmatpush.bf16.msrb.mxu3 %v2382_v35  ;;  %v1494_v35 = vld [vmem:[%s357_s23] sm:$0xff] }
 0x13b   : > { %1428 = vmatpush.bf16.msrb.mxu0 %v2356_v36  ;;  %1442 = vmatpush.bf16.msrb.mxu1 %v2364_v37  ;;  %v1495_v36 = vld [vmem:[%s357_s23 + $0x8] sm:$0xff] }
 0x13d   : > { %1455 = vmatpush.bf16.msrb.mxu2 %v2373_v38  ;;  %1469 = vmatpush.bf16.msrb.mxu3 %v2381_v39 }
 0x13f   : > { %1429 = vmatpush.bf16.msrb.mxu0 %v2355_v40  ;;  %1443 = vmatpush.bf16.msrb.mxu1 %v2363_v41  ;;  %v1497_v40 = vsel %vm1496_vm9, %v1494_v35, 0.0  ;;  %v1498_v41 = vsel %vm1496_vm9, %v1495_v36, 0.0 }
 0x141   : > { %1456 = vmatpush.bf16.msrb.mxu2 %v2372_v42  ;;  %1470 = vmatpush.bf16.msrb.mxu3 %v2380_v43 }
 0x142   : > { %1430 = vmatmul.bf16.vlgmr.msrb.gmra.mxu0 %v2733_v4  ;;  %1444 = vmatmul.bf16.vlgmr.msrb.gmra.mxu1 %v2735_v5 }
 0x145   : > { %1457 = vmatpush.bf16.msrb.mxu2 %v2371_v44  ;;  %1471 = vmatpush.bf16.msrb.mxu3 %v2379_v45  ;;  %v2429_v44 = vmov 16.0   ;;  %v1499_v45 = vadd.f32 %v1498_v41, %v1497_v40 }
 0x146   : > { %2413 = vrcp.f32 %v2429_v44 }
 0x148   : > { %1458 = vmatmul.bf16.vlgmr.msrb.gmra.mxu2 %v2751_v18  ;;  %1472 = vmatmul.bf16.vlgmr.msrb.gmra.mxu3 %v2753_v19 }
 0x149   : > { %1625 = vmatpush.bf16.msra.mxu2 %v1616_v3 }
 0x19e   : > { %v794_v46 = vpop.f32.mrf.mxu0  ;;  %v808_v47 = vpop.f32.mrf.mxu1 }
 0x19f   : > { %v809_v4 = vadd.f32 %v808_v47, %v794_v46  ;;  %v1500_v47 = vrot.slane %v1499_v45, 4 }
 0x1a6   : > { %v796_v48 = vpop.f32.mrf.mxu0  ;;  %v810_v49 = vpop.f32.mrf.mxu1 }
 0x1a7   : > { %v811_v12 = vadd.f32 %v810_v49, %v796_v48  ;;  %v2414_v48 = vpop.eup %2413  ;;  %v1501_v49 = vadd.f32 %v1500_v47, %v1499_v45 }
 0x1a8   : > { %vm1511_vm10 = vweird.f32 %v2414_v48 }
 0x1ab   : > { %v822_v50 = vpop.f32.mrf.mxu2  ;;  %v836_v51 = vpop.f32.mrf.mxu3 }
 0x1ac   : > { %v823_v7 = vadd.f32 %v822_v50, %v809_v4  ;;  %v1507_v50 = vmul.f32 16.0, %v2414_v48 }
 0x1ae   : > { %v837_v13 = vadd.f32 %v836_v51, %v823_v7  ;;  %v1502_v51 = vrot.slane %v1501_v49, 2 }
 0x1af   : > { %v1116_v52 = vpop.f32.mrf.mxu0  ;;  %v1130_v53 = vpop.f32.mrf.mxu1 }
 0x1b0   : > { %v1131_v9 = vadd.f32 %v1130_v53, %v1116_v52  ;;  %v844_v17 = vrot.slane %v837_v13, 7  ;;  %v1508_v52 = vsub.f32 1.0, %v1507_v50  ;;  %v1503_v53 = vadd.f32 %v1502_v51, %v1501_v49  ;;  %v2412_v51 = vld [vmem:[%s2903_s7] ss:$0 sm:$0xff] }
 0x1b2   : > { %v849_v26 = vsel %vm843_vm8, 0.0, %v844_v17 }
 0x1b3   : > { %v824_v54 = vpop.f32.mrf.mxu2  ;;  %v838_v55 = vpop.f32.mrf.mxu3 }
 0x1b4   : > { %v825_v1 = vadd.f32 %v824_v54, %v811_v12  ;;  %v1509_v54 = vmul.f32 %v2414_v48, %v1508_v52 }
 0x1b6   : > { %v839_v23 = vadd.f32 %v838_v55, %v825_v1  ;;  %v1504_v55 = vrot.slane %v1503_v53, 1 }
 0x1b7   : > { %v1118_v56 = vpop.f32.mrf.mxu0  ;;  %v1132_v57 = vpop.f32.mrf.mxu1 }
 0x1b8   : > { %v1133_v20 = vadd.f32 %v1132_v57, %v1118_v56  ;;  %v845_v31 = vrot.slane %v839_v23, 7  ;;  %v1510_v56 = vadd.f32 %v2414_v48, %v1509_v54  ;;  %v1505_v57 = vadd.f32 %v1504_v55, %v1503_v53 }
 0x1ba   : > { %v846_v38 = vsel %vm843_vm8, %v844_v17, %v845_v31 }
 0x1bb   : > { %v1144_v58 = vpop.f32.mrf.mxu2  ;;  %v1158_v59 = vpop.f32.mrf.mxu3 }
 0x1bc   : > { %v1145_v0 = vadd.f32 %v1144_v58, %v1131_v9  ;;  %v1512_v58 = vsel %vm1511_vm10, %v2414_v48, %v1510_v56  ;;  %v1648_v56 = vld [vmem:[%s367_s13] sm:$0xff] }
 0x1be   : > { %v1159_v21 = vadd.f32 %v1158_v59, %v1145_v0  ;;  %v1513_v59 = vmul.f32 %v1512_v58, %v1505_v57  ;;  %v2278_v0 = vld [vmem:[%s2902_s6 + $0x2] sm:$0x3]  ;;  %v1649_v57 = vld [vmem:[%s367_s13 + $0x8] sm:$0xff] }
 0x1bf   : > { %v1431_v62 = vpop.f32.mrf.mxu0  ;;  %v1445_v63 = vpop.f32.mrf.mxu1 }
 0x1c0   : > { %v1446_v8 = vadd.f32 %v1445_v63, %v1431_v62  ;;  %v1163_v29 = vadd.f32 %v1159_v21, %v849_v26 }
 0x1c3   : > { %v1146_v60 = vpop.f32.mrf.mxu2  ;;  %v1160_v61 = vpop.f32.mrf.mxu3 }
 0x1c4   : > { %v1147_v25 = vadd.f32 %v1146_v60, %v1133_v20  ;;  %v1514_v60 = vsub.f32 %v1494_v35, %v1513_v59 }
 0x1c6   : > { %v1161_v33 = vadd.f32 %v1160_v61, %v1147_v25  ;;  %v1515_v61 = vsub.f32 %v1495_v36, %v1513_v59  ;;  %v1516_v62 = vmul.f32 %v1514_v60, %v1514_v60 }
 0x1c7   : > { %v1433_v10 = vpop.f32.mrf.mxu0  ;;  %v1447_v11 = vpop.f32.mrf.mxu1 }
 0x1c8   : > { %v1448_v15 = vadd.f32 %v1447_v11, %v1433_v10  ;;  %v1164_v42 = vadd.f32 %v1161_v33, %v846_v38  ;;  %v1517_v63 = vmul.f32 %v1515_v61, %v1515_v61  ;;  %v1518_v2 = vsel %vm1496_vm9, %v1516_v62, 0.0 }
 0x1ca   : > { %v1519_v3 = vsel %vm1496_vm9, %v1517_v63, 0.0 }
 0x1cb   : > { %v1459_v5 = vpop.f32.mrf.mxu2  ;;  %v1473_v6 = vpop.f32.mrf.mxu3  ;;  %v1520_v4 = vadd.f32 %v1519_v3, %v1518_v2 }
 0x1cc   : > { %v1460_v14 = vadd.f32 %v1459_v5, %v1446_v8 }
 0x1cd   : > { %v1521_v5 = vrot.slane %v1520_v4, 4 }
 0x1ce   : > { %v1474_v18 = vadd.f32 %v1473_v6, %v1460_v14  ;;  %v1562_v14 = vld [vmem:[%s2902_s6] sm:$0x3] }
 0x1cf   : > { %v1522_v6 = vadd.f32 %v1521_v5, %v1520_v4  ;;  %v1568_v1 = vsel %vm1566_vm7, %v1562_v14, 0 }
 0x1d0   : > { %v1480_v27 = vrot.slane %v1474_v18, 1  ;;  %1577 = vmatpush.bf16.msra.mxu0 %v1568_v1 }
 0x1d1   : > { %v1523_v7 = vrot.slane %v1522_v6, 2 }
 0x1d3   : > { %v1461_v16 = vpop.f32.mrf.mxu2  ;;  %v1475_v22 = vpop.f32.mrf.mxu3  ;;  %v1524_v8 = vadd.f32 %v1523_v7, %v1522_v6 }
 0x1d4   : > { %v1462_v19 = vadd.f32 %v1461_v16, %v1448_v15  ;;  %v1595_v15 = vsel %vm1566_vm7, %v2278_v0, 0 }
 0x1d5   : > { %v1525_v9 = vrot.slane %v1524_v8, 1  ;;  %1604 = vmatpush.bf16.msra.mxu1 %v1595_v15 }
 0x1d6   : > { %v1476_v24 = vadd.f32 %v1475_v22, %v1462_v19 }
 0x1d7   : > { %v1526_v10 = vadd.f32 %v1525_v9, %v1524_v8 }
 0x1d8   : > { %v1481_v28 = vrot.slane %v1476_v24, 1 }
 0x1d9   : > { %v1527_v11 = vmul.f32 %v1526_v10, %v1512_v58 }
 0x1da   : > { %v1482_v32 = vsel %vm380_vm0, %v1480_v27, %v1481_v28  ;;  %v1485_v39 = vsel %vm380_vm0, %v1481_v28, 0.0 }
 0x1db   : > { %v1486_v34 = vadd.f32 %v1482_v32, %v1163_v29  ;;  %v1487_v43 = vadd.f32 %v1485_v39, %v1164_v42  ;;  %v1528_v12 = vadd.f32 1e-05, %v1527_v11 }
 0x1dd   : > { %v1492_v37 = vadd.f32 %v2411_v30, %v1486_v34  ;;  %v1493_v46 = vadd.f32 %v2411_v30, %v1487_v43  ;;  %2415 = vrsqrt.f32 %v1528_v12  ;;  %vm1535_vm11 = vweird.f32 %v1528_v12 }
 0x1df   : > { %1547 = vrot.lane.b32.xlu1 %v1492_v37, %s2428_s10  ;;  %v1541_v22 = vadd.f32 1.0, %v1492_v37  ;;  %v1542_v27 = vadd.f32 1.0, %v1493_v46 }
 0x1e3   : > { %v2416_v13 = vpop.eup %2415 }
 0x1e4   : > { %v1530_v16 = vmul.f32 %v2416_v13, %v1528_v12  ;;  %vm1536_vm12 = vweird.f32 %v2416_v13 }
 0x1e5   : > { %vm1537_vm13 = vmor %vm1535_vm11, %vm1536_vm12 }
 0x1e6   : > { %v1531_v17 = vmul.f32 %v2416_v13, %v1530_v16 }
 0x1e7   : > { %1549 = vrot.lane.b32.xlu1 %v1493_v46, %s2428_s10 }
 0x1e8   : > { %v1532_v18 = vmul.f32 0.5, %v1531_v17 }
 0x1ea   : > { %v1533_v19 = vsub.f32 1.5, %v1532_v18 }
 0x1ec   : > { %v1534_v20 = vmul.f32 %v2416_v13, %v1533_v19 }
 0x1ee   : > { %v1538_v21 = vsel %vm1537_vm13, %v2416_v13, %v1534_v20 }
 0x1ef   : > { %v1539_v23 = vmul.f32 %v1538_v21, %v1514_v60  ;;  %v1540_v26 = vmul.f32 %v1538_v21, %v1515_v61 }
 0x1f1   : > { %v1543_v25 = vmul.f32 %v1541_v22, %v1539_v23  ;;  %v1544_v29 = vmul.f32 %v1542_v27, %v1540_v26 }
 0x251   : > { %v1548_v24 = vpop.permute.xlu1 %1547 }
 0x252   : > { %v1553_v28 = vadd.f32 %v1548_v24, %v1543_v25 }
 0x254   : > { %v1557_v31 = vmul.f32 0.2, %v1553_v28  ;;  %vm1555_vm14 = vcmp.ge.f32.partialorder %v1553_v28, 0.0 }
 0x256   : > { %v1559_v34 = vsel %vm1555_vm14, %v1553_v28, %v1557_v31 }
 0x259   : > { %v1550_v30 = vpop.permute.xlu1 %1549 }
 0x25a   : > { %v1554_v32 = vadd.f32 %v1550_v30, %v1544_v29 }
 0x25c   : > { %vm1556_vm15 = vcmp.ge.f32.partialorder %v1554_v32, 0.0  ;;  %v1558_v33 = vmul.f32 0.2, %v1554_v32 }
 0x25e   : > { %v1560_v35 = vsel %vm1556_vm15, %v1554_v32, %v1558_v33 }
 0x25f   : > { %v1561_v36 = vpack.c.bf16 %v1560_v35, %v1559_v34 }
 0x261   : > { %2277 = vmatmul.msk.bf16.vlgmr.msra.gmra.mxu0 %vm1496_vm9, %v1561_v36  ;;  %2279 = vmatmul.msk.bf16.vlgmr.msra.gmra.mxu1 %vm1496_vm9, %v1561_v36 }
 0x262   : > { %2281 = vmatmul.msk.bf16.vlgmr.msra.gmra.mxu2 %vm1496_vm9, %v1561_v36 }
 0x2de   : > { %v1579_v37 = vpop.f32.mrf.mxu0  ;;  %v1606_v38 = vpop.f32.mrf.mxu1 }
 0x2df   : > { %v1586_v41 = vrot.slane %v1579_v37, 7 }
 0x2e1   : > { %v1591_v43 = vsel %vm843_vm8, 0.0, %v1586_v41 }
 0x2e2   : > { %v1611_v49 = vadd.f32 %v1606_v38, %v1591_v43 }
 0x2e5   : > { %v1627_v39 = vpop.f32.mrf.mxu2 }
 0x2e6   : > { %v1581_v40 = vpop.f32.mrf.mxu0  ;;  %v1634_v46 = vrot.slane %v1627_v39, 1  ;;  %v1608_v47 = vpop.f32.mrf.mxu1 }
 0x2e7   : > { %v1587_v42 = vrot.slane %v1581_v40, 7 }
 0x2e9   : > { %v1588_v44 = vsel %vm843_vm8, %v1586_v41, %v1587_v42 }
 0x2ea   : > { %v1612_v50 = vadd.f32 %v1608_v47, %v1588_v44 }
 0x2ed   : > { %v1629_v45 = vpop.f32.mrf.mxu2 }
 0x2ee   : > { %v1635_v48 = vrot.slane %v1629_v45, 1 }
 0x2f0   : > { %v1636_v52 = vsel %vm380_vm0, %v1634_v46, %v1635_v48  ;;  %v1639_v53 = vsel %vm380_vm0, %v1635_v48, 0.0 }
 0x2f1   : > { %v1640_v54 = vadd.f32 %v1636_v52, %v1611_v49  ;;  %v1641_v55 = vadd.f32 %v1639_v53, %v1612_v50 }
 0x2f3   : > { %v1646_v58 = vadd.f32 %v2412_v51, %v1640_v54  ;;  %v1647_v59 = vadd.f32 %v2412_v51, %v1641_v55 }
 0x2f5   : > { %v1650_v60 = vadd.f32 %v1648_v56, %v1646_v58  ;;  %v1651_v61 = vadd.f32 %v1649_v57, %v1647_v59 }
 0x2f7   : > { %1652 = vst.msk [vmem:[%s372_s18] sm:$0xff] %vm407_vm5, %v1650_v60 }
 0x2f8   : > { %1653 = vst.msk [vmem:[%s372_s18 + $0x8] sm:$0xff] %vm407_vm5, %v1651_v61 }
 0x2f9 PF: > { %s19_s30 = sadd.s32 1, %s2423_s30  }
 0x2fa   : > { %p16_p4 = scmp.ge.s32.totalorder %s19_s30, 4  }
 0x2fc   :  { %18 = sbr.rel (!%p16_p4) target bundleno = 1 (0x1), region = 96 }

// kernel: spade_resnet_block.3
= control target key start
LH: loop header
LB: loop body
LE: loop exit
PB: predicated region body
PF: predicated region fallthrough
CT: control target
= control target key end

     0   :  { %s2339_s27 = smov 0   ;;  %s2736_s0 = inlined_call_operand.vmem [shape: f32[2,16,4], index: 0, kind: input, shape index: {}]   ;;  %s2737_s1 = inlined_call_operand.vmem [shape: f32[2,18,3], index: 1, kind: input, shape index: {}]   ;;  %s2738_s2 = inlined_call_operand.vmem [shape: bf16[9,512], index: 2, kind: input, shape index: {}]   ;;  %s2739_s3 = inlined_call_operand.vmem [shape: f32[1,512], index: 3, kind: input, shape index: {}]   ;;  %s2740_s4 = inlined_call_operand.vmem [shape: bf16[3,512,8], index: 4, kind: input, shape index: {}]   ;;  %s2741_s5 = inlined_call_operand.vmem [shape: f32[1,8], index: 5, kind: input, shape index: {}]   ;;  %s2742_s6 = inlined_call_operand.vmem [shape: bf16[1,4,6], index: 6, kind: input, shape index: {}]   ;;  %s2743_s7 = inlined_call_operand.vmem [shape: f32[1,6], index: 7, kind: input, shape index: {}]   ;;  %s2744_s8 = inlined_call_operand.vmem [shape: f32[2,16,6], index: 8, kind: output, shape index: {}]  }
   0x1 LB: > { %s1604_s28 = sadd.s32 4294967295, %s2287_s27   ;;  %p1608_p0 = scmp.ge.s32.totalorder %s2287_s27, 1  ;;  %s2287_s27 = sphi %s2339_s27, %s18_s27  }
   0x2   : > { %p272_p1 = scmp.lt.s32.totalorder %s2287_s27, 3 }
   0x4   : > { %p273_p2 = pnand %p1608_p0, %p272_p1 }
   0x5   : > { %p311_p3 = scmp.lt.s32.totalorder (!%p273_p2), %s1604_s28, 1  ;;  %s2289_s11 = smov (!%p273_p2), 3  }
   0x6   : > { %276 = sbr.rel (%p273_p2) target bundleno = 743 (0x2e7), region = 52  ;;  %s2290_s12 = smov (!%p273_p2), 6  }
   0xb   : > { %s2746_s28 = smov (!%p311_p3, %s1604_s28), 1  ;;  %vm333_vm0 = vcmask 1046528   ;;  %vm345_vm1 = vcmask 1045504   ;;  %v1616_v15 = vld [vmem:[%s2738_s2] sm:$0xf]  ;;  %vm398_vm2 = vcmask 1043456  }
   0xc   : > { %s2251_s29 = smul.u32 24, %s2746_s28  ;;  %v2153_v16 = vld [vmem:[%s2738_s2 + $0xc] sm:$0x10]  ;;  %vm399_vm3 = vcmask 1044480   ;;  %v2291_v18 = vmov 65535   ;;  %v2162_v34 = vld [vmem:[%s2740_s4 + $0x38] sm:$0xff] }
   0xd   : > { %v1617_v17 = vor.u32 %v2153_v16, %v1616_v15  ;;  %v400_v19 = vsel %vm398_vm2, 4294967295, %v2291_v18  ;;  %v2151_v20 = vld [vmem:[%s2738_s2 + $0x4] sm:$0xf]  ;;  %v1618_v21 = vld [vmem:[%s2738_s2 + $0x10] sm:$0x10]  ;;  %v2170_v35 = vld [vmem:[%s2740_s4 + $0x78] sm:$0xff] }
   0xe   : > { %s320_s10 = scalar_lea.vmem %s2737_s1, %s2251_s29  ;;  %v401_v22 = vsel %vm399_vm3, %v400_v19, 0  ;;  %v1621_v23 = vor.u32 %v2151_v20, %v1618_v21  ;;  %v1624_v24 = vld [vmem:[%s2738_s2 + $0x8] sm:$0xf]  ;;  %v2154_v25 = vld [vmem:[%s2738_s2 + $0x14] sm:$0x10]  ;;  %v2161_v38 = vld [vmem:[%s2740_s4 + $0x30] sm:$0xff] }
   0xf   : > { %v2353_v0 = vld [vmem:[%s320_s10] sm:$0xff]  ;;  %v2355_v1 = vld [vmem:[%s320_s10 + $0x8] sm:$0xff]  ;;  %v329_v2 = vld [vmem:[%s320_s10 + $0x10] sm:$0x3]  ;;  %v403_v26 = vand.u32 %v1617_v17, %v401_v22  ;;  %v1625_v27 = vor.u32 %v2154_v25, %v1624_v24  ;;  %vm357_vm4 = vcmask 23552   ;;  %vm360_vm5 = vcmask 48128  }
  0x10   : > { %v334_v3 = vrot.slane %v2353_v0, 1  ;;  %v335_v4 = vrot.slane %v2355_v1, 1  ;;  %v337_v5 = vrot.slane %v329_v2, 1  ;;  %v349_v6 = vrot.slane %v329_v2, 2  ;;  %v2152_v28 = vld [vmem:[%s2738_s2 + $0xc] sm:$0xf] }
  0x11   : > { %v346_v9 = vrot.slane %v2353_v0, 2  ;;  %v347_v10 = vrot.slane %v2355_v1, 2  ;;  %v1626_v29 = vld [vmem:[%s2738_s2 + $0x18] sm:$0x10]  ;;  %v406_v30 = vand.u32 %v1621_v23, %v401_v22  ;;  %421 = vmatpush.bf16.msra.mxu0 %v403_v26  ;;  %v409_v32 = vand.u32 %v1625_v27, %v401_v22  ;;  %v2169_v39 = vld [vmem:[%s2740_s4 + $0x70] sm:$0xff]  ;;  %v2160_v42 = vld [vmem:[%s2740_s4 + $0x28] sm:$0xff] }
  0x12   : > { %v336_v7 = vsel %vm333_vm0, %v334_v3, %v335_v4  ;;  %v338_v8 = vsel %vm333_vm0, %v335_v4, %v337_v5  ;;  %v1629_v31 = vor.u32 %v2152_v28, %v1626_v29  ;;  %v2178_v36 = vld [vmem:[%s2740_s4 + $0xb8] sm:$0xff]  ;;  %v2177_v40 = vld [vmem:[%s2740_s4 + $0xb0] sm:$0xff]  ;;  %v2168_v43 = vld [vmem:[%s2740_s4 + $0x68] sm:$0xff]  ;;  %vm394_vm6 = vcmask 72704   ;;  %s2149_s29 = sshll.u32 %s2746_s28, 4 }
  0x13   : > { %v2265_v11 = vpack.i.bf16 %v338_v8, %v336_v7  ;;  %v348_v12 = vsel %vm345_vm1, %v346_v9, %v347_v10  ;;  %v350_v13 = vsel %vm345_vm1, %v347_v10, %v349_v6  ;;  %435 = vmatpush.bf16.msra.mxu1 %v406_v30  ;;  %449 = vmatpush.bf16.msra.mxu2 %v409_v32  ;;  %v2186_v37 = vld [vmem:[%s2740_s4 + $0xf8] sm:$0xff]  ;;  %v2185_v41 = vld [vmem:[%s2740_s4 + $0xf0] sm:$0xff]  ;;  %v2176_v44 = vld [vmem:[%s2740_s4 + $0xa8] sm:$0xff]  ;;  %vm1517_vm7 = vcmask 1041408   ;;  %s315_s10 = scalar_lea.vmem %s2736_s0, %s2149_s29  ;;  %s325_s16 = scalar_lea.vmem %s2744_s8, %s2149_s29 }
  0x14   : > { %v2270_v14 = vpack.i.bf16 %v350_v13, %v348_v12  ;;  %v412_v33 = vand.u32 %v1629_v31, %v401_v22  ;;  %v2184_v45 = vld [vmem:[%s2740_s4 + $0xe8] sm:$0xff]  ;;  %v2159_v46 = vld [vmem:[%s2740_s4 + $0x20] sm:$0xff]  ;;  %v2158_v50 = vld [vmem:[%s2740_s4 + $0x18] sm:$0xff]  ;;  %vm796_vm8 = vcmask 1040384   ;;  %vm1449_vm9 = vcmask 31744  }
  0x15   : > { %2266 = vrot.lane.b32.xlu0 %v2265_v11, %s2289_s11  ;;  %738 = vmatpush.bf16.msrb.mxu0 %v2162_v34  ;;  %v2167_v47 = vld [vmem:[%s2740_s4 + $0x60] sm:$0xff]  ;;  %v2166_v51 = vld [vmem:[%s2740_s4 + $0x58] sm:$0xff]  ;;  %v2157_v55 = vld [vmem:[%s2740_s4 + $0x10] sm:$0xff]  ;;  %s2292_s11 = smov 124  }
  0x16   : > { %463 = vmatpush.bf16.msra.mxu3 %v412_v33  ;;  %v2175_v48 = vld [vmem:[%s2740_s4 + $0xa0] sm:$0xff]  ;;  %v2174_v52 = vld [vmem:[%s2740_s4 + $0x98] sm:$0xff]  ;;  %v2165_v56 = vld [vmem:[%s2740_s4 + $0x50] sm:$0xff] }
  0x17   : > { %752 = vmatpush.bf16.msrb.mxu1 %v2170_v35  ;;  %766 = vmatpush.bf16.msrb.mxu2 %v2178_v36  ;;  %v2183_v49 = vld [vmem:[%s2740_s4 + $0xe0] sm:$0xff]  ;;  %v2182_v53 = vld [vmem:[%s2740_s4 + $0xd8] sm:$0xff]  ;;  %v2173_v57 = vld [vmem:[%s2740_s4 + $0x90] sm:$0xff] }
  0x18   : > { %v2181_v58 = vld [vmem:[%s2740_s4 + $0xd0] sm:$0xff]  ;;  %v2156_v59 = vld [vmem:[%s2740_s4 + $0x8] sm:$0xff]  ;;  %v2155_v6 = vld [vmem:[%s2740_s4] sm:$0xff] }
  0x19   : > { %739 = vmatpush.bf16.msrb.mxu0 %v2161_v38  ;;  %v2164_v60 = vld [vmem:[%s2740_s4 + $0x48] sm:$0xff]  ;;  %v2163_v7 = vld [vmem:[%s2740_s4 + $0x40] sm:$0xff]  ;;  %v2194_v13 = vld [vmem:[%s2740_s4 + $0x138] sm:$0xff] }
  0x1a   : > { %780 = vmatpush.bf16.msrb.mxu3 %v2186_v37  ;;  %v2172_v63 = vld [vmem:[%s2740_s4 + $0x88] sm:$0xff]  ;;  %v2210_v15 = vld [vmem:[%s2740_s4 + $0x1b8] sm:$0xff]  ;;  %v2193_v17 = vld [vmem:[%s2740_s4 + $0x130] sm:$0xff] }
  0x1b   : > { %753 = vmatpush.bf16.msrb.mxu1 %v2169_v39  ;;  %767 = vmatpush.bf16.msrb.mxu2 %v2177_v40  ;;  %v2180_v2 = vld [vmem:[%s2740_s4 + $0xc8] sm:$0xff]  ;;  %v2218_v16 = vld [vmem:[%s2740_s4 + $0x1f8] sm:$0xff]  ;;  %v2201_v18 = vld [vmem:[%s2740_s4 + $0x170] sm:$0xff] }
  0x1c   : > { %v2209_v19 = vld [vmem:[%s2740_s4 + $0x1b0] sm:$0xff]  ;;  %v2192_v21 = vld [vmem:[%s2740_s4 + $0x128] sm:$0xff]  ;;  %v2191_v23 = vld [vmem:[%s2740_s4 + $0x120] sm:$0xff] }
  0x1d   : > { %2271 = vrot.lane.b32.xlu0 %v2270_v14, %s2290_s12  ;;  %740 = vmatpush.bf16.msrb.mxu0 %v2160_v42  ;;  %v2202_v14 = vld [vmem:[%s2740_s4 + $0x178] sm:$0xff]  ;;  %v2217_v20 = vld [vmem:[%s2740_s4 + $0x1f0] sm:$0xff]  ;;  %v2200_v22 = vld [vmem:[%s2740_s4 + $0x168] sm:$0xff] }
  0x1e   : > { %781 = vmatpush.bf16.msrb.mxu3 %v2185_v41  ;;  %v2199_v24 = vld [vmem:[%s2740_s4 + $0x160] sm:$0xff]  ;;  %v2208_v25 = vld [vmem:[%s2740_s4 + $0x1a8] sm:$0xff]  ;;  %v2190_v27 = vld [vmem:[%s2740_s4 + $0x118] sm:$0xff] }
  0x1f   : > { %754 = vmatpush.bf16.msrb.mxu1 %v2168_v43  ;;  %768 = vmatpush.bf16.msrb.mxu2 %v2176_v44  ;;  %v2216_v26 = vld [vmem:[%s2740_s4 + $0x1e8] sm:$0xff]  ;;  %v2198_v28 = vld [vmem:[%s2740_s4 + $0x158] sm:$0xff]  ;;  %v2207_v29 = vld [vmem:[%s2740_s4 + $0x1a0] sm:$0xff] }
  0x20   : > { %v2215_v30 = vld [vmem:[%s2740_s4 + $0x1e0] sm:$0xff]  ;;  %v2189_v31 = vld [vmem:[%s2740_s4 + $0x110] sm:$0xff]  ;;  %v2206_v33 = vld [vmem:[%s2740_s4 + $0x198] sm:$0xff] }
  0x21   : > { %741 = vmatpush.bf16.msrb.mxu0 %v2159_v46  ;;  %v2197_v32 = vld [vmem:[%s2740_s4 + $0x150] sm:$0xff]  ;;  %v2214_v34 = vld [vmem:[%s2740_s4 + $0x1d8] sm:$0xff]  ;;  %v2188_v35 = vld [vmem:[%s2740_s4 + $0x108] sm:$0xff] }
  0x22   : > { %782 = vmatpush.bf16.msrb.mxu3 %v2184_v45  ;;  %v2196_v36 = vld [vmem:[%s2740_s4 + $0x148] sm:$0xff]  ;;  %v2205_v37 = vld [vmem:[%s2740_s4 + $0x190] sm:$0xff]  ;;  %v2187_v39 = vld [vmem:[%s2740_s4 + $0x100] sm:$0xff] }
  0x23   : > { %755 = vmatpush.bf16.msrb.mxu1 %v2167_v47  ;;  %769 = vmatpush.bf16.msrb.mxu2 %v2175_v48  ;;  %v2213_v38 = vld [vmem:[%s2740_s4 + $0x1d0] sm:$0xff]  ;;  %v2195_v40 = vld [vmem:[%s2740_s4 + $0x140] sm:$0xff]  ;;  %v2204_v41 = vld [vmem:[%s2740_s4 + $0x188] sm:$0xff] }
  0x24   : > { %v2212_v42 = vld [vmem:[%s2740_s4 + $0x1c8] sm:$0xff]  ;;  %v2203_v43 = vld [vmem:[%s2740_s4 + $0x180] sm:$0xff] }
  0x25   : > { %742 = vmatpush.bf16.msrb.mxu0 %v2158_v50  ;;  %v2211_v44 = vld [vmem:[%s2740_s4 + $0x1c0] sm:$0xff] }
  0x26   : > { %783 = vmatpush.bf16.msrb.mxu3 %v2183_v49  ;;  %v368_v45 = vld [vmem:[%s2739_s3] sm:$0xf] }
  0x27   : > { %756 = vmatpush.bf16.msrb.mxu1 %v2166_v51  ;;  %770 = vmatpush.bf16.msrb.mxu2 %v2174_v52  ;;  %v370_v48 = vperm.slane %v368_v45, 0  ;;  %v371_v49 = vperm.slane %v368_v45, 1 }
  0x29   : > { %743 = vmatpush.bf16.msrb.mxu0 %v2157_v55 }
  0x2a   : > { %784 = vmatpush.bf16.msrb.mxu3 %v2182_v53 }
  0x2b   : > { %757 = vmatpush.bf16.msrb.mxu1 %v2165_v56  ;;  %771 = vmatpush.bf16.msrb.mxu2 %v2173_v57 }
  0x2d   : > { %744 = vmatpush.bf16.msrb.mxu0 %v2156_v59  ;;  %v373_v59 = vperm.slane %v368_v45, 3 }
  0x2e   : > { %785 = vmatpush.bf16.msrb.mxu3 %v2181_v58  ;;  %v372_v58 = vperm.slane %v368_v45, 2  ;;  %v2243_v45 = vld [vmem:[%s2740_s4 + $0x2c0] sm:$0xff] }
  0x2f   : > { %758 = vmatpush.bf16.msrb.mxu1 %v2164_v60  ;;  %772 = vmatpush.bf16.msrb.mxu2 %v2172_v63 }
  0x31   : > { %745 = vmatpush.bf16.msrb.mxu0 %v2155_v6 }
  0x32   : > { %786 = vmatpush.bf16.msrb.mxu3 %v2180_v2  ;;  %v2226_v2 = vld [vmem:[%s2740_s4 + $0x238] sm:$0xff] }
  0x33   : > { %759 = vmatpush.bf16.msrb.mxu1 %v2163_v7 }
  0x87   : > { %v2267_v54 = vpop.permute.xlu0 %2266 }
  0x88   : > { %v2269_v61 = vunpack.i.h.bf16 %v2267_v54  ;;  %v2268_v62 = vunpack.i.l.bf16 %v2267_v54 }
  0x8a   : > { %v359_v8 = vsel %vm357_vm4, %v2355_v1, %v2269_v61  ;;  %v358_v9 = vsel %vm357_vm4, %v2353_v0, %v2268_v62  ;;  %v2171_v0 = vld [vmem:[%s2740_s4 + $0x80] sm:$0xff] }
  0x8b   : > { %v2179_v1 = vld [vmem:[%s2740_s4 + $0xc0] sm:$0xff]  ;;  %773 = vmatpush.bf16.msrb.mxu2 %v2171_v0 }
  0x8c   : > { %787 = vmatpush.bf16.msrb.mxu3 %v2179_v1 }
  0x8f   : > { %v2272_v3 = vpop.permute.xlu0 %2271 }
  0x90   : > { %v2274_v4 = vunpack.i.h.bf16 %v2272_v3  ;;  %v2273_v5 = vunpack.i.l.bf16 %v2272_v3  ;;  %v2234_v3 = vld [vmem:[%s2740_s4 + $0x278] sm:$0xff] }
  0x92   : > { %v361_v10 = vsel %vm360_vm5, %v358_v9, %v2273_v5  ;;  %v362_v11 = vsel %vm360_vm5, %v359_v8, %v2274_v4 }
  0x93   : > { %v363_v12 = vpack.c.bf16 %v362_v11, %v361_v10 }
  0x95   : > { %1630 = vmatmul.msk.bf16.vlgmr.msra.gmra.mxu0 %vm394_vm6, %v363_v12  ;;  %1631 = vmatmul.msk.bf16.vlgmr.msra.gmra.mxu1 %vm394_vm6, %v363_v12 }
  0x96   : > { %1632 = vmatmul.msk.bf16.vlgmr.msra.gmra.mxu2 %vm394_vm6, %v363_v12  ;;  %1633 = vmatmul.msk.bf16.vlgmr.msra.gmra.mxu3 %vm394_vm6, %v363_v12  ;;  %v2225_v12 = vld [vmem:[%s2740_s4 + $0x230] sm:$0xff] }
  0x97   : > { %1060 = vmatpush.bf16.msra.mxu0 %v2194_v13  ;;  %1074 = vmatpush.bf16.msra.mxu1 %v2202_v14  ;;  %v2233_v13 = vld [vmem:[%s2740_s4 + $0x270] sm:$0xff] }
  0x98   : > { %1088 = vmatpush.bf16.msra.mxu2 %v2210_v15  ;;  %1102 = vmatpush.bf16.msra.mxu3 %v2218_v16  ;;  %v2242_v16 = vld [vmem:[%s2740_s4 + $0x2b8] sm:$0xff] }
  0x9b   : > { %1061 = vmatpush.bf16.msra.mxu0 %v2193_v17  ;;  %1075 = vmatpush.bf16.msra.mxu1 %v2201_v18  ;;  %v2250_v17 = vld [vmem:[%s2740_s4 + $0x2f8] sm:$0xff] }
  0x9c   : > { %1089 = vmatpush.bf16.msra.mxu2 %v2209_v19  ;;  %1103 = vmatpush.bf16.msra.mxu3 %v2217_v20  ;;  %v2224_v20 = vld [vmem:[%s2740_s4 + $0x228] sm:$0xff] }
  0x9f   : > { %1062 = vmatpush.bf16.msra.mxu0 %v2192_v21  ;;  %1076 = vmatpush.bf16.msra.mxu1 %v2200_v22  ;;  %v2232_v21 = vld [vmem:[%s2740_s4 + $0x268] sm:$0xff]  ;;  %v2241_v22 = vld [vmem:[%s2740_s4 + $0x2b0] sm:$0xff] }
  0xa0   : > { %1090 = vmatpush.bf16.msra.mxu2 %v2208_v25  ;;  %1104 = vmatpush.bf16.msra.mxu3 %v2216_v26  ;;  %v2231_v25 = vld [vmem:[%s2740_s4 + $0x260] sm:$0xff]  ;;  %v2240_v26 = vld [vmem:[%s2740_s4 + $0x2a8] sm:$0xff] }
  0xa3   : > { %1063 = vmatpush.bf16.msra.mxu0 %v2191_v23  ;;  %1077 = vmatpush.bf16.msra.mxu1 %v2199_v24  ;;  %v2249_v23 = vld [vmem:[%s2740_s4 + $0x2f0] sm:$0xff]  ;;  %v2223_v24 = vld [vmem:[%s2740_s4 + $0x220] sm:$0xff] }
  0xa4   : > { %1091 = vmatpush.bf16.msra.mxu2 %v2207_v29  ;;  %1105 = vmatpush.bf16.msra.mxu3 %v2215_v30  ;;  %v2230_v29 = vld [vmem:[%s2740_s4 + $0x258] sm:$0xff]  ;;  %v2239_v30 = vld [vmem:[%s2740_s4 + $0x2a0] sm:$0xff] }
  0xa7   : > { %1064 = vmatpush.bf16.msra.mxu0 %v2190_v27  ;;  %1078 = vmatpush.bf16.msra.mxu1 %v2198_v28  ;;  %v2248_v27 = vld [vmem:[%s2740_s4 + $0x2e8] sm:$0xff]  ;;  %v2222_v28 = vld [vmem:[%s2740_s4 + $0x218] sm:$0xff] }
  0xa8   : > { %1092 = vmatpush.bf16.msra.mxu2 %v2206_v33  ;;  %1106 = vmatpush.bf16.msra.mxu3 %v2214_v34  ;;  %v2229_v33 = vld [vmem:[%s2740_s4 + $0x250] sm:$0xff]  ;;  %v2238_v34 = vld [vmem:[%s2740_s4 + $0x298] sm:$0xff] }
  0xab   : > { %1065 = vmatpush.bf16.msra.mxu0 %v2189_v31  ;;  %1079 = vmatpush.bf16.msra.mxu1 %v2197_v32  ;;  %v2247_v31 = vld [vmem:[%s2740_s4 + $0x2e0] sm:$0xff]  ;;  %v2221_v32 = vld [vmem:[%s2740_s4 + $0x210] sm:$0xff] }
  0xac   : > { %1093 = vmatpush.bf16.msra.mxu2 %v2205_v37  ;;  %1107 = vmatpush.bf16.msra.mxu3 %v2213_v38  ;;  %v2228_v37 = vld [vmem:[%s2740_s4 + $0x248] sm:$0xff]  ;;  %v2237_v38 = vld [vmem:[%s2740_s4 + $0x290] sm:$0xff] }
  0xaf   : > { %1066 = vmatpush.bf16.msra.mxu0 %v2188_v35  ;;  %1080 = vmatpush.bf16.msra.mxu1 %v2196_v36  ;;  %v2246_v35 = vld [vmem:[%s2740_s4 + $0x2d8] sm:$0xff]  ;;  %v2220_v36 = vld [vmem:[%s2740_s4 + $0x208] sm:$0xff] }
  0xb0   : > { %1094 = vmatpush.bf16.msra.mxu2 %v2204_v41  ;;  %1108 = vmatpush.bf16.msra.mxu3 %v2212_v42  ;;  %v2227_v41 = vld [vmem:[%s2740_s4 + $0x240] sm:$0xff]  ;;  %v2236_v42 = vld [vmem:[%s2740_s4 + $0x288] sm:$0xff] }
  0xb3   : > { %1067 = vmatpush.bf16.msra.mxu0 %v2187_v39  ;;  %1081 = vmatpush.bf16.msra.mxu1 %v2195_v40  ;;  %v2245_v39 = vld [vmem:[%s2740_s4 + $0x2d0] sm:$0xff]  ;;  %v2219_v40 = vld [vmem:[%s2740_s4 + $0x200] sm:$0xff] }
  0xb4   : > { %1095 = vmatpush.bf16.msra.mxu2 %v2203_v43  ;;  %1109 = vmatpush.bf16.msra.mxu3 %v2211_v44  ;;  %v2244_v43 = vld [vmem:[%s2740_s4 + $0x2c8] sm:$0xff]  ;;  %v2235_v44 = vld [vmem:[%s2740_s4 + $0x280] sm:$0xff] }
 0x112   : > { %v423_v46 = vpop.f32.mrf.mxu0  ;;  %v437_v47 = vpop.f32.mrf.mxu1 }
 0x113   : > { %v424_v50 = vadd.f32 %v423_v46, %v370_v48  ;;  %v438_v51 = vadd.f32 %v437_v47, %v371_v49 }
 0x115   : > { %v470_v60 = vmax.f32 %v424_v50, 0.0  ;;  %v471_v61 = vmax.f32 %v438_v51, 0.0 }
 0x119   : > { %v451_v52 = vpop.f32.mrf.mxu2  ;;  %v465_v53 = vpop.f32.mrf.mxu3 }
 0x11a   : > { %v425_v54 = vpop.f32.mrf.mxu0  ;;  %v439_v55 = vpop.f32.mrf.mxu1  ;;  %v452_v6 = vadd.f32 %v451_v52, %v372_v58  ;;  %v466_v7 = vadd.f32 %v465_v53, %v373_v59 }
 0x11b   : > { %v426_v56 = vadd.f32 %v425_v54, %v370_v48  ;;  %v440_v57 = vadd.f32 %v439_v55, %v371_v49 }
 0x11c   : > { %v472_v14 = vmax.f32 %v452_v6, 0.0  ;;  %v473_v0 = vmax.f32 %v466_v7, 0.0 }
 0x11d   : > { %v474_v62 = vmax.f32 %v426_v56, 0.0  ;;  %v475_v63 = vmax.f32 %v440_v57, 0.0 }
 0x11f   : > { %v2592_v4 = vpack.c.bf16 %v474_v62, %v470_v60  ;;  %v2594_v5 = vpack.c.bf16 %v475_v63, %v471_v61 }
 0x121   : > { %v453_v8 = vpop.f32.mrf.mxu2  ;;  %v467_v9 = vpop.f32.mrf.mxu3  ;;  %746 = vmatmul.bf16.vlgmr.msrb.gmra.mxu0 %v2592_v4  ;;  %760 = vmatmul.bf16.vlgmr.msrb.gmra.mxu1 %v2594_v5 }
 0x122   : > { %v454_v10 = vadd.f32 %v453_v8, %v372_v58  ;;  %v468_v11 = vadd.f32 %v467_v9, %v373_v59  ;;  %1375 = vmatpush.bf16.msrb.mxu0 %v2226_v2  ;;  %1389 = vmatpush.bf16.msrb.mxu1 %v2234_v3  ;;  %v1509_v2 = vld [vmem:[%s2742_s6] sm:$0x3] }
 0x123   : > { %v1519_v3 = vsel %vm1517_vm7, %v1509_v2, 0 }
 0x124   : > { %v476_v1 = vmax.f32 %v454_v10, 0.0  ;;  %v477_v15 = vmax.f32 %v468_v11, 0.0 }
 0x126   : > { %v2610_v18 = vpack.c.bf16 %v476_v1, %v472_v14  ;;  %v2612_v19 = vpack.c.bf16 %v477_v15, %v473_v0  ;;  %1376 = vmatpush.bf16.msrb.mxu0 %v2225_v12  ;;  %1390 = vmatpush.bf16.msrb.mxu1 %v2233_v13 }
 0x128   : > { %774 = vmatmul.bf16.vlgmr.msrb.gmra.mxu2 %v2610_v18  ;;  %788 = vmatmul.bf16.vlgmr.msrb.gmra.mxu3 %v2612_v19 }
 0x129   : > { %1403 = vmatpush.bf16.msrb.mxu2 %v2242_v16  ;;  %1417 = vmatpush.bf16.msrb.mxu3 %v2250_v17 }
 0x12a   : > { %1377 = vmatpush.bf16.msrb.mxu0 %v2224_v20  ;;  %1391 = vmatpush.bf16.msrb.mxu1 %v2232_v21 }
 0x12d   : > { %1404 = vmatpush.bf16.msrb.mxu2 %v2241_v22  ;;  %1418 = vmatpush.bf16.msrb.mxu3 %v2249_v23 }
 0x12e   : > { %1378 = vmatpush.bf16.msrb.mxu0 %v2223_v24  ;;  %1392 = vmatpush.bf16.msrb.mxu1 %v2231_v25 }
 0x131   : > { %1405 = vmatpush.bf16.msrb.mxu2 %v2240_v26  ;;  %1419 = vmatpush.bf16.msrb.mxu3 %v2248_v27 }
 0x132   : > { %1068 = vmatmul.bf16.vlgmr.msra.gmra.mxu0 %v2592_v4  ;;  %1082 = vmatmul.bf16.vlgmr.msra.gmra.mxu1 %v2594_v5 }
 0x133   : > { %1379 = vmatpush.bf16.msrb.mxu0 %v2222_v28  ;;  %1393 = vmatpush.bf16.msrb.mxu1 %v2230_v29 }
 0x135   : > { %1406 = vmatpush.bf16.msrb.mxu2 %v2239_v30  ;;  %1420 = vmatpush.bf16.msrb.mxu3 %v2247_v31  ;;  %v2275_v30 = vld [vmem:[%s2741_s5] ss:$0 sm:$0xff] }
 0x137   : > { %1380 = vmatpush.bf16.msrb.mxu0 %v2221_v32  ;;  %1394 = vmatpush.bf16.msrb.mxu1 %v2229_v33 }
 0x138   : > { %1096 = vmatmul.bf16.vlgmr.msra.gmra.mxu2 %v2610_v18  ;;  %1110 = vmatmul.bf16.vlgmr.msra.gmra.mxu3 %v2612_v19 }
 0x139   : > { %1407 = vmatpush.bf16.msrb.mxu2 %v2238_v34  ;;  %1421 = vmatpush.bf16.msrb.mxu3 %v2246_v35 }
 0x13b   : > { %1381 = vmatpush.bf16.msrb.mxu0 %v2220_v36  ;;  %1395 = vmatpush.bf16.msrb.mxu1 %v2228_v37 }
 0x13d   : > { %1408 = vmatpush.bf16.msrb.mxu2 %v2237_v38  ;;  %1422 = vmatpush.bf16.msrb.mxu3 %v2245_v39  ;;  %v1447_v39 = vld [vmem:[%s315_s10] sm:$0xff] }
 0x13f   : > { %1382 = vmatpush.bf16.msrb.mxu0 %v2219_v40  ;;  %1396 = vmatpush.bf16.msrb.mxu1 %v2227_v41  ;;  %v1448_v40 = vld [vmem:[%s315_s10 + $0x8] sm:$0xff] }
 0x141   : > { %1409 = vmatpush.bf16.msrb.mxu2 %v2236_v42  ;;  %1423 = vmatpush.bf16.msrb.mxu3 %v2244_v43  ;;  %v1450_v42 = vsel %vm1449_vm9, %v1447_v39, 0.0  ;;  %v1451_v43 = vsel %vm1449_vm9, %v1448_v40, 0.0 }
 0x142   : > { %1383 = vmatmul.bf16.vlgmr.msrb.gmra.mxu0 %v2592_v4  ;;  %1397 = vmatmul.bf16.vlgmr.msrb.gmra.mxu1 %v2594_v5 }
 0x143   : > { %1528 = vmatpush.bf16.msra.mxu0 %v1519_v3 }
 0x145   : > { %1410 = vmatpush.bf16.msrb.mxu2 %v2235_v44  ;;  %1424 = vmatpush.bf16.msrb.mxu3 %v2243_v45  ;;  %v2293_v45 = vmov 16.0  }
 0x146   : > { %2277 = vrcp.f32 %v2293_v45 }
 0x148   : > { %1411 = vmatmul.bf16.vlgmr.msrb.gmra.mxu2 %v2610_v18  ;;  %1425 = vmatmul.bf16.vlgmr.msrb.gmra.mxu3 %v2612_v19 }
 0x19e   : > { %v747_v46 = vpop.f32.mrf.mxu0  ;;  %v761_v47 = vpop.f32.mrf.mxu1 }
 0x19f   : > { %v762_v4 = vadd.f32 %v761_v47, %v747_v46  ;;  %v1452_v46 = vadd.f32 %v1451_v43, %v1450_v42 }
 0x1a1   : > { %v1453_v47 = vrot.slane %v1452_v46, 4 }
 0x1a6   : > { %v749_v48 = vpop.f32.mrf.mxu0  ;;  %v763_v49 = vpop.f32.mrf.mxu1 }
 0x1a7   : > { %v764_v12 = vadd.f32 %v763_v49, %v749_v48  ;;  %v2278_v48 = vpop.eup %2277  ;;  %v1454_v49 = vadd.f32 %v1453_v47, %v1452_v46 }
 0x1a8   : > { %vm1464_vm10 = vweird.f32 %v2278_v48 }
 0x1ab   : > { %v775_v50 = vpop.f32.mrf.mxu2  ;;  %v789_v51 = vpop.f32.mrf.mxu3 }
 0x1ac   : > { %v776_v7 = vadd.f32 %v775_v50, %v762_v4  ;;  %v1460_v50 = vmul.f32 16.0, %v2278_v48 }
 0x1ae   : > { %v790_v13 = vadd.f32 %v789_v51, %v776_v7  ;;  %v1455_v51 = vrot.slane %v1454_v49, 2 }
 0x1af   : > { %v1069_v52 = vpop.f32.mrf.mxu0  ;;  %v1083_v53 = vpop.f32.mrf.mxu1 }
 0x1b0   : > { %v1084_v9 = vadd.f32 %v1083_v53, %v1069_v52  ;;  %v797_v17 = vrot.slane %v790_v13, 7  ;;  %v1461_v52 = vsub.f32 1.0, %v1460_v50  ;;  %v1456_v53 = vadd.f32 %v1455_v51, %v1454_v49 }
 0x1b2   : > { %v802_v26 = vsel %vm796_vm8, 0.0, %v797_v17 }
 0x1b3   : > { %v777_v54 = vpop.f32.mrf.mxu2  ;;  %v791_v55 = vpop.f32.mrf.mxu3 }
 0x1b4   : > { %v778_v1 = vadd.f32 %v777_v54, %v764_v12  ;;  %v1462_v54 = vmul.f32 %v2278_v48, %v1461_v52 }
 0x1b6   : > { %v792_v23 = vadd.f32 %v791_v55, %v778_v1  ;;  %v1457_v55 = vrot.slane %v1456_v53, 1 }
 0x1b7   : > { %v1071_v56 = vpop.f32.mrf.mxu0  ;;  %v1085_v57 = vpop.f32.mrf.mxu1 }
 0x1b8   : > { %v1086_v20 = vadd.f32 %v1085_v57, %v1071_v56  ;;  %v798_v31 = vrot.slane %v792_v23, 7  ;;  %v1463_v56 = vadd.f32 %v2278_v48, %v1462_v54  ;;  %v1458_v57 = vadd.f32 %v1457_v55, %v1456_v53 }
 0x1ba   : > { %v799_v36 = vsel %vm796_vm8, %v797_v17, %v798_v31 }
 0x1bb   : > { %v1097_v58 = vpop.f32.mrf.mxu2  ;;  %v1111_v59 = vpop.f32.mrf.mxu3 }
 0x1bc   : > { %v1098_v0 = vadd.f32 %v1097_v58, %v1084_v9  ;;  %v1465_v58 = vsel %vm1464_vm10, %v2278_v48, %v1463_v56 }
 0x1be   : > { %v1112_v21 = vadd.f32 %v1111_v59, %v1098_v0  ;;  %v1466_v59 = vmul.f32 %v1465_v58, %v1458_v57 }
 0x1bf   : > { %v1384_v62 = vpop.f32.mrf.mxu0  ;;  %v1398_v63 = vpop.f32.mrf.mxu1 }
 0x1c0   : > { %v1399_v8 = vadd.f32 %v1398_v63, %v1384_v62  ;;  %v1116_v29 = vadd.f32 %v1112_v21, %v802_v26 }
 0x1c3   : > { %v1099_v60 = vpop.f32.mrf.mxu2  ;;  %v1113_v61 = vpop.f32.mrf.mxu3 }
 0x1c4   : > { %v1100_v25 = vadd.f32 %v1099_v60, %v1086_v20  ;;  %v1467_v60 = vsub.f32 %v1447_v39, %v1466_v59 }
 0x1c6   : > { %v1114_v33 = vadd.f32 %v1113_v61, %v1100_v25  ;;  %v1468_v61 = vsub.f32 %v1448_v40, %v1466_v59  ;;  %v1469_v62 = vmul.f32 %v1467_v60, %v1467_v60 }
 0x1c7   : > { %v1386_v10 = vpop.f32.mrf.mxu0  ;;  %v1400_v11 = vpop.f32.mrf.mxu1 }
 0x1c8   : > { %v1401_v15 = vadd.f32 %v1400_v11, %v1386_v10  ;;  %v1117_v38 = vadd.f32 %v1114_v33, %v799_v36  ;;  %v1470_v63 = vmul.f32 %v1468_v61, %v1468_v61  ;;  %v1471_v2 = vsel %vm1449_vm9, %v1469_v62, 0.0 }
 0x1ca   : > { %v1472_v3 = vsel %vm1449_vm9, %v1470_v63, 0.0 }
 0x1cb   : > { %v1412_v5 = vpop.f32.mrf.mxu2  ;;  %v1426_v6 = vpop.f32.mrf.mxu3  ;;  %v1473_v4 = vadd.f32 %v1472_v3, %v1471_v2 }
 0x1cc   : > { %v1413_v14 = vadd.f32 %v1412_v5, %v1399_v8 }
 0x1cd   : > { %v1474_v5 = vrot.slane %v1473_v4, 4 }
 0x1ce   : > { %v1427_v18 = vadd.f32 %v1426_v6, %v1413_v14 }
 0x1cf   : > { %v1475_v6 = vadd.f32 %v1474_v5, %v1473_v4 }
 0x1d0   : > { %v1433_v27 = vrot.slane %v1427_v18, 1 }
 0x1d1   : > { %v1476_v7 = vrot.slane %v1475_v6, 2 }
 0x1d3   : > { %v1414_v16 = vpop.f32.mrf.mxu2  ;;  %v1428_v22 = vpop.f32.mrf.mxu3  ;;  %v1477_v8 = vadd.f32 %v1476_v7, %v1475_v6 }
 0x1d4   : > { %v1415_v19 = vadd.f32 %v1414_v16, %v1401_v15 }
 0x1d5   : > { %v1478_v9 = vrot.slane %v1477_v8, 1 }
 0x1d6   : > { %v1429_v24 = vadd.f32 %v1428_v22, %v1415_v19 }
 0x1d7   : > { %v1479_v10 = vadd.f32 %v1478_v9, %v1477_v8 }
 0x1d8   : > { %v1434_v28 = vrot.slane %v1429_v24, 1 }
 0x1d9   : > { %v1480_v11 = vmul.f32 %v1479_v10, %v1465_v58 }
 0x1da   : > { %v1435_v32 = vsel %vm333_vm0, %v1433_v27, %v1434_v28  ;;  %v1438_v37 = vsel %vm333_vm0, %v1434_v28, 0.0 }
 0x1db   : > { %v1439_v34 = vadd.f32 %v1435_v32, %v1116_v29  ;;  %v1440_v41 = vadd.f32 %v1438_v37, %v1117_v38  ;;  %v1481_v12 = vadd.f32 1e-05, %v1480_v11  ;;  %v2276_v29 = vld [vmem:[%s2743_s7] ss:$0 sm:$0xff] }
 0x1dd   : > { %v1445_v35 = vadd.f32 %v2275_v30, %v1439_v34  ;;  %v1446_v44 = vadd.f32 %v2275_v30, %v1440_v41  ;;  %2279 = vrsqrt.f32 %v1481_v12  ;;  %vm1488_vm11 = vweird.f32 %v1481_v12 }
 0x1df   : > { %1500 = vrot.lane.b32.xlu1 %v1445_v35, %s2292_s11  ;;  %v1494_v19 = vadd.f32 1.0, %v1445_v35  ;;  %v1495_v22 = vadd.f32 1.0, %v1446_v44 }
 0x1e3   : > { %v2280_v13 = vpop.eup %2279 }
 0x1e4   : > { %v1483_v14 = vmul.f32 %v2280_v13, %v1481_v12  ;;  %vm1489_vm12 = vweird.f32 %v2280_v13 }
 0x1e5   : > { %vm1490_vm13 = vmor %vm1488_vm11, %vm1489_vm12 }
 0x1e6   : > { %v1484_v0 = vmul.f32 %v2280_v13, %v1483_v14 }
 0x1e7   : > { %1502 = vrot.lane.b32.xlu1 %v1446_v44, %s2292_s11 }
 0x1e8   : > { %v1485_v1 = vmul.f32 0.5, %v1484_v0 }
 0x1ea   : > { %v1486_v15 = vsub.f32 1.5, %v1485_v1 }
 0x1ec   : > { %v1487_v16 = vmul.f32 %v2280_v13, %v1486_v15 }
 0x1ee   : > { %v1491_v18 = vsel %vm1490_vm13, %v2280_v13, %v1487_v16 }
 0x1ef   : > { %v1492_v20 = vmul.f32 %v1491_v18, %v1467_v60  ;;  %v1493_v21 = vmul.f32 %v1491_v18, %v1468_v61 }
 0x1f1   : > { %v1496_v23 = vmul.f32 %v1494_v19, %v1492_v20  ;;  %v1497_v24 = vmul.f32 %v1495_v22, %v1493_v21 }
 0x251   : > { %v1501_v17 = vpop.permute.xlu1 %1500 }
 0x252   : > { %v1506_v26 = vadd.f32 %v1501_v17, %v1496_v23 }
 0x259   : > { %v1503_v25 = vpop.permute.xlu1 %1502 }
 0x25a   : > { %v1507_v27 = vadd.f32 %v1503_v25, %v1497_v24 }
 0x25c   : > { %v1508_v28 = vpack.c.bf16 %v1507_v27, %v1506_v26 }
 0x25e   : > { %2146 = vmatmul.msk.bf16.vlgmr.msra.gmra.mxu0 %vm1449_vm9, %v1508_v28 }
 0x2db   : > { %v1530_v30 = vpop.f32.mrf.mxu0 }
 0x2dc   : > { %v1531_v31 = vadd.f32 %v2276_v29, %v1530_v30 }
 0x2de   : > { %1535 = vst.msk [vmem:[%s325_s16] sm:$0xff] %vm360_vm5, %v1531_v31 }
 0x2e3   : > { %v1532_v32 = vpop.f32.mrf.mxu0 }
 0x2e4   : > { %v1533_v33 = vadd.f32 %v2276_v29, %v1532_v32 }
 0x2e6   : > { %1536 = vst.msk [vmem:[%s325_s16 + $0x8] sm:$0xff] %vm360_vm5, %v1533_v33 }
 0x2e7 PF: > { %s18_s27 = sadd.s32 1, %s2287_s27  }
 0x2e8   : > { %p15_p4 = scmp.ge.s32.totalorder %s18_s27, 4  }
 0x2ea   :  { %17 = sbr.rel (!%p15_p4) target bundleno = 1 (0x1), region = 87 }

// kernel: spade_resnet_block.4
= control target key start
LH: loop header
LB: loop body
LE: loop exit
PB: predicated region body
PF: predicated region fallthrough
CT: control target
= control target key end

     0   :  { %s2409_s27 = smov 0   ;;  %s2819_s0 = inlined_call_operand.vmem [shape: f32[2,16,4], index: 0, kind: input, shape index: {}]   ;;  %s2820_s1 = inlined_call_operand.vmem [shape: f32[2,18,3], index: 1, kind: input, shape index: {}]   ;;  %s2821_s2 = inlined_call_operand.vmem [shape: bf16[9,512], index: 2, kind: input, shape index: {}]   ;;  %s2822_s3 = inlined_call_operand.vmem [shape: f32[1,512], index: 3, kind: input, shape index: {}]   ;;  %s2823_s4 = inlined_call_operand.vmem [shape: bf16[3,512,8], index: 4, kind: input, shape index: {}]   ;;  %s2824_s5 = inlined_call_operand.vmem [shape: f32[1,8], index: 5, kind: input, shape index: {}]   ;;  %s2825_s6 = inlined_call_operand.vmem [shape: bf16[3,4,4], index: 6, kind: input, shape index: {}]   ;;  %s2826_s7 = inlined_call_operand.vmem [shape: f32[1,4], index: 7, kind: input, shape index: {}]   ;;  %s2827_s8 = inlined_call_operand.vmem [shape: f32[2,16,4], index: 8, kind: output, shape index: {}]  }
   0x1 LB: > { %s1670_s28 = sadd.s32 4294967295, %s2357_s27   ;;  %p1674_p0 = scmp.ge.s32.totalorder %s2357_s27, 1  ;;  %s2357_s27 = sphi %s2409_s27, %s18_s27  }
   0x2   : > { %p272_p1 = scmp.lt.s32.totalorder %s2357_s27, 3 }
   0x4   : > { %p273_p2 = pnand %p1674_p0, %p272_p1 }
   0x5   : > { %p311_p3 = scmp.lt.s32.totalorder (!%p273_p2), %s1670_s28, 1  ;;  %s2359_s11 = smov (!%p273_p2), 3  }
   0x6   : > { %276 = sbr.rel (%p273_p2) target bundleno = 759 (0x2f7), region = 52  ;;  %s2360_s12 = smov (!%p273_p2), 6  }
   0xb   : > { %s2829_s28 = smov (!%p311_p3, %s1670_s28), 1  ;;  %vm333_vm0 = vcmask 1046528   ;;  %vm345_vm1 = vcmask 1045504   ;;  %v1682_v15 = vld [vmem:[%s2821_s2] sm:$0xf]  ;;  %vm398_vm2 = vcmask 1043456  }
   0xc   : > { %s2321_s29 = smul.u32 24, %s2829_s28  ;;  %v2223_v16 = vld [vmem:[%s2821_s2 + $0xc] sm:$0x10]  ;;  %vm399_vm3 = vcmask 1044480   ;;  %v2361_v18 = vmov 65535   ;;  %v2232_v34 = vld [vmem:[%s2823_s4 + $0x38] sm:$0xff] }
   0xd   : > { %v1683_v17 = vor.u32 %v2223_v16, %v1682_v15  ;;  %v400_v19 = vsel %vm398_vm2, 4294967295, %v2361_v18  ;;  %v2221_v20 = vld [vmem:[%s2821_s2 + $0x4] sm:$0xf]  ;;  %v1684_v21 = vld [vmem:[%s2821_s2 + $0x10] sm:$0x10]  ;;  %v2240_v35 = vld [vmem:[%s2823_s4 + $0x78] sm:$0xff] }
   0xe   : > { %s320_s10 = scalar_lea.vmem %s2820_s1, %s2321_s29  ;;  %v401_v22 = vsel %vm399_vm3, %v400_v19, 0  ;;  %v1687_v23 = vor.u32 %v2221_v20, %v1684_v21  ;;  %v1690_v24 = vld [vmem:[%s2821_s2 + $0x8] sm:$0xf]  ;;  %v2224_v25 = vld [vmem:[%s2821_s2 + $0x14] sm:$0x10]  ;;  %v2231_v38 = vld [vmem:[%s2823_s4 + $0x30] sm:$0xff] }
   0xf   : > { %v2423_v0 = vld [vmem:[%s320_s10] sm:$0xff]  ;;  %v2425_v1 = vld [vmem:[%s320_s10 + $0x8] sm:$0xff]  ;;  %v329_v2 = vld [vmem:[%s320_s10 + $0x10] sm:$0x3]  ;;  %v403_v26 = vand.u32 %v1683_v17, %v401_v22  ;;  %v1691_v27 = vor.u32 %v2224_v25, %v1690_v24  ;;  %vm357_vm4 = vcmask 23552   ;;  %vm360_vm5 = vcmask 48128  }
  0x10   : > { %v334_v3 = vrot.slane %v2423_v0, 1  ;;  %v335_v4 = vrot.slane %v2425_v1, 1  ;;  %v337_v5 = vrot.slane %v329_v2, 1  ;;  %v349_v6 = vrot.slane %v329_v2, 2  ;;  %v2222_v28 = vld [vmem:[%s2821_s2 + $0xc] sm:$0xf] }
  0x11   : > { %v346_v9 = vrot.slane %v2423_v0, 2  ;;  %v347_v10 = vrot.slane %v2425_v1, 2  ;;  %v1692_v29 = vld [vmem:[%s2821_s2 + $0x18] sm:$0x10]  ;;  %v406_v30 = vand.u32 %v1687_v23, %v401_v22  ;;  %421 = vmatpush.bf16.msra.mxu0 %v403_v26  ;;  %v409_v32 = vand.u32 %v1691_v27, %v401_v22  ;;  %v2239_v39 = vld [vmem:[%s2823_s4 + $0x70] sm:$0xff]  ;;  %v2230_v42 = vld [vmem:[%s2823_s4 + $0x28] sm:$0xff] }
  0x12   : > { %v336_v7 = vsel %vm333_vm0, %v334_v3, %v335_v4  ;;  %v338_v8 = vsel %vm333_vm0, %v335_v4, %v337_v5  ;;  %v1695_v31 = vor.u32 %v2222_v28, %v1692_v29  ;;  %v2248_v36 = vld [vmem:[%s2823_s4 + $0xb8] sm:$0xff]  ;;  %v2247_v40 = vld [vmem:[%s2823_s4 + $0xb0] sm:$0xff]  ;;  %v2238_v43 = vld [vmem:[%s2823_s4 + $0x68] sm:$0xff]  ;;  %vm394_vm6 = vcmask 72704   ;;  %s2219_s25 = sshll.u32 %s2829_s28, 4 }
  0x13   : > { %v2335_v11 = vpack.i.bf16 %v338_v8, %v336_v7  ;;  %v348_v12 = vsel %vm345_vm1, %v346_v9, %v347_v10  ;;  %v350_v13 = vsel %vm345_vm1, %v347_v10, %v349_v6  ;;  %435 = vmatpush.bf16.msra.mxu1 %v406_v30  ;;  %449 = vmatpush.bf16.msra.mxu2 %v409_v32  ;;  %v2256_v37 = vld [vmem:[%s2823_s4 + $0xf8] sm:$0xff]  ;;  %v2255_v41 = vld [vmem:[%s2823_s4 + $0xf0] sm:$0xff]  ;;  %v2246_v44 = vld [vmem:[%s2823_s4 + $0xa8] sm:$0xff]  ;;  %vm1519_vm7 = vcmask 1041408   ;;  %s315_s30 = scalar_lea.vmem %s2819_s0, %s2219_s25  ;;  %s325_s20 = scalar_lea.vmem %s2827_s8, %s2219_s25 }
  0x14   : > { %v2340_v14 = vpack.i.bf16 %v350_v13, %v348_v12  ;;  %v412_v33 = vand.u32 %v1695_v31, %v401_v22  ;;  %v2254_v45 = vld [vmem:[%s2823_s4 + $0xe8] sm:$0xff]  ;;  %v2229_v46 = vld [vmem:[%s2823_s4 + $0x20] sm:$0xff]  ;;  %v2228_v50 = vld [vmem:[%s2823_s4 + $0x18] sm:$0xff]  ;;  %vm796_vm8 = vcmask 1040384   ;;  %vm1449_vm9 = vcmask 31744  }
  0x15   : > { %2336 = vrot.lane.b32.xlu0 %v2335_v11, %s2359_s11  ;;  %738 = vmatpush.bf16.msrb.mxu0 %v2232_v34  ;;  %v2237_v47 = vld [vmem:[%s2823_s4 + $0x60] sm:$0xff]  ;;  %v2236_v51 = vld [vmem:[%s2823_s4 + $0x58] sm:$0xff]  ;;  %v2227_v55 = vld [vmem:[%s2823_s4 + $0x10] sm:$0xff]  ;;  %s2362_s11 = smov 124  }
  0x16   : > { %463 = vmatpush.bf16.msra.mxu3 %v412_v33  ;;  %v2245_v48 = vld [vmem:[%s2823_s4 + $0xa0] sm:$0xff]  ;;  %v2244_v52 = vld [vmem:[%s2823_s4 + $0x98] sm:$0xff]  ;;  %v2235_v56 = vld [vmem:[%s2823_s4 + $0x50] sm:$0xff] }
  0x17   : > { %752 = vmatpush.bf16.msrb.mxu1 %v2240_v35  ;;  %766 = vmatpush.bf16.msrb.mxu2 %v2248_v36  ;;  %v2253_v49 = vld [vmem:[%s2823_s4 + $0xe0] sm:$0xff]  ;;  %v2252_v53 = vld [vmem:[%s2823_s4 + $0xd8] sm:$0xff]  ;;  %v2243_v57 = vld [vmem:[%s2823_s4 + $0x90] sm:$0xff] }
  0x18   : > { %v2251_v58 = vld [vmem:[%s2823_s4 + $0xd0] sm:$0xff]  ;;  %v2226_v59 = vld [vmem:[%s2823_s4 + $0x8] sm:$0xff]  ;;  %v2225_v6 = vld [vmem:[%s2823_s4] sm:$0xff] }
  0x19   : > { %739 = vmatpush.bf16.msrb.mxu0 %v2231_v38  ;;  %v2234_v60 = vld [vmem:[%s2823_s4 + $0x48] sm:$0xff]  ;;  %v2233_v7 = vld [vmem:[%s2823_s4 + $0x40] sm:$0xff]  ;;  %v2264_v13 = vld [vmem:[%s2823_s4 + $0x138] sm:$0xff] }
  0x1a   : > { %780 = vmatpush.bf16.msrb.mxu3 %v2256_v37  ;;  %v2242_v63 = vld [vmem:[%s2823_s4 + $0x88] sm:$0xff]  ;;  %v2280_v15 = vld [vmem:[%s2823_s4 + $0x1b8] sm:$0xff]  ;;  %v2263_v17 = vld [vmem:[%s2823_s4 + $0x130] sm:$0xff] }
  0x1b   : > { %753 = vmatpush.bf16.msrb.mxu1 %v2239_v39  ;;  %767 = vmatpush.bf16.msrb.mxu2 %v2247_v40  ;;  %v2250_v2 = vld [vmem:[%s2823_s4 + $0xc8] sm:$0xff]  ;;  %v2288_v16 = vld [vmem:[%s2823_s4 + $0x1f8] sm:$0xff]  ;;  %v2271_v18 = vld [vmem:[%s2823_s4 + $0x170] sm:$0xff] }
  0x1c   : > { %v2279_v19 = vld [vmem:[%s2823_s4 + $0x1b0] sm:$0xff]  ;;  %v2262_v21 = vld [vmem:[%s2823_s4 + $0x128] sm:$0xff]  ;;  %v2261_v23 = vld [vmem:[%s2823_s4 + $0x120] sm:$0xff] }
  0x1d   : > { %2341 = vrot.lane.b32.xlu0 %v2340_v14, %s2360_s12  ;;  %740 = vmatpush.bf16.msrb.mxu0 %v2230_v42  ;;  %v2272_v14 = vld [vmem:[%s2823_s4 + $0x178] sm:$0xff]  ;;  %v2287_v20 = vld [vmem:[%s2823_s4 + $0x1f0] sm:$0xff]  ;;  %v2270_v22 = vld [vmem:[%s2823_s4 + $0x168] sm:$0xff] }
  0x1e   : > { %781 = vmatpush.bf16.msrb.mxu3 %v2255_v41  ;;  %v2269_v24 = vld [vmem:[%s2823_s4 + $0x160] sm:$0xff]  ;;  %v2278_v25 = vld [vmem:[%s2823_s4 + $0x1a8] sm:$0xff]  ;;  %v2260_v27 = vld [vmem:[%s2823_s4 + $0x118] sm:$0xff] }
  0x1f   : > { %754 = vmatpush.bf16.msrb.mxu1 %v2238_v43  ;;  %768 = vmatpush.bf16.msrb.mxu2 %v2246_v44  ;;  %v2286_v26 = vld [vmem:[%s2823_s4 + $0x1e8] sm:$0xff]  ;;  %v2268_v28 = vld [vmem:[%s2823_s4 + $0x158] sm:$0xff]  ;;  %v2277_v29 = vld [vmem:[%s2823_s4 + $0x1a0] sm:$0xff] }
  0x20   : > { %v2285_v30 = vld [vmem:[%s2823_s4 + $0x1e0] sm:$0xff]  ;;  %v2259_v31 = vld [vmem:[%s2823_s4 + $0x110] sm:$0xff]  ;;  %v2276_v33 = vld [vmem:[%s2823_s4 + $0x198] sm:$0xff] }
  0x21   : > { %741 = vmatpush.bf16.msrb.mxu0 %v2229_v46  ;;  %v2267_v32 = vld [vmem:[%s2823_s4 + $0x150] sm:$0xff]  ;;  %v2284_v34 = vld [vmem:[%s2823_s4 + $0x1d8] sm:$0xff]  ;;  %v2258_v35 = vld [vmem:[%s2823_s4 + $0x108] sm:$0xff] }
  0x22   : > { %782 = vmatpush.bf16.msrb.mxu3 %v2254_v45  ;;  %v2266_v36 = vld [vmem:[%s2823_s4 + $0x148] sm:$0xff]  ;;  %v2275_v37 = vld [vmem:[%s2823_s4 + $0x190] sm:$0xff]  ;;  %v2257_v39 = vld [vmem:[%s2823_s4 + $0x100] sm:$0xff] }
  0x23   : > { %755 = vmatpush.bf16.msrb.mxu1 %v2237_v47  ;;  %769 = vmatpush.bf16.msrb.mxu2 %v2245_v48  ;;  %v2283_v38 = vld [vmem:[%s2823_s4 + $0x1d0] sm:$0xff]  ;;  %v2265_v40 = vld [vmem:[%s2823_s4 + $0x140] sm:$0xff]  ;;  %v2274_v41 = vld [vmem:[%s2823_s4 + $0x188] sm:$0xff] }
  0x24   : > { %v2282_v42 = vld [vmem:[%s2823_s4 + $0x1c8] sm:$0xff]  ;;  %v2273_v43 = vld [vmem:[%s2823_s4 + $0x180] sm:$0xff] }
  0x25   : > { %742 = vmatpush.bf16.msrb.mxu0 %v2228_v50  ;;  %v2281_v44 = vld [vmem:[%s2823_s4 + $0x1c0] sm:$0xff] }
  0x26   : > { %783 = vmatpush.bf16.msrb.mxu3 %v2253_v49  ;;  %v368_v45 = vld [vmem:[%s2822_s3] sm:$0xf] }
  0x27   : > { %756 = vmatpush.bf16.msrb.mxu1 %v2236_v51  ;;  %770 = vmatpush.bf16.msrb.mxu2 %v2244_v52  ;;  %v370_v48 = vperm.slane %v368_v45, 0  ;;  %v371_v49 = vperm.slane %v368_v45, 1 }
  0x29   : > { %743 = vmatpush.bf16.msrb.mxu0 %v2227_v55 }
  0x2a   : > { %784 = vmatpush.bf16.msrb.mxu3 %v2252_v53 }
  0x2b   : > { %757 = vmatpush.bf16.msrb.mxu1 %v2235_v56  ;;  %771 = vmatpush.bf16.msrb.mxu2 %v2243_v57 }
  0x2d   : > { %744 = vmatpush.bf16.msrb.mxu0 %v2226_v59  ;;  %v373_v59 = vperm.slane %v368_v45, 3 }
  0x2e   : > { %785 = vmatpush.bf16.msrb.mxu3 %v2251_v58  ;;  %v372_v58 = vperm.slane %v368_v45, 2  ;;  %v2313_v45 = vld [vmem:[%s2823_s4 + $0x2c0] sm:$0xff] }
  0x2f   : > { %758 = vmatpush.bf16.msrb.mxu1 %v2234_v60  ;;  %772 = vmatpush.bf16.msrb.mxu2 %v2242_v63 }
  0x31   : > { %745 = vmatpush.bf16.msrb.mxu0 %v2225_v6 }
  0x32   : > { %786 = vmatpush.bf16.msrb.mxu3 %v2250_v2  ;;  %v2296_v2 = vld [vmem:[%s2823_s4 + $0x238] sm:$0xff] }
  0x33   : > { %759 = vmatpush.bf16.msrb.mxu1 %v2233_v7 }
  0x87   : > { %v2337_v54 = vpop.permute.xlu0 %2336 }
  0x88   : > { %v2339_v61 = vunpack.i.h.bf16 %v2337_v54  ;;  %v2338_v62 = vunpack.i.l.bf16 %v2337_v54 }
  0x8a   : > { %v359_v8 = vsel %vm357_vm4, %v2425_v1, %v2339_v61  ;;  %v358_v9 = vsel %vm357_vm4, %v2423_v0, %v2338_v62  ;;  %v2241_v0 = vld [vmem:[%s2823_s4 + $0x80] sm:$0xff] }
  0x8b   : > { %v2249_v1 = vld [vmem:[%s2823_s4 + $0xc0] sm:$0xff]  ;;  %773 = vmatpush.bf16.msrb.mxu2 %v2241_v0 }
  0x8c   : > { %787 = vmatpush.bf16.msrb.mxu3 %v2249_v1 }
  0x8f   : > { %v2342_v3 = vpop.permute.xlu0 %2341 }
  0x90   : > { %v2344_v4 = vunpack.i.h.bf16 %v2342_v3  ;;  %v2343_v5 = vunpack.i.l.bf16 %v2342_v3  ;;  %v2304_v3 = vld [vmem:[%s2823_s4 + $0x278] sm:$0xff] }
  0x92   : > { %v361_v10 = vsel %vm360_vm5, %v358_v9, %v2343_v5  ;;  %v362_v11 = vsel %vm360_vm5, %v359_v8, %v2344_v4 }
  0x93   : > { %v363_v12 = vpack.c.bf16 %v362_v11, %v361_v10 }
  0x95   : > { %1696 = vmatmul.msk.bf16.vlgmr.msra.gmra.mxu0 %vm394_vm6, %v363_v12  ;;  %1697 = vmatmul.msk.bf16.vlgmr.msra.gmra.mxu1 %vm394_vm6, %v363_v12 }
  0x96   : > { %1698 = vmatmul.msk.bf16.vlgmr.msra.gmra.mxu2 %vm394_vm6, %v363_v12  ;;  %1699 = vmatmul.msk.bf16.vlgmr.msra.gmra.mxu3 %vm394_vm6, %v363_v12  ;;  %v2295_v12 = vld [vmem:[%s2823_s4 + $0x230] sm:$0xff] }
  0x97   : > { %1060 = vmatpush.bf16.msra.mxu0 %v2264_v13  ;;  %1074 = vmatpush.bf16.msra.mxu1 %v2272_v14  ;;  %v2303_v13 = vld [vmem:[%s2823_s4 + $0x270] sm:$0xff] }
  0x98   : > { %1088 = vmatpush.bf16.msra.mxu2 %v2280_v15  ;;  %1102 = vmatpush.bf16.msra.mxu3 %v2288_v16  ;;  %v2312_v16 = vld [vmem:[%s2823_s4 + $0x2b8] sm:$0xff] }
  0x9b   : > { %1061 = vmatpush.bf16.msra.mxu0 %v2263_v17  ;;  %1075 = vmatpush.bf16.msra.mxu1 %v2271_v18  ;;  %v2320_v17 = vld [vmem:[%s2823_s4 + $0x2f8] sm:$0xff] }
  0x9c   : > { %1089 = vmatpush.bf16.msra.mxu2 %v2279_v19  ;;  %1103 = vmatpush.bf16.msra.mxu3 %v2287_v20  ;;  %v2294_v20 = vld [vmem:[%s2823_s4 + $0x228] sm:$0xff] }
  0x9f   : > { %1062 = vmatpush.bf16.msra.mxu0 %v2262_v21  ;;  %1076 = vmatpush.bf16.msra.mxu1 %v2270_v22  ;;  %v2302_v21 = vld [vmem:[%s2823_s4 + $0x268] sm:$0xff]  ;;  %v2311_v22 = vld [vmem:[%s2823_s4 + $0x2b0] sm:$0xff] }
  0xa0   : > { %1090 = vmatpush.bf16.msra.mxu2 %v2278_v25  ;;  %1104 = vmatpush.bf16.msra.mxu3 %v2286_v26  ;;  %v2301_v25 = vld [vmem:[%s2823_s4 + $0x260] sm:$0xff]  ;;  %v2310_v26 = vld [vmem:[%s2823_s4 + $0x2a8] sm:$0xff] }
  0xa3   : > { %1063 = vmatpush.bf16.msra.mxu0 %v2261_v23  ;;  %1077 = vmatpush.bf16.msra.mxu1 %v2269_v24  ;;  %v2319_v23 = vld [vmem:[%s2823_s4 + $0x2f0] sm:$0xff]  ;;  %v2293_v24 = vld [vmem:[%s2823_s4 + $0x220] sm:$0xff] }
  0xa4   : > { %1091 = vmatpush.bf16.msra.mxu2 %v2277_v29  ;;  %1105 = vmatpush.bf16.msra.mxu3 %v2285_v30  ;;  %v2300_v29 = vld [vmem:[%s2823_s4 + $0x258] sm:$0xff]  ;;  %v2309_v30 = vld [vmem:[%s2823_s4 + $0x2a0] sm:$0xff] }
  0xa7   : > { %1064 = vmatpush.bf16.msra.mxu0 %v2260_v27  ;;  %1078 = vmatpush.bf16.msra.mxu1 %v2268_v28  ;;  %v2318_v27 = vld [vmem:[%s2823_s4 + $0x2e8] sm:$0xff]  ;;  %v2292_v28 = vld [vmem:[%s2823_s4 + $0x218] sm:$0xff] }
  0xa8   : > { %1092 = vmatpush.bf16.msra.mxu2 %v2276_v33  ;;  %1106 = vmatpush.bf16.msra.mxu3 %v2284_v34  ;;  %v2299_v33 = vld [vmem:[%s2823_s4 + $0x250] sm:$0xff]  ;;  %v2308_v34 = vld [vmem:[%s2823_s4 + $0x298] sm:$0xff] }
  0xab   : > { %1065 = vmatpush.bf16.msra.mxu0 %v2259_v31  ;;  %1079 = vmatpush.bf16.msra.mxu1 %v2267_v32  ;;  %v2317_v31 = vld [vmem:[%s2823_s4 + $0x2e0] sm:$0xff]  ;;  %v2291_v32 = vld [vmem:[%s2823_s4 + $0x210] sm:$0xff] }
  0xac   : > { %1093 = vmatpush.bf16.msra.mxu2 %v2275_v37  ;;  %1107 = vmatpush.bf16.msra.mxu3 %v2283_v38  ;;  %v2298_v37 = vld [vmem:[%s2823_s4 + $0x248] sm:$0xff]  ;;  %v2307_v38 = vld [vmem:[%s2823_s4 + $0x290] sm:$0xff] }
  0xaf   : > { %1066 = vmatpush.bf16.msra.mxu0 %v2258_v35  ;;  %1080 = vmatpush.bf16.msra.mxu1 %v2266_v36  ;;  %v2316_v35 = vld [vmem:[%s2823_s4 + $0x2d8] sm:$0xff]  ;;  %v2290_v36 = vld [vmem:[%s2823_s4 + $0x208] sm:$0xff] }
  0xb0   : > { %1094 = vmatpush.bf16.msra.mxu2 %v2274_v41  ;;  %1108 = vmatpush.bf16.msra.mxu3 %v2282_v42  ;;  %v2297_v41 = vld [vmem:[%s2823_s4 + $0x240] sm:$0xff]  ;;  %v2306_v42 = vld [vmem:[%s2823_s4 + $0x288] sm:$0xff] }
  0xb3   : > { %1067 = vmatpush.bf16.msra.mxu0 %v2257_v39  ;;  %1081 = vmatpush.bf16.msra.mxu1 %v2265_v40  ;;  %v2315_v39 = vld [vmem:[%s2823_s4 + $0x2d0] sm:$0xff]  ;;  %v2289_v40 = vld [vmem:[%s2823_s4 + $0x200] sm:$0xff] }
  0xb4   : > { %1095 = vmatpush.bf16.msra.mxu2 %v2273_v43  ;;  %1109 = vmatpush.bf16.msra.mxu3 %v2281_v44  ;;  %v2314_v43 = vld [vmem:[%s2823_s4 + $0x2c8] sm:$0xff]  ;;  %v2305_v44 = vld [vmem:[%s2823_s4 + $0x280] sm:$0xff] }
 0x112   : > { %v423_v46 = vpop.f32.mrf.mxu0  ;;  %v437_v47 = vpop.f32.mrf.mxu1 }
 0x113   : > { %v424_v50 = vadd.f32 %v423_v46, %v370_v48  ;;  %v438_v51 = vadd.f32 %v437_v47, %v371_v49 }
 0x115   : > { %v470_v60 = vmax.f32 %v424_v50, 0.0  ;;  %v471_v61 = vmax.f32 %v438_v51, 0.0 }
 0x119   : > { %v451_v52 = vpop.f32.mrf.mxu2  ;;  %v465_v53 = vpop.f32.mrf.mxu3 }
 0x11a   : > { %v425_v54 = vpop.f32.mrf.mxu0  ;;  %v439_v55 = vpop.f32.mrf.mxu1  ;;  %v452_v6 = vadd.f32 %v451_v52, %v372_v58  ;;  %v466_v7 = vadd.f32 %v465_v53, %v373_v59 }
 0x11b   : > { %v426_v56 = vadd.f32 %v425_v54, %v370_v48  ;;  %v440_v57 = vadd.f32 %v439_v55, %v371_v49 }
 0x11c   : > { %v472_v14 = vmax.f32 %v452_v6, 0.0  ;;  %v473_v0 = vmax.f32 %v466_v7, 0.0 }
 0x11d   : > { %v474_v62 = vmax.f32 %v426_v56, 0.0  ;;  %v475_v63 = vmax.f32 %v440_v57, 0.0 }
 0x11f   : > { %v2660_v4 = vpack.c.bf16 %v474_v62, %v470_v60  ;;  %v2662_v5 = vpack.c.bf16 %v475_v63, %v471_v61 }
 0x121   : > { %v453_v8 = vpop.f32.mrf.mxu2  ;;  %v467_v9 = vpop.f32.mrf.mxu3  ;;  %746 = vmatmul.bf16.vlgmr.msrb.gmra.mxu0 %v2660_v4  ;;  %760 = vmatmul.bf16.vlgmr.msrb.gmra.mxu1 %v2662_v5 }
 0x122   : > { %v454_v10 = vadd.f32 %v453_v8, %v372_v58  ;;  %v468_v11 = vadd.f32 %v467_v9, %v373_v59  ;;  %1375 = vmatpush.bf16.msrb.mxu0 %v2296_v2  ;;  %1389 = vmatpush.bf16.msrb.mxu1 %v2304_v3  ;;  %v2215_v2 = vld [vmem:[%s2825_s6 + $0x4] sm:$0x3] }
 0x123   : > { %v1569_v3 = vsel %vm1519_vm7, %v2215_v2, 0 }
 0x124   : > { %v476_v1 = vmax.f32 %v454_v10, 0.0  ;;  %v477_v15 = vmax.f32 %v468_v11, 0.0 }
 0x126   : > { %v2678_v18 = vpack.c.bf16 %v476_v1, %v472_v14  ;;  %v2680_v19 = vpack.c.bf16 %v477_v15, %v473_v0  ;;  %1376 = vmatpush.bf16.msrb.mxu0 %v2295_v12  ;;  %1390 = vmatpush.bf16.msrb.mxu1 %v2303_v13 }
 0x128   : > { %774 = vmatmul.bf16.vlgmr.msrb.gmra.mxu2 %v2678_v18  ;;  %788 = vmatmul.bf16.vlgmr.msrb.gmra.mxu3 %v2680_v19 }
 0x129   : > { %1403 = vmatpush.bf16.msrb.mxu2 %v2312_v16  ;;  %1417 = vmatpush.bf16.msrb.mxu3 %v2320_v17 }
 0x12a   : > { %1377 = vmatpush.bf16.msrb.mxu0 %v2294_v20  ;;  %1391 = vmatpush.bf16.msrb.mxu1 %v2302_v21 }
 0x12d   : > { %1404 = vmatpush.bf16.msrb.mxu2 %v2311_v22  ;;  %1418 = vmatpush.bf16.msrb.mxu3 %v2319_v23 }
 0x12e   : > { %1378 = vmatpush.bf16.msrb.mxu0 %v2293_v24  ;;  %1392 = vmatpush.bf16.msrb.mxu1 %v2301_v25 }
 0x131   : > { %1405 = vmatpush.bf16.msrb.mxu2 %v2310_v26  ;;  %1419 = vmatpush.bf16.msrb.mxu3 %v2318_v27 }
 0x132   : > { %1068 = vmatmul.bf16.vlgmr.msra.gmra.mxu0 %v2660_v4  ;;  %1082 = vmatmul.bf16.vlgmr.msra.gmra.mxu1 %v2662_v5 }
 0x133   : > { %1379 = vmatpush.bf16.msrb.mxu0 %v2292_v28  ;;  %1393 = vmatpush.bf16.msrb.mxu1 %v2300_v29 }
 0x135   : > { %1406 = vmatpush.bf16.msrb.mxu2 %v2309_v30  ;;  %1420 = vmatpush.bf16.msrb.mxu3 %v2317_v31  ;;  %v2345_v30 = vld [vmem:[%s2824_s5] ss:$0 sm:$0xff] }
 0x137   : > { %1380 = vmatpush.bf16.msrb.mxu0 %v2291_v32  ;;  %1394 = vmatpush.bf16.msrb.mxu1 %v2299_v33 }
 0x138   : > { %1096 = vmatmul.bf16.vlgmr.msra.gmra.mxu2 %v2678_v18  ;;  %1110 = vmatmul.bf16.vlgmr.msra.gmra.mxu3 %v2680_v19 }
 0x139   : > { %1407 = vmatpush.bf16.msrb.mxu2 %v2308_v34  ;;  %1421 = vmatpush.bf16.msrb.mxu3 %v2316_v35  ;;  %v1447_v35 = vld [vmem:[%s315_s30] sm:$0xff] }
 0x13b   : > { %1381 = vmatpush.bf16.msrb.mxu0 %v2290_v36  ;;  %1395 = vmatpush.bf16.msrb.mxu1 %v2298_v37  ;;  %v1448_v36 = vld [vmem:[%s315_s30 + $0x8] sm:$0xff] }
 0x13d   : > { %1408 = vmatpush.bf16.msrb.mxu2 %v2307_v38  ;;  %1422 = vmatpush.bf16.msrb.mxu3 %v2315_v39 }
 0x13f   : > { %1382 = vmatpush.bf16.msrb.mxu0 %v2289_v40  ;;  %1396 = vmatpush.bf16.msrb.mxu1 %v2297_v41  ;;  %v1450_v40 = vsel %vm1449_vm9, %v1447_v35, 0.0  ;;  %v1451_v41 = vsel %vm1449_vm9, %v1448_v36, 0.0 }
 0x141   : > { %1409 = vmatpush.bf16.msrb.mxu2 %v2306_v42  ;;  %1423 = vmatpush.bf16.msrb.mxu3 %v2314_v43 }
 0x142   : > { %1383 = vmatmul.bf16.vlgmr.msrb.gmra.mxu0 %v2660_v4  ;;  %1397 = vmatmul.bf16.vlgmr.msrb.gmra.mxu1 %v2662_v5 }
 0x145   : > { %1410 = vmatpush.bf16.msrb.mxu2 %v2305_v44  ;;  %1424 = vmatpush.bf16.msrb.mxu3 %v2313_v45  ;;  %v2363_v44 = vmov 16.0   ;;  %v1452_v45 = vadd.f32 %v1451_v41, %v1450_v40 }
 0x146   : > { %2347 = vrcp.f32 %v2363_v44 }
 0x148   : > { %1411 = vmatmul.bf16.vlgmr.msrb.gmra.mxu2 %v2678_v18  ;;  %1425 = vmatmul.bf16.vlgmr.msrb.gmra.mxu3 %v2680_v19 }
 0x149   : > { %1578 = vmatpush.bf16.msra.mxu2 %v1569_v3 }
 0x19e   : > { %v747_v46 = vpop.f32.mrf.mxu0  ;;  %v761_v47 = vpop.f32.mrf.mxu1 }
 0x19f   : > { %v762_v4 = vadd.f32 %v761_v47, %v747_v46  ;;  %v1453_v47 = vrot.slane %v1452_v45, 4 }
 0x1a6   : > { %v749_v48 = vpop.f32.mrf.mxu0  ;;  %v763_v49 = vpop.f32.mrf.mxu1 }
 0x1a7   : > { %v764_v12 = vadd.f32 %v763_v49, %v749_v48  ;;  %v2348_v48 = vpop.eup %2347  ;;  %v1454_v49 = vadd.f32 %v1453_v47, %v1452_v45 }
 0x1a8   : > { %vm1464_vm10 = vweird.f32 %v2348_v48 }
 0x1ab   : > { %v775_v50 = vpop.f32.mrf.mxu2  ;;  %v789_v51 = vpop.f32.mrf.mxu3 }
 0x1ac   : > { %v776_v7 = vadd.f32 %v775_v50, %v762_v4  ;;  %v1460_v50 = vmul.f32 16.0, %v2348_v48 }
 0x1ae   : > { %v790_v13 = vadd.f32 %v789_v51, %v776_v7  ;;  %v1455_v51 = vrot.slane %v1454_v49, 2 }
 0x1af   : > { %v1069_v52 = vpop.f32.mrf.mxu0  ;;  %v1083_v53 = vpop.f32.mrf.mxu1 }
 0x1b0   : > { %v1084_v9 = vadd.f32 %v1083_v53, %v1069_v52  ;;  %v797_v17 = vrot.slane %v790_v13, 7  ;;  %v1461_v52 = vsub.f32 1.0, %v1460_v50  ;;  %v1456_v53 = vadd.f32 %v1455_v51, %v1454_v49  ;;  %v2346_v51 = vld [vmem:[%s2826_s7] ss:$0 sm:$0xff] }
 0x1b2   : > { %v802_v26 = vsel %vm796_vm8, 0.0, %v797_v17 }
 0x1b3   : > { %v777_v54 = vpop.f32.mrf.mxu2  ;;  %v791_v55 = vpop.f32.mrf.mxu3 }
 0x1b4   : > { %v778_v1 = vadd.f32 %v777_v54, %v764_v12  ;;  %v1462_v54 = vmul.f32 %v2348_v48, %v1461_v52 }
 0x1b6   : > { %v792_v23 = vadd.f32 %v791_v55, %v778_v1  ;;  %v1457_v55 = vrot.slane %v1456_v53, 1 }
 0x1b7   : > { %v1071_v56 = vpop.f32.mrf.mxu0  ;;  %v1085_v57 = vpop.f32.mrf.mxu1 }
 0x1b8   : > { %v1086_v20 = vadd.f32 %v1085_v57, %v1071_v56  ;;  %v798_v31 = vrot.slane %v792_v23, 7  ;;  %v1463_v56 = vadd.f32 %v2348_v48, %v1462_v54  ;;  %v1458_v57 = vadd.f32 %v1457_v55, %v1456_v53 }
 0x1ba   : > { %v799_v38 = vsel %vm796_vm8, %v797_v17, %v798_v31 }
 0x1bb   : > { %v1097_v58 = vpop.f32.mrf.mxu2  ;;  %v1111_v59 = vpop.f32.mrf.mxu3 }
 0x1bc   : > { %v1098_v0 = vadd.f32 %v1097_v58, %v1084_v9  ;;  %v1465_v58 = vsel %vm1464_vm10, %v2348_v48, %v1463_v56 }
 0x1be   : > { %v1112_v21 = vadd.f32 %v1111_v59, %v1098_v0  ;;  %v1466_v59 = vmul.f32 %v1465_v58, %v1458_v57  ;;  %v2213_v0 = vld [vmem:[%s2825_s6 + $0x2] sm:$0x3] }
 0x1bf   : > { %v1384_v62 = vpop.f32.mrf.mxu0  ;;  %v1398_v63 = vpop.f32.mrf.mxu1 }
 0x1c0   : > { %v1399_v8 = vadd.f32 %v1398_v63, %v1384_v62  ;;  %v1116_v29 = vadd.f32 %v1112_v21, %v802_v26 }
 0x1c3   : > { %v1099_v60 = vpop.f32.mrf.mxu2  ;;  %v1113_v61 = vpop.f32.mrf.mxu3 }
 0x1c4   : > { %v1100_v25 = vadd.f32 %v1099_v60, %v1086_v20  ;;  %v1467_v60 = vsub.f32 %v1447_v35, %v1466_v59 }
 0x1c6   : > { %v1114_v33 = vadd.f32 %v1113_v61, %v1100_v25  ;;  %v1468_v61 = vsub.f32 %v1448_v36, %v1466_v59  ;;  %v1469_v62 = vmul.f32 %v1467_v60, %v1467_v60 }
 0x1c7   : > { %v1386_v10 = vpop.f32.mrf.mxu0  ;;  %v1400_v11 = vpop.f32.mrf.mxu1 }
 0x1c8   : > { %v1401_v15 = vadd.f32 %v1400_v11, %v1386_v10  ;;  %v1117_v42 = vadd.f32 %v1114_v33, %v799_v38  ;;  %v1470_v63 = vmul.f32 %v1468_v61, %v1468_v61  ;;  %v1471_v2 = vsel %vm1449_vm9, %v1469_v62, 0.0 }
 0x1ca   : > { %v1472_v3 = vsel %vm1449_vm9, %v1470_v63, 0.0 }
 0x1cb   : > { %v1412_v5 = vpop.f32.mrf.mxu2  ;;  %v1426_v6 = vpop.f32.mrf.mxu3  ;;  %v1473_v4 = vadd.f32 %v1472_v3, %v1471_v2 }
 0x1cc   : > { %v1413_v14 = vadd.f32 %v1412_v5, %v1399_v8 }
 0x1cd   : > { %v1474_v5 = vrot.slane %v1473_v4, 4 }
 0x1ce   : > { %v1427_v18 = vadd.f32 %v1426_v6, %v1413_v14  ;;  %v1515_v14 = vld [vmem:[%s2825_s6] sm:$0x3] }
 0x1cf   : > { %v1475_v6 = vadd.f32 %v1474_v5, %v1473_v4  ;;  %v1521_v1 = vsel %vm1519_vm7, %v1515_v14, 0 }
 0x1d0   : > { %v1433_v27 = vrot.slane %v1427_v18, 1  ;;  %1530 = vmatpush.bf16.msra.mxu0 %v1521_v1 }
 0x1d1   : > { %v1476_v7 = vrot.slane %v1475_v6, 2 }
 0x1d3   : > { %v1414_v16 = vpop.f32.mrf.mxu2  ;;  %v1428_v22 = vpop.f32.mrf.mxu3  ;;  %v1477_v8 = vadd.f32 %v1476_v7, %v1475_v6 }
 0x1d4   : > { %v1415_v19 = vadd.f32 %v1414_v16, %v1401_v15  ;;  %v1548_v15 = vsel %vm1519_vm7, %v2213_v0, 0 }
 0x1d5   : > { %v1478_v9 = vrot.slane %v1477_v8, 1  ;;  %1557 = vmatpush.bf16.msra.mxu1 %v1548_v15 }
 0x1d6   : > { %v1429_v24 = vadd.f32 %v1428_v22, %v1415_v19 }
 0x1d7   : > { %v1479_v10 = vadd.f32 %v1478_v9, %v1477_v8 }
 0x1d8   : > { %v1434_v28 = vrot.slane %v1429_v24, 1 }
 0x1d9   : > { %v1480_v11 = vmul.f32 %v1479_v10, %v1465_v58 }
 0x1da   : > { %v1435_v32 = vsel %vm333_vm0, %v1433_v27, %v1434_v28  ;;  %v1438_v39 = vsel %vm333_vm0, %v1434_v28, 0.0 }
 0x1db   : > { %v1439_v34 = vadd.f32 %v1435_v32, %v1116_v29  ;;  %v1440_v43 = vadd.f32 %v1438_v39, %v1117_v42  ;;  %v1481_v12 = vadd.f32 1e-05, %v1480_v11 }
 0x1dd   : > { %v1445_v37 = vadd.f32 %v2345_v30, %v1439_v34  ;;  %v1446_v46 = vadd.f32 %v2345_v30, %v1440_v43  ;;  %2349 = vrsqrt.f32 %v1481_v12  ;;  %vm1488_vm11 = vweird.f32 %v1481_v12 }
 0x1df   : > { %1500 = vrot.lane.b32.xlu1 %v1445_v37, %s2362_s11  ;;  %v1494_v22 = vadd.f32 1.0, %v1445_v37  ;;  %v1495_v27 = vadd.f32 1.0, %v1446_v46 }
 0x1e3   : > { %v2350_v13 = vpop.eup %2349 }
 0x1e4   : > { %v1483_v16 = vmul.f32 %v2350_v13, %v1481_v12  ;;  %vm1489_vm12 = vweird.f32 %v2350_v13 }
 0x1e5   : > { %vm1490_vm13 = vmor %vm1488_vm11, %vm1489_vm12 }
 0x1e6   : > { %v1484_v17 = vmul.f32 %v2350_v13, %v1483_v16 }
 0x1e7   : > { %1502 = vrot.lane.b32.xlu1 %v1446_v46, %s2362_s11 }
 0x1e8   : > { %v1485_v18 = vmul.f32 0.5, %v1484_v17 }
 0x1ea   : > { %v1486_v19 = vsub.f32 1.5, %v1485_v18 }
 0x1ec   : > { %v1487_v20 = vmul.f32 %v2350_v13, %v1486_v19 }
 0x1ee   : > { %v1491_v21 = vsel %vm1490_vm13, %v2350_v13, %v1487_v20 }
 0x1ef   : > { %v1492_v23 = vmul.f32 %v1491_v21, %v1467_v60  ;;  %v1493_v26 = vmul.f32 %v1491_v21, %v1468_v61 }
 0x1f1   : > { %v1496_v25 = vmul.f32 %v1494_v22, %v1492_v23  ;;  %v1497_v29 = vmul.f32 %v1495_v27, %v1493_v26 }
 0x251   : > { %v1501_v24 = vpop.permute.xlu1 %1500 }
 0x252   : > { %v1506_v28 = vadd.f32 %v1501_v24, %v1496_v25 }
 0x254   : > { %v1510_v31 = vmul.f32 0.2, %v1506_v28  ;;  %vm1508_vm14 = vcmp.ge.f32.partialorder %v1506_v28, 0.0 }
 0x256   : > { %v1512_v34 = vsel %vm1508_vm14, %v1506_v28, %v1510_v31 }
 0x259   : > { %v1503_v30 = vpop.permute.xlu1 %1502 }
 0x25a   : > { %v1507_v32 = vadd.f32 %v1503_v30, %v1497_v29 }
 0x25c   : > { %vm1509_vm15 = vcmp.ge.f32.partialorder %v1507_v32, 0.0  ;;  %v1511_v33 = vmul.f32 0.2, %v1507_v32 }
 0x25e   : > { %v1513_v35 = vsel %vm1509_vm15, %v1507_v32, %v1511_v33 }
 0x25f   : > { %v1514_v36 = vpack.c.bf16 %v1513_v35, %v1512_v34 }
 0x261   : > { %2212 = vmatmul.msk.bf16.vlgmr.msra.gmra.mxu0 %vm1449_vm9, %v1514_v36  ;;  %2214 = vmatmul.msk.bf16.vlgmr.msra.gmra.mxu1 %vm1449_vm9, %v1514_v36 }
 0x262   : > { %2216 = vmatmul.msk.bf16.vlgmr.msra.gmra.mxu2 %vm1449_vm9, %v1514_v36 }
 0x2de   : > { %v1532_v37 = vpop.f32.mrf.mxu0  ;;  %v1559_v38 = vpop.f32.mrf.mxu1 }
 0x2df   : > { %v1539_v41 = vrot.slane %v1532_v37, 7 }
 0x2e1   : > { %v1544_v43 = vsel %vm796_vm8, 0.0, %v1539_v41 }
 0x2e2   : > { %v1564_v49 = vadd.f32 %v1559_v38, %v1544_v43 }
 0x2e5   : > { %v1580_v39 = vpop.f32.mrf.mxu2 }
 0x2e6   : > { %v1534_v40 = vpop.f32.mrf.mxu0  ;;  %v1587_v46 = vrot.slane %v1580_v39, 1  ;;  %v1561_v47 = vpop.f32.mrf.mxu1 }
 0x2e7   : > { %v1540_v42 = vrot.slane %v1534_v40, 7 }
 0x2e9   : > { %v1541_v44 = vsel %vm796_vm8, %v1539_v41, %v1540_v42 }
 0x2ea   : > { %v1565_v50 = vadd.f32 %v1561_v47, %v1541_v44 }
 0x2ed   : > { %v1582_v45 = vpop.f32.mrf.mxu2 }
 0x2ee   : > { %v1588_v48 = vrot.slane %v1582_v45, 1 }
 0x2f0   : > { %v1589_v52 = vsel %vm333_vm0, %v1587_v46, %v1588_v48  ;;  %v1592_v53 = vsel %vm333_vm0, %v1588_v48, 0.0 }
 0x2f1   : > { %v1593_v54 = vadd.f32 %v1589_v52, %v1564_v49  ;;  %v1594_v55 = vadd.f32 %v1592_v53, %v1565_v50 }
 0x2f3   : > { %v1599_v56 = vadd.f32 %v2346_v51, %v1593_v54  ;;  %v1600_v57 = vadd.f32 %v2346_v51, %v1594_v55 }
 0x2f5   : > { %1601 = vst.msk [vmem:[%s325_s20] sm:$0xff] %vm1449_vm9, %v1599_v56 }
 0x2f6   : > { %1602 = vst.msk [vmem:[%s325_s20 + $0x8] sm:$0xff] %vm1449_vm9, %v1600_v57 }
 0x2f7 PF: > { %s18_s27 = sadd.s32 1, %s2357_s27  }
 0x2f8   : > { %p15_p4 = scmp.ge.s32.totalorder %s18_s27, 4  }
 0x2fa   :  { %17 = sbr.rel (!%p15_p4) target bundleno = 1 (0x1), region = 89 }

</bundles_post_ra>
